<compile_context>
chip_gen: v5e
topology: v5e:2x2
jax: 0.10.0
libtpu: 0.0.40
codegen_flags: <defaults>
</compile_context>

<pallas_src>
import functools
import math

import jax
import jax.numpy as jnp
from jax.experimental import pallas as pl
from jax.experimental.pallas import tpu as pltpu


def _packed_headdim1_attention(q, k, v):
    """softmax(q*k per lane) @ v for head_dim == 1 (num_heads == embed_dim).

    q, k, v: (L, N) float32 where the lane axis N packs (batch, head); the softmax
    scale is 1 since head_dim == 1.  logits[i, j, n] = q[i, n] * k[j, n], softmax
    over keys j.  The (L, L, N) logits cube is the kernel's dominant vector work;
    with N = tb*D >= 128 every VPU/EUP op on it is lane-dense.
    """
    logits = q[:, None, :] * k[None, :, :]            # (L, S, N)
    m = jnp.max(logits, axis=1, keepdims=True)        # reduce over keys S (XLU)
    p = jnp.exp(logits - m)                           # EUP
    s = jnp.sum(p, axis=1)                            # (L, N)
    ctx = jnp.sum(p * v[None, :, :], axis=1)          # (L, N) un-normalised context
    r = pl.reciprocal(s, approx=True)                 # EUP slot
    r = r * (2.0 - s * r)                             # one Newton step -> ~exact
    return ctx * r


def _tensor_attention_kernel(xp_ref, yp_ref, w_in_ref, b_in_ref,
                             w_o1_ref, b_o1_ref, w_o2_ref, b_o2_ref,
                             o_ref, *, tb, inv_coef):
    D, N = xp_ref.shape                                # N = tb * D (packed lane width)
    x = xp_ref[...].astype(jnp.float32)                # x[i, b*D+f] = a[b, i, f]
    y = yp_ref[...].astype(jnp.float32)                # y[i, b*D+f] = a[b, f, i]

    # ---- fused QKV projections: ONE MXU matmul vs host-built block-diag weight ----
    # lhs columns: [x packed | y packed]; output columns: [q1|k1|v2|q2|k2|v1] packed.
    lhs = jnp.concatenate([x, y], axis=1)              # (D, 2N)
    zw = jnp.dot(lhs, w_in_ref[...],
                 preferred_element_type=jnp.float32) + b_in_ref[...]     # (D, 6N)
    q1, k1, v2 = zw[:, 0 * N:1 * N], zw[:, 1 * N:2 * N], zw[:, 2 * N:3 * N]
    q2, k2, v1 = zw[:, 3 * N:4 * N], zw[:, 4 * N:5 * N], zw[:, 5 * N:6 * N]

    # ---- head_dim == 1 attention, lane-packed over (batch, head) -------------------
    # TODO(synk): for very large D (tb == 1 and D*D*D*4B approaching the VMEM budget)
    #             tile the query axis of the logits cube; unnecessary at these sizes.
    ctx1 = _packed_headdim1_attention(q1, k1, v1)      # [i, b*D+h]
    ctx2 = _packed_headdim1_attention(q2, k2, v2)      # [c, b*D+h]

    # ---- output projections (0.5 engine average pre-folded into the weights) -------
    # o1/2 stays in the packed [i, b*D+j] layout via a block-diagonal matmul.
    o1h = jnp.dot(ctx1, w_o1_ref[...],
                  preferred_element_type=jnp.float32) + b_o1_ref[...]    # (D, N)

    # o2^T/2: per batch, out[i, j] = sum_h 0.5*Wo2[i, h] * ctx2[b, j, h].  The "NT"
    # dot_general folds the module's o2 transpose into the projection itself, so no
    # XLU transpose, no scratch store — just tb tiny MXU matmuls on values.
    nt_dims = (((1,), (1,)), ((), ()))
    w_o2 = w_o2_ref[...]                               # (D, D) = 0.5 * Wo2
    o2th = jnp.concatenate(
        [jax.lax.dot_general(w_o2, ctx2[:, b * D:(b + 1) * D], nt_dims,
                             preferred_element_type=jnp.float32)
         for b in range(tb)],
        axis=1) + b_o2_ref[...]                        # (D, N), bias broadcast on lanes

    # ---- fused epilogue: engine + residual, tanh, 1/coef — one lane-dense store ----
    o_ref[...] = (jnp.tanh(o1h + o2th + x) * inv_coef).astype(o_ref.dtype)


def _vmem_footprint_bytes(tb, D):
    """Rough per-grid-step live-VMEM estimate (f32)."""
    N = tb * D
    cube = D * D * N * 4                 # one (L, S, N) logits cube
    act = 8 * D * N * 4                  # zw slices, ctx, epilogue temporaries
    wts = ((2 * N) * (6 * N) + N * N + 8 * N + D * D + D) * 4
    io = 3 * 2 * D * N * 4               # double-buffered xp / yp / out blocks
    return int(2.5 * cube) + act + wts + io


def _pick_tb(n, D, vmem_budget_bytes):
    """Batch-tile size: packed lane width a multiple of 128, ~256 lanes target,
    never forcing extra grid steps (v5e/v6e are single-TC), VMEM-capped (v7x)."""
    step = 128 // math.gcd(D, 128)               # smallest tb with (tb*D) % 128 == 0
    tb = step * max(1, 256 // (step * D))        # target ~256 packed lanes
    tb = min(tb, step * pl.cdiv(n, step))        # don't pad far beyond the real batch
    tb = max(tb, step)
    while tb > step and _vmem_footprint_bytes(tb, D) > vmem_budget_bytes:
        tb -= step
    return tb


def tensor_attention_forward(x, params, *, alpha=4, block_batch=None):
    """TensorAttention (2-D shape) forward: tanh(U2D_engine(x) + x) / cal_scale(shape, alpha)."""
    orig_shape = x.shape
    if x.ndim == 4:                       # (B, C, D, D) -> (B*C, D, D)
        a = x.reshape(x.shape[0] * x.shape[1], x.shape[2], x.shape[3])
    elif x.ndim == 3:
        a = x
    else:
        raise ValueError(f"expected rank-3 or rank-4 input, got {x.shape}")
    n, D1, D2 = a.shape
    assert D1 == D2, "TensorAttentionU2D requires a square trailing shape"
    D = D1

    win1, bin1, wo1, bo1, win2, bin2, wo2, bo2 = params
    # num_heads == embed_dim == D  =>  head_dim == 1 and softmax scale == 1.
    assert win1.shape == (3 * D, D) and win2.shape == (3 * D, D)
    assert wo1.shape == (D, D) and wo2.shape == (D, D)

    # Generation-aware VMEM budget (v7x: 64 MiB physical, v5e/v6e: 128 MiB).
    try:
        vmem_cap = int(pltpu.get_tpu_info().vmem_capacity_bytes)
    except Exception:                      # conservative fallback
        vmem_cap = 64 * 1024 * 1024

    tb = block_batch if block_batch is not None else _pick_tb(n, D, int(0.6 * vmem_cap))
    N = tb * D
    grid_b = pl.cdiv(n, tb)
    assert (N % 128 == 0) or grid_b == 1, "tb*D must be a multiple of 128 when tiled"
    n_pad = grid_b * tb
    if n_pad != n:
        a = jnp.concatenate([a, jnp.zeros((n_pad - n, D, D), a.dtype)], axis=0)

    # Host-side layout plumbing (lane-dense kernel I/O): pack x and y = x^T so the
    # in-kernel lane axis is (batch, head/col).
    xp = jnp.transpose(a, (1, 0, 2)).reshape(D, n_pad * D)   # [i, b*D+f] = a[b, i, f]
    yp = jnp.transpose(a, (2, 0, 1)).reshape(D, n_pad * D)   # [i, b*D+f] = a[b, f, i]

    # Host-side weight prep.
    # attn_1(x, x, y): q1,k1 <- x, v1 <- y ; attn_2(y, y, x): q2,k2 <- y, v2 <- x.
    f32 = jnp.float32
    wq1, wk1, wv1 = win1[:D].astype(f32), win1[D:2 * D].astype(f32), win1[2 * D:].astype(f32)
    wq2, wk2, wv2 = win2[:D].astype(f32), win2[D:2 * D].astype(f32), win2[2 * D:].astype(f32)
    bq1, bk1, bv1 = bin1[:D].astype(f32), bin1[D:2 * D].astype(f32), bin1[2 * D:].astype(f32)
    bq2, bk2, bv2 = bin2[:D].astype(f32), bin2[D:2 * D].astype(f32), bin2[2 * D:].astype(f32)

    eye = jnp.eye(tb, dtype=f32)
    bd = lambda w: jnp.kron(eye, w.T)                         # (N, N) block-diagonal
    w_x = jnp.concatenate([bd(wq1), bd(wk1), bd(wv2)], axis=1)   # x -> [q1 | k1 | v2]
    w_y = jnp.concatenate([bd(wq2), bd(wk2), bd(wv1)], axis=1)   # y -> [q2 | k2 | v1]
    zblk = jnp.zeros_like(w_x)
    w_in = jnp.concatenate([jnp.concatenate([w_x, zblk], axis=1),
                            jnp.concatenate([zblk, w_y], axis=1)], axis=0)   # (2N, 6N)
    b_in = jnp.concatenate([jnp.tile(bq1, tb), jnp.tile(bk1, tb), jnp.tile(bv2, tb),
                            jnp.tile(bq2, tb), jnp.tile(bk2, tb), jnp.tile(bv1, tb)]
                           ).reshape(1, 6 * N)

    # 0.5 engine average folded into the output projections.
    w_o1 = jnp.kron(eye, (0.5 * wo1.astype(f32)).T)           # (N, N) block-diagonal
    b_o1 = jnp.tile(0.5 * bo1.astype(f32), tb).reshape(1, N)  # row bias
    w_o2 = 0.5 * wo2.astype(f32)                              # (D, D), used "NT"
    b_o2 = (0.5 * bo2.astype(f32)).reshape(D, 1)              # column bias

    # scaled_Tanh coefficient: cal_scale((D, D), alpha) = sqrt((alpha*D*D)^(1/2)).
    inv_coef = 1.0 / math.sqrt((alpha * D * D) ** 0.5)

    vmem_limit = int(max(32 * 1024 * 1024,
                         min(0.9 * vmem_cap, 2.0 * _vmem_footprint_bytes(tb, D))))

    rep = lambda g: (0, 0)
    out_p = pl.pallas_call(
        functools.partial(_tensor_attention_kernel, tb=tb, inv_coef=inv_coef),
        out_shape=jax.ShapeDtypeStruct((D, n_pad * D), a.dtype),
        grid=(grid_b,),
        in_specs=[
            pl.BlockSpec((D, N), lambda g: (0, g)),           # x packed block
            pl.BlockSpec((D, N), lambda g: (0, g)),           # y = x^T packed block
            pl.BlockSpec((2 * N, 6 * N), rep),                # fused block-diag QKV weight
            pl.BlockSpec((1, 6 * N), rep),                    # fused QKV bias (row)
            pl.BlockSpec((N, N), rep),                        # block-diag (0.5*Wo1)^T
            pl.BlockSpec((1, N), rep),                        # 0.5*bo1 (row)
            pl.BlockSpec((D, D), rep),                        # 0.5*Wo2 (used "NT")
            pl.BlockSpec((D, 1), rep),                        # 0.5*bo2 (column)
        ],
        out_specs=pl.BlockSpec((D, N), lambda g: (0, g)),
        compiler_params=pltpu.CompilerParams(
            dimension_semantics=("parallel",),                # shards on v7x megacore
            vmem_limit_bytes=vmem_limit,
        ),
    )(xp, yp, w_in, b_in, w_o1, b_o1, w_o2, b_o2)

    # Host-side un-packing of the lane-dense kernel output (layout plumbing only).
    out = jnp.transpose(out_p.reshape(D, n_pad, D), (1, 0, 2))[:n]
    return out.reshape(orig_shape)


# ---------------- pure-JAX reference (for correctness check) ----------------
def _ref_mha_headdim1(q_in, k_in, v_in, w_in, b_in, w_out, b_out, D):
    wq, wk, wv = w_in[:D], w_in[D:2 * D], w_in[2 * D:]
    bq, bk, bv = b_in[:D], b_in[D:2 * D], b_in[2 * D:]
    q = q_in @ wq.T + bq
    k = k_in @ wk.T + bk
    v = v_in @ wv.T + bv
    logits = jnp.einsum('bih,bjh->bhij', q, k)       # head_dim = 1 => scale = 1
    p = jax.nn.softmax(logits, axis=-1)
    ctx = jnp.einsum('bhij,bjh->bih', p, v)
    return ctx @ w_out.T + b_out


def _ref_forward(x, params, alpha=4):
    orig_shape = x.shape
    if x.ndim == 4:
        x = x.reshape(x.shape[0] * x.shape[1], x.shape[2], x.shape[3])
    D = x.shape[-1]
    win1, bin1, wo1, bo1, win2, bin2, wo2, bo2 = params
    y = jnp.swapaxes(x, 1, 2)
    o1 = _ref_mha_headdim1(x, x, y, win1, bin1, wo1, bo1, D)
    o2 = jnp.swapaxes(_ref_mha_headdim1(y, y, x, win2, bin2, wo2, bo2, D), 1, 2)
    out = (o1 + o2) / 2 + x                          # engine + residual
    coef = math.sqrt((alpha * D * D) ** 0.5)
    return (jnp.tanh(out) / coef).reshape(orig_shape)


if __name__ == "__main__":
    B, C, D = 2, 4, 16             # TensorAttention(shape=(16, 16), channels=4)
    alpha = 4
    key = jax.random.PRNGKey(0)
    ks = jax.random.split(key, 9)
    wscale = 1.0 / math.sqrt(D)

    x = jax.random.normal(ks[0], (B, C, D, D), jnp.float32)
    win1 = jax.random.normal(ks[1], (3 * D, D), jnp.float32) * wscale
    bin1 = jax.random.normal(ks[2], (3 * D,), jnp.float32) * 0.1
    wo1 = jax.random.normal(ks[3], (D, D), jnp.float32) * wscale
    bo1 = jax.random.normal(ks[4], (D,), jnp.float32) * 0.1
    win2 = jax.random.normal(ks[5], (3 * D, D), jnp.float32) * wscale
    bin2 = jax.random.normal(ks[6], (3 * D,), jnp.float32) * 0.1
    wo2 = jax.random.normal(ks[7], (D, D), jnp.float32) * wscale
    bo2 = jax.random.normal(ks[8], (D,), jnp.float32) * 0.1
    params = (win1, bin1, wo1, bo1, win2, bin2, wo2, bo2)

    out = tensor_attention_forward(x, params, alpha=alpha)
    out = jax.block_until_ready(out)

    ref = _ref_forward(x, params, alpha=alpha)
    assert out.shape == x.shape
    assert jnp.allclose(out, ref, rtol=1e-4, atol=1e-4), "mismatch vs reference"

    print("KERNEL_OK")
</pallas_src>

<mosaic_0001>
module attributes {stable_mosaic.version = 11 : i64} {
  func.func @_tensor_attention_kernel(%arg0: i32, %arg1: memref<16x128xf32, #tpu.memory_space<vmem>>, %arg2: memref<16x128xf32, #tpu.memory_space<vmem>>, %arg3: memref<256x768xf32, #tpu.memory_space<vmem>>, %arg4: memref<1x768xf32, #tpu.memory_space<vmem>>, %arg5: memref<128x128xf32, #tpu.memory_space<vmem>>, %arg6: memref<1x128xf32, #tpu.memory_space<vmem>>, %arg7: memref<16x16xf32, #tpu.memory_space<vmem>>, %arg8: memref<16x1xf32, #tpu.memory_space<vmem>>, %arg9: memref<16x128xf32, #tpu.memory_space<vmem>>) attributes {dimension_semantics = [#tpu.dimension_semantics<parallel>], iteration_bounds = array<i64: 1>, scalar_prefetch = 0 : i64, scratch_operands = 0 : i64, tpu.core_type = #tpu.core_type<tc>, window_params = [{transform_indices = @transform_0, window_bounds = array<i64: 16, 128>}, {transform_indices = @transform_1, window_bounds = array<i64: 16, 128>}, {pipeline_mode = #tpu.pipeline_mode<synchronous>, transform_indices = @transform_2, window_bounds = array<i64: 256, 768>}, {pipeline_mode = #tpu.pipeline_mode<synchronous>, transform_indices = @transform_3, window_bounds = array<i64: 1, 768>}, {pipeline_mode = #tpu.pipeline_mode<synchronous>, transform_indices = @transform_4, window_bounds = array<i64: 128, 128>}, {pipeline_mode = #tpu.pipeline_mode<synchronous>, transform_indices = @transform_5, window_bounds = array<i64: 1, 128>}, {pipeline_mode = #tpu.pipeline_mode<synchronous>, transform_indices = @transform_6, window_bounds = array<i64: 16, 16>}, {pipeline_mode = #tpu.pipeline_mode<synchronous>, transform_indices = @transform_7, window_bounds = array<i64: 16, 1>}, {transform_indices = @transform_8, window_bounds = array<i64: 16, 128>}]} {
    %c0 = arith.constant 0 : index
    %c0_0 = arith.constant 0 : index
    %0 = vector.load %arg1[%c0, %c0_0] : memref<16x128xf32, #tpu.memory_space<vmem>>, vector<16x128xf32>
    %c0_1 = arith.constant 0 : index
    %c0_2 = arith.constant 0 : index
    %1 = vector.load %arg2[%c0_1, %c0_2] : memref<16x128xf32, #tpu.memory_space<vmem>>, vector<16x128xf32>
    %2 = tpu.concatenate %0, %1 in 1 : vector<16x128xf32>, vector<16x128xf32> -> vector<16x256xf32>
    %c0_3 = arith.constant 0 : index
    %c0_4 = arith.constant 0 : index
    %3 = vector.load %arg3[%c0_3, %c0_4] : memref<256x768xf32, #tpu.memory_space<vmem>>, vector<256x768xf32>
    %cst = arith.constant dense<0.000000e+00> : vector<16x768xf32>
    %4 = tpu.matmul %2, %3, %cst {dimension_numbers = #tpu.dot_dimension_numbers<[1], [0], [0], [1], [0, 0, 1, 1], [], []>} : vector<16x256xf32>, vector<256x768xf32>, vector<16x768xf32> -> vector<16x768xf32>
    %c0_5 = arith.constant 0 : index
    %c0_6 = arith.constant 0 : index
    %5 = vector.load %arg4[%c0_5, %c0_6] : memref<1x768xf32, #tpu.memory_space<vmem>>, vector<1x768xf32>
    %6 = vector.broadcast %5 : vector<1x768xf32> to vector<16x768xf32>
    %7 = arith.addf %4, %6 : vector<16x768xf32>
    %8 = vector.extract_strided_slice %7 {offsets = [0, 0], sizes = [16, 128], strides = [1, 1]} : vector<16x768xf32> to vector<16x128xf32>
    %9 = vector.extract_strided_slice %7 {offsets = [0, 128], sizes = [16, 128], strides = [1, 1]} : vector<16x768xf32> to vector<16x128xf32>
    %10 = vector.extract_strided_slice %7 {offsets = [0, 256], sizes = [16, 128], strides = [1, 1]} : vector<16x768xf32> to vector<16x128xf32>
    %11 = vector.extract_strided_slice %7 {offsets = [0, 384], sizes = [16, 128], strides = [1, 1]} : vector<16x768xf32> to vector<16x128xf32>
    %12 = vector.extract_strided_slice %7 {offsets = [0, 512], sizes = [16, 128], strides = [1, 1]} : vector<16x768xf32> to vector<16x128xf32>
    %13 = vector.extract_strided_slice %7 {offsets = [0, 640], sizes = [16, 128], strides = [1, 1]} : vector<16x768xf32> to vector<16x128xf32>
    %14 = vector.shape_cast %8 : vector<16x128xf32> to vector<16x1x128xf32>
    %15 = vector.shape_cast %9 : vector<16x128xf32> to vector<1x16x128xf32>
    %16 = vector.broadcast %14 : vector<16x1x128xf32> to vector<16x16x128xf32>
    %17 = vector.broadcast %15 : vector<1x16x128xf32> to vector<16x16x128xf32>
    %18 = arith.mulf %16, %17 : vector<16x16x128xf32>
    %cst_7 = arith.constant dense<0xFF800000> : vector<16x128xf32>
    %19 = vector.multi_reduction <maximumf>, %18, %cst_7 [1] : vector<16x16x128xf32> to vector<16x128xf32>
    %20 = vector.shape_cast %19 : vector<16x128xf32> to vector<16x1x128xf32>
    %21 = vector.broadcast %20 : vector<16x1x128xf32> to vector<16x16x128xf32>
    %22 = arith.subf %18, %21 : vector<16x16x128xf32>
    %23 = math.exp %22 : vector<16x16x128xf32>
    %cst_8 = arith.constant dense<0.000000e+00> : vector<16x128xf32>
    %24 = vector.multi_reduction <add>, %23, %cst_8 [1] : vector<16x16x128xf32> to vector<16x128xf32>
    %25 = vector.shape_cast %13 : vector<16x128xf32> to vector<1x16x128xf32>
    %26 = vector.broadcast %25 : vector<1x16x128xf32> to vector<16x16x128xf32>
    %27 = arith.mulf %23, %26 : vector<16x16x128xf32>
    %cst_9 = arith.constant dense<0.000000e+00> : vector<16x128xf32>
    %28 = vector.multi_reduction <add>, %27, %cst_9 [1] : vector<16x16x128xf32> to vector<16x128xf32>
    %29 = tpu.reciprocal %24 {approx = true} : vector<16x128xf32> -> vector<16x128xf32>
    %30 = arith.mulf %24, %29 : vector<16x128xf32>
    %cst_10 = arith.constant 2.000000e+00 : f32
    %31 = vector.broadcast %cst_10 : f32 to vector<16x128xf32>
    %32 = arith.subf %31, %30 : vector<16x128xf32>
    %33 = arith.mulf %29, %32 : vector<16x128xf32>
    %34 = arith.mulf %28, %33 : vector<16x128xf32>
    %35 = vector.shape_cast %11 : vector<16x128xf32> to vector<16x1x128xf32>
    %36 = vector.shape_cast %12 : vector<16x128xf32> to vector<1x16x128xf32>
    %37 = vector.broadcast %35 : vector<16x1x128xf32> to vector<16x16x128xf32>
    %38 = vector.broadcast %36 : vector<1x16x128xf32> to vector<16x16x128xf32>
    %39 = arith.mulf %37, %38 : vector<16x16x128xf32>
    %cst_11 = arith.constant dense<0xFF800000> : vector<16x128xf32>
    %40 = vector.multi_reduction <maximumf>, %39, %cst_11 [1] : vector<16x16x128xf32> to vector<16x128xf32>
    %41 = vector.shape_cast %40 : vector<16x128xf32> to vector<16x1x128xf32>
    %42 = vector.broadcast %41 : vector<16x1x128xf32> to vector<16x16x128xf32>
    %43 = arith.subf %39, %42 : vector<16x16x128xf32>
    %44 = math.exp %43 : vector<16x16x128xf32>
    %cst_12 = arith.constant dense<0.000000e+00> : vector<16x128xf32>
    %45 = vector.multi_reduction <add>, %44, %cst_12 [1] : vector<16x16x128xf32> to vector<16x128xf32>
    %46 = vector.shape_cast %10 : vector<16x128xf32> to vector<1x16x128xf32>
    %47 = vector.broadcast %46 : vector<1x16x128xf32> to vector<16x16x128xf32>
    %48 = arith.mulf %44, %47 : vector<16x16x128xf32>
    %cst_13 = arith.constant dense<0.000000e+00> : vector<16x128xf32>
    %49 = vector.multi_reduction <add>, %48, %cst_13 [1] : vector<16x16x128xf32> to vector<16x128xf32>
    %50 = tpu.reciprocal %45 {approx = true} : vector<16x128xf32> -> vector<16x128xf32>
    %51 = arith.mulf %45, %50 : vector<16x128xf32>
    %cst_14 = arith.constant 2.000000e+00 : f32
    %52 = vector.broadcast %cst_14 : f32 to vector<16x128xf32>
    %53 = arith.subf %52, %51 : vector<16x128xf32>
    %54 = arith.mulf %50, %53 : vector<16x128xf32>
    %55 = arith.mulf %49, %54 : vector<16x128xf32>
    %c0_15 = arith.constant 0 : index
    %c0_16 = arith.constant 0 : index
    %56 = vector.load %arg5[%c0_15, %c0_16] : memref<128x128xf32, #tpu.memory_space<vmem>>, vector<128x128xf32>
    %cst_17 = arith.constant dense<0.000000e+00> : vector<16x128xf32>
    %57 = tpu.matmul %34, %56, %cst_17 {dimension_numbers = #tpu.dot_dimension_numbers<[1], [0], [0], [1], [0, 0, 1, 1], [], []>} : vector<16x128xf32>, vector<128x128xf32>, vector<16x128xf32> -> vector<16x128xf32>
    %c0_18 = arith.constant 0 : index
    %c0_19 = arith.constant 0 : index
    %58 = vector.load %arg6[%c0_18, %c0_19] : memref<1x128xf32, #tpu.memory_space<vmem>>, vector<1x128xf32>
    %59 = vector.broadcast %58 : vector<1x128xf32> to vector<16x128xf32>
    %60 = arith.addf %57, %59 : vector<16x128xf32>
    %c0_20 = arith.constant 0 : index
    %c0_21 = arith.constant 0 : index
    %61 = vector.load %arg7[%c0_20, %c0_21] : memref<16x16xf32, #tpu.memory_space<vmem>>, vector<16x16xf32>
    %62 = vector.extract_strided_slice %55 {offsets = [0, 0], sizes = [16, 16], strides = [1, 1]} : vector<16x128xf32> to vector<16x16xf32>
    %cst_22 = arith.constant dense<0.000000e+00> : vector<16x16xf32>
    %63 = tpu.matmul %61, %62, %cst_22 {dimension_numbers = #tpu.dot_dimension_numbers<[1], [1], [0], [0], [0, 0, 1, 0], [], []>} : vector<16x16xf32>, vector<16x16xf32>, vector<16x16xf32> -> vector<16x16xf32>
    %64 = vector.extract_strided_slice %55 {offsets = [0, 16], sizes = [16, 16], strides = [1, 1]} : vector<16x128xf32> to vector<16x16xf32>
    %cst_23 = arith.constant dense<0.000000e+00> : vector<16x16xf32>
    %65 = tpu.matmul %61, %64, %cst_23 {dimension_numbers = #tpu.dot_dimension_numbers<[1], [1], [0], [0], [0, 0, 1, 0], [], []>} : vector<16x16xf32>, vector<16x16xf32>, vector<16x16xf32> -> vector<16x16xf32>
    %66 = vector.extract_strided_slice %55 {offsets = [0, 32], sizes = [16, 16], strides = [1, 1]} : vector<16x128xf32> to vector<16x16xf32>
    %cst_24 = arith.constant dense<0.000000e+00> : vector<16x16xf32>
    %67 = tpu.matmul %61, %66, %cst_24 {dimension_numbers = #tpu.dot_dimension_numbers<[1], [1], [0], [0], [0, 0, 1, 0], [], []>} : vector<16x16xf32>, vector<16x16xf32>, vector<16x16xf32> -> vector<16x16xf32>
    %68 = vector.extract_strided_slice %55 {offsets = [0, 48], sizes = [16, 16], strides = [1, 1]} : vector<16x128xf32> to vector<16x16xf32>
    %cst_25 = arith.constant dense<0.000000e+00> : vector<16x16xf32>
    %69 = tpu.matmul %61, %68, %cst_25 {dimension_numbers = #tpu.dot_dimension_numbers<[1], [1], [0], [0], [0, 0, 1, 0], [], []>} : vector<16x16xf32>, vector<16x16xf32>, vector<16x16xf32> -> vector<16x16xf32>
    %70 = vector.extract_strided_slice %55 {offsets = [0, 64], sizes = [16, 16], strides = [1, 1]} : vector<16x128xf32> to vector<16x16xf32>
    %cst_26 = arith.constant dense<0.000000e+00> : vector<16x16xf32>
    %71 = tpu.matmul %61, %70, %cst_26 {dimension_numbers = #tpu.dot_dimension_numbers<[1], [1], [0], [0], [0, 0, 1, 0], [], []>} : vector<16x16xf32>, vector<16x16xf32>, vector<16x16xf32> -> vector<16x16xf32>
    %72 = vector.extract_strided_slice %55 {offsets = [0, 80], sizes = [16, 16], strides = [1, 1]} : vector<16x128xf32> to vector<16x16xf32>
    %cst_27 = arith.constant dense<0.000000e+00> : vector<16x16xf32>
    %73 = tpu.matmul %61, %72, %cst_27 {dimension_numbers = #tpu.dot_dimension_numbers<[1], [1], [0], [0], [0, 0, 1, 0], [], []>} : vector<16x16xf32>, vector<16x16xf32>, vector<16x16xf32> -> vector<16x16xf32>
    %74 = vector.extract_strided_slice %55 {offsets = [0, 96], sizes = [16, 16], strides = [1, 1]} : vector<16x128xf32> to vector<16x16xf32>
    %cst_28 = arith.constant dense<0.000000e+00> : vector<16x16xf32>
    %75 = tpu.matmul %61, %74, %cst_28 {dimension_numbers = #tpu.dot_dimension_numbers<[1], [1], [0], [0], [0, 0, 1, 0], [], []>} : vector<16x16xf32>, vector<16x16xf32>, vector<16x16xf32> -> vector<16x16xf32>
    %76 = vector.extract_strided_slice %55 {offsets = [0, 112], sizes = [16, 16], strides = [1, 1]} : vector<16x128xf32> to vector<16x16xf32>
    %cst_29 = arith.constant dense<0.000000e+00> : vector<16x16xf32>
    %77 = tpu.matmul %61, %76, %cst_29 {dimension_numbers = #tpu.dot_dimension_numbers<[1], [1], [0], [0], [0, 0, 1, 0], [], []>} : vector<16x16xf32>, vector<16x16xf32>, vector<16x16xf32> -> vector<16x16xf32>
    %78 = tpu.concatenate %63, %65, %67, %69, %71, %73, %75, %77 in 1 : vector<16x16xf32>, vector<16x16xf32>, vector<16x16xf32>, vector<16x16xf32>, vector<16x16xf32>, vector<16x16xf32>, vector<16x16xf32>, vector<16x16xf32> -> vector<16x128xf32>
    %c0_30 = arith.constant 0 : index
    %c0_31 = arith.constant 0 : index
    %79 = vector.load %arg8[%c0_30, %c0_31] : memref<16x1xf32, #tpu.memory_space<vmem>>, vector<16x1xf32>
    %80 = vector.broadcast %79 : vector<16x1xf32> to vector<16x128xf32>
    %81 = arith.addf %78, %80 : vector<16x128xf32>
    %82 = arith.addf %60, %81 : vector<16x128xf32>
    %83 = arith.addf %82, %0 : vector<16x128xf32>
    %84 = math.tanh %83 : vector<16x128xf32>
    %cst_32 = arith.constant 0.176776692 : f32
    %85 = vector.broadcast %cst_32 : f32 to vector<16x128xf32>
    %86 = arith.mulf %84, %85 : vector<16x128xf32>
    %c0_33 = arith.constant 0 : index
    %c0_34 = arith.constant 0 : index
    %87 = vector.load %arg9[%c0_33, %c0_34] : memref<16x128xf32, #tpu.memory_space<vmem>>, vector<16x128xf32>
    tpu.vector_store %arg9[%c0_33, %c0_34], %86 {strides = array<i32>} : memref<16x128xf32, #tpu.memory_space<vmem>>, vector<16x128xf32>,
    return
  }
  func.func @transform_0(%arg0: i32) -> (i32, i32) {
    %c0_i32 = arith.constant 0 : i32
    %c0_i32_0 = arith.constant 0 : i32
    return %c0_i32, %arg0 : i32, i32
  }
  func.func @transform_1(%arg0: i32) -> (i32, i32) {
    %c0_i32 = arith.constant 0 : i32
    %c0_i32_0 = arith.constant 0 : i32
    return %c0_i32, %arg0 : i32, i32
  }
  func.func @transform_2(%arg0: i32) -> (i32, i32) {
    %c0_i32 = arith.constant 0 : i32
    %c0_i32_0 = arith.constant 0 : i32
    %c0_i32_1 = arith.constant 0 : i32
    return %c0_i32, %c0_i32_0 : i32, i32
  }
  func.func @transform_3(%arg0: i32) -> (i32, i32) {
    %c0_i32 = arith.constant 0 : i32
    %c0_i32_0 = arith.constant 0 : i32
    %c0_i32_1 = arith.constant 0 : i32
    return %c0_i32, %c0_i32_0 : i32, i32
  }
  func.func @transform_4(%arg0: i32) -> (i32, i32) {
    %c0_i32 = arith.constant 0 : i32
    %c0_i32_0 = arith.constant 0 : i32
    %c0_i32_1 = arith.constant 0 : i32
    return %c0_i32, %c0_i32_0 : i32, i32
  }
  func.func @transform_5(%arg0: i32) -> (i32, i32) {
    %c0_i32 = arith.constant 0 : i32
    %c0_i32_0 = arith.constant 0 : i32
    %c0_i32_1 = arith.constant 0 : i32
    return %c0_i32, %c0_i32_0 : i32, i32
  }
  func.func @transform_6(%arg0: i32) -> (i32, i32) {
    %c0_i32 = arith.constant 0 : i32
    %c0_i32_0 = arith.constant 0 : i32
    %c0_i32_1 = arith.constant 0 : i32
    return %c0_i32, %c0_i32_0 : i32, i32
  }
  func.func @transform_7(%arg0: i32) -> (i32, i32) {
    %c0_i32 = arith.constant 0 : i32
    %c0_i32_0 = arith.constant 0 : i32
    %c0_i32_1 = arith.constant 0 : i32
    return %c0_i32, %c0_i32_0 : i32, i32
  }
  func.func @transform_8(%arg0: i32) -> (i32, i32) {
    %c0_i32 = arith.constant 0 : i32
    %c0_i32_0 = arith.constant 0 : i32
    return %c0_i32, %arg0 : i32, i32
  }
}

</mosaic_0001>

<bundles_post_ra>
// kernel: tpu_custom_call.1
= control target key start
LH: loop header
LB: loop body
LE: loop exit
PB: predicated region body
PF: predicated region fallthrough
CT: control target
= control target key end

     0   :  { %13 = vsyncpa [#allocation3], 0  ;;  %s4094_s0 = inlined_call_operand.vmem [shape: f32[16,128], index: 0, kind: input, shape index: {}]   ;;  %s4095_s1 = inlined_call_operand.hbm [shape: f32[16,128], index: 1, kind: input, shape index: {}]   ;;  %s4096_s2 = inlined_call_operand.hbm [shape: f32[256,768], index: 2, kind: input, shape index: {}]   ;;  %s4097_s3 = inlined_call_operand.hbm [shape: f32[1,768], index: 3, kind: input, shape index: {}]   ;;  %s4098_s4 = inlined_call_operand.hbm [shape: f32[128,128], index: 4, kind: input, shape index: {}]   ;;  %s4099_s5 = inlined_call_operand.vmem [shape: f32[1,128], index: 5, kind: input, shape index: {}]   ;;  %s4100_s6 = inlined_call_operand.hbm [shape: f32[16,16], index: 6, kind: input, shape index: {}]   ;;  %s4101_s7 = inlined_call_operand.vmem [shape: f32[16,1], index: 7, kind: input, shape index: {}]   ;;  %s4102_s8 = inlined_call_operand.hbm [shape: f32[16,128], index: 8, kind: output, shape index: {}]  }
   0x1   :  { %14 = vsyncpa [#allocation6], 0 }
   0x2   :  { %15 = vsyncpa [#allocation9], 0  ;;  %s36_s29 = sshll.u32 %s4096_s2, 4  ;;  %s37_s29 = int_to_ptr.hbm [resolvable:$true] %s36_s29 }
   0x3   :  { %16 = vsyncpa [#allocation4], 0  ;;  %s2733_s30 = smov [#allocation5]   ;;  %s2734_s10 = smov 768  }
   0x4   :  { %s38_s9 = sshll.u32 %s2733_s30, 4  ;;  %s2735_s11 = smov 48   ;;  %s39_s9 = int_to_ptr.vmem [resolvable:$true] %s38_s9 }
   0x5   :  { %44 = dma.hbm_to_vmem [thread:$0]  %s37_s29, 24576, %s39_s9, [#allocation6], %s2734_s10, %s2734_s10, %s2735_s11  }
   0x6   :  { %s60_s14 = sshll.u32 %s4098_s4, 4  ;;  %s2736_s15 = smov [#allocation8]   ;;  %s61_s14 = int_to_ptr.hbm [resolvable:$true] %s60_s14 }
   0x7   :  { %s62_s16 = sshll.u32 %s2736_s15, 4  ;;  %s23_s2 = sshll.u32 %s4095_s1, 4  ;;  %s63_s16 = int_to_ptr.vmem [resolvable:$true] %s62_s16  ;;  %s24_s2 = int_to_ptr.hbm [resolvable:$true] %s23_s2 }
   0x8   :  { %s2737_s19 = smov 128   ;;  %s2738_s20 = smov 8  }
   0x9   :  { %68 = dma.hbm_to_vmem [thread:$0]  %s61_s14, 2048, %s63_s16, [#allocation9], %s2737_s19, %s2737_s19, %s2738_s20  }
   0xa   :  { %s50_s23 = sshll.u32 %s4097_s3, 4  ;;  %s2739_s4 = smov [#allocation2]   ;;  %s51_s23 = int_to_ptr.hbm [resolvable:$true] %s50_s23 }
   0xb   :  { %s25_s24 = sshll.u32 %s2739_s4, 4  ;;  %s2740_s1 = smov [#allocation7]   ;;  %s26_s24 = int_to_ptr.vmem [resolvable:$true] %s25_s24 }
   0xc   :  { %31 = dma.hbm_to_vmem [thread:$0]  %s24_s2, 256, %s26_s24, [#allocation3], %s2737_s19, %s2737_s19, %s2738_s20  }
   0xd   :  { %s52_s25 = sshll.u32 %s2740_s1, 4  ;;  %s75_s28 = sshll.u32 %s4100_s6, 4  ;;  %s53_s25 = int_to_ptr.vmem [resolvable:$true] %s52_s25  ;;  %s76_s28 = int_to_ptr.hbm [resolvable:$true] %s75_s28 }
   0xe   :  { %55 = dma.hbm_to_vmem [thread:$0]  %s51_s23, 96, %s53_s25, [#allocation6]  }
   0xf   :  { %s2741_s29 = smov [#allocation10]  }
  0x10   :  { %s77_s30 = sshll.u32 %s2741_s29, 4  ;;  %s78_s30 = int_to_ptr.vmem [resolvable:$true] %s77_s30 }
  0x11   :  { %83 = dma.hbm_to_vmem [thread:$0]  %s76_s28, 256, %s78_s30, [#allocation9], %s2737_s19, %s2737_s19, %s2738_s20  }
  0x12   :  { %2725 = dma.done.wait [#allocation3], 256  }
  0x13   :  { %2726 = vsyncadd [#allocation3], 4294967040 }
  0x14   :  { %2727 = dma.done.wait [#allocation6], 24672  }
  0x15   :  { %2728 = vsyncadd [#allocation6], 4294942624 }
  0x16   :  { %2729 = dma.done.wait [#allocation9], 2304  }
  0x17   :  { %2730 = vsyncadd [#allocation9], 4294964992  ;;  %v200_v0 = vld [vmem:[#allocation5 + $0x2d0] sm:$0xff]  ;;  %v201_v1 = vld [vmem:[#allocation5 + $0x2d8] sm:$0xff]  ;;  %vm1876_vm0 = vcmask 1041409   ;;  %vm1878_vm1 = vcmask 1042434  }
  0x18   :  { %v194_v2 = vld [vmem:[#allocation5 + $0x2a0] sm:$0xff]  ;;  %316 = vmatpush.msra.mxu0 %v200_v0  ;;  %362 = vmatpush.msra.mxu2 %v201_v1  ;;  %v296_v3 = vld [vmem:[#allocation5 + $0x5d0] sm:$0xff]  ;;  %v195_v4 = vld [vmem:[#allocation5 + $0x2a8] sm:$0xff]  ;;  %vm1880_vm2 = vcmask 1043459   ;;  %vm1882_vm3 = vcmask 1044484   ;;  %vm1884_vm4 = vcmask 1045509  }
  0x19   :  { %v297_v5 = vld [vmem:[#allocation5 + $0x5d8] sm:$0xff]  ;;  %339 = vmatpush.msra.mxu1 %v296_v3  ;;  %v188_v6 = vld [vmem:[#allocation5 + $0x270] sm:$0xff]  ;;  %v290_v7 = vld [vmem:[#allocation5 + $0x5a0] sm:$0xff]  ;;  %vm1886_vm5 = vcmask 1046534   ;;  %vm1888_vm6 = vcmask 1047559   ;;  %s2742_s12 = smov 80  }
  0x1a   :  { %385 = vmatpush.msra.mxu3 %v297_v5  ;;  %v189_v8 = vld [vmem:[#allocation5 + $0x278] sm:$0xff]  ;;  %317 = vmatpush.msra.mxu0 %v194_v2  ;;  %v291_v9 = vld [vmem:[#allocation5 + $0x5a8] sm:$0xff]  ;;  %v284_v10 = vld [vmem:[#allocation5 + $0x570] sm:$0xff]  ;;  %s2743_s13 = smov 96   ;;  %s2744_s14 = smov 112   ;;  %vm1954_vm7 = vcmask 130048  }
  0x1b   :  { %363 = vmatpush.msra.mxu2 %v195_v4  ;;  %340 = vmatpush.msra.mxu1 %v290_v7  ;;  %v182_v11 = vld [vmem:[#allocation5 + $0x240] sm:$0xff]  ;;  %v183_v12 = vld [vmem:[#allocation5 + $0x248] sm:$0xff]  ;;  %v285_v13 = vld [vmem:[#allocation5 + $0x578] sm:$0xff]  ;;  %s2745_s15 = smov 64   ;;  %s2746_s16 = smov 32   ;;  %vm2263_vm8 = vcmask 261120  }
  0x1c   :  { %386 = vmatpush.msra.mxu3 %v291_v9  ;;  %318 = vmatpush.msra.mxu0 %v188_v6  ;;  %v278_v14 = vld [vmem:[#allocation5 + $0x540] sm:$0xff]  ;;  %v279_v15 = vld [vmem:[#allocation5 + $0x548] sm:$0xff]  ;;  %v176_v16 = vld [vmem:[#allocation5 + $0x210] sm:$0xff]  ;;  %s2747_s17 = smov 16   ;;  %vm2266_vm9 = vcmask 392192   ;;  %vm2269_vm10 = vcmask 523264  }
  0x1d   :  { %364 = vmatpush.msra.mxu2 %v189_v8  ;;  %341 = vmatpush.msra.mxu1 %v284_v10  ;;  %v177_v17 = vld [vmem:[#allocation5 + $0x218] sm:$0xff]  ;;  %v272_v18 = vld [vmem:[#allocation5 + $0x510] sm:$0xff]  ;;  %v170_v20 = vld [vmem:[#allocation5 + $0x1e0] sm:$0xff]  ;;  %vm2272_vm11 = vcmask 654336   ;;  %vm2275_vm12 = vcmask 785408   ;;  %vm2278_vm13 = vcmask 916480  }
  0x1e   :  { %387 = vmatpush.msra.mxu3 %v285_v13  ;;  %319 = vmatpush.msra.mxu0 %v182_v11  ;;  %v273_v19 = vld [vmem:[#allocation5 + $0x518] sm:$0xff]  ;;  %v171_v21 = vld [vmem:[#allocation5 + $0x1e8] sm:$0xff]  ;;  %v266_v22 = vld [vmem:[#allocation5 + $0x4e0] sm:$0xff]  ;;  %s2749_s1 = smov [#allocation11]   ;;  %s2311_s28 = sshll.u32 %s4102_s8, 4  ;;  %s2312_s28 = int_to_ptr.hbm [resolvable:$true] %s2311_s28 }
  0x1f   :  { %365 = vmatpush.msra.mxu2 %v183_v12  ;;  %342 = vmatpush.msra.mxu1 %v278_v14  ;;  %v267_v23 = vld [vmem:[#allocation5 + $0x4e8] sm:$0xff]  ;;  %v164_v24 = vld [vmem:[#allocation5 + $0x1b0] sm:$0xff]  ;;  %v165_v25 = vld [vmem:[#allocation5 + $0x1b8] sm:$0xff]  ;;  %s2309_s25 = sshll.u32 %s2749_s1, 4  ;;  %s2310_s25 = int_to_ptr.vmem [resolvable:$true] %s2309_s25 }
  0x20   :  { %388 = vmatpush.msra.mxu3 %v279_v15  ;;  %320 = vmatpush.msra.mxu0 %v176_v16  ;;  %v260_v26 = vld [vmem:[#allocation5 + $0x4b0] sm:$0xff]  ;;  %v261_v27 = vld [vmem:[#allocation5 + $0x4b8] sm:$0xff]  ;;  %v158_v28 = vld [vmem:[#allocation5 + $0x180] sm:$0xff] }
  0x21   :  { %366 = vmatpush.msra.mxu2 %v177_v17  ;;  %343 = vmatpush.msra.mxu1 %v272_v18  ;;  %v159_v29 = vld [vmem:[#allocation5 + $0x188] sm:$0xff]  ;;  %v254_v30 = vld [vmem:[#allocation5 + $0x480] sm:$0xff]  ;;  %v152_v32 = vld [vmem:[#allocation5 + $0x150] sm:$0xff] }
  0x22   :  { %389 = vmatpush.msra.mxu3 %v273_v19  ;;  %321 = vmatpush.msra.mxu0 %v170_v20  ;;  %v255_v31 = vld [vmem:[#allocation5 + $0x488] sm:$0xff]  ;;  %v153_v33 = vld [vmem:[#allocation5 + $0x158] sm:$0xff]  ;;  %v248_v34 = vld [vmem:[#allocation5 + $0x450] sm:$0xff] }
  0x23   :  { %367 = vmatpush.msra.mxu2 %v171_v21  ;;  %344 = vmatpush.msra.mxu1 %v266_v22  ;;  %v249_v35 = vld [vmem:[#allocation5 + $0x458] sm:$0xff]  ;;  %v146_v36 = vld [vmem:[#allocation5 + $0x120] sm:$0xff]  ;;  %v147_v37 = vld [vmem:[#allocation5 + $0x128] sm:$0xff] }
  0x24   :  { %390 = vmatpush.msra.mxu3 %v267_v23  ;;  %322 = vmatpush.msra.mxu0 %v164_v24  ;;  %v242_v38 = vld [vmem:[#allocation5 + $0x420] sm:$0xff]  ;;  %v243_v39 = vld [vmem:[#allocation5 + $0x428] sm:$0xff]  ;;  %v140_v40 = vld [vmem:[#allocation5 + $0xf0] sm:$0xff] }
  0x25   :  { %368 = vmatpush.msra.mxu2 %v165_v25  ;;  %345 = vmatpush.msra.mxu1 %v260_v26  ;;  %v141_v41 = vld [vmem:[#allocation5 + $0xf8] sm:$0xff]  ;;  %v236_v42 = vld [vmem:[#allocation5 + $0x3f0] sm:$0xff]  ;;  %v134_v44 = vld [vmem:[#allocation5 + $0xc0] sm:$0xff] }
  0x26   :  { %391 = vmatpush.msra.mxu3 %v261_v27  ;;  %323 = vmatpush.msra.mxu0 %v158_v28  ;;  %v237_v43 = vld [vmem:[#allocation5 + $0x3f8] sm:$0xff]  ;;  %v135_v45 = vld [vmem:[#allocation5 + $0xc8] sm:$0xff]  ;;  %v230_v46 = vld [vmem:[#allocation5 + $0x3c0] sm:$0xff] }
  0x27   :  { %369 = vmatpush.msra.mxu2 %v159_v29  ;;  %346 = vmatpush.msra.mxu1 %v254_v30  ;;  %v231_v47 = vld [vmem:[#allocation5 + $0x3c8] sm:$0xff]  ;;  %v128_v48 = vld [vmem:[#allocation5 + $0x90] sm:$0xff]  ;;  %v129_v49 = vld [vmem:[#allocation5 + $0x98] sm:$0xff] }
  0x28   :  { %392 = vmatpush.msra.mxu3 %v255_v31  ;;  %324 = vmatpush.msra.mxu0 %v152_v32  ;;  %v224_v50 = vld [vmem:[#allocation5 + $0x390] sm:$0xff]  ;;  %v225_v51 = vld [vmem:[#allocation5 + $0x398] sm:$0xff]  ;;  %v122_v52 = vld [vmem:[#allocation5 + $0x60] sm:$0xff] }
  0x29   :  { %370 = vmatpush.msra.mxu2 %v153_v33  ;;  %347 = vmatpush.msra.mxu1 %v248_v34  ;;  %v123_v53 = vld [vmem:[#allocation5 + $0x68] sm:$0xff]  ;;  %v218_v54 = vld [vmem:[#allocation5 + $0x360] sm:$0xff]  ;;  %v116_v56 = vld [vmem:[#allocation5 + $0x30] sm:$0xff] }
  0x2a   :  { %393 = vmatpush.msra.mxu3 %v249_v35  ;;  %325 = vmatpush.msra.mxu0 %v146_v36  ;;  %v219_v55 = vld [vmem:[#allocation5 + $0x368] sm:$0xff]  ;;  %v117_v57 = vld [vmem:[#allocation5 + $0x38] sm:$0xff]  ;;  %v212_v58 = vld [vmem:[#allocation5 + $0x330] sm:$0xff] }
  0x2b   :  { %371 = vmatpush.msra.mxu2 %v147_v37  ;;  %348 = vmatpush.msra.mxu1 %v242_v38  ;;  %v213_v59 = vld [vmem:[#allocation5 + $0x338] sm:$0xff]  ;;  %v110_v60 = vld [vmem:[#allocation5] sm:$0xff]  ;;  %v111_v61 = vld [vmem:[#allocation5 + $0x8] sm:$0xff] }
  0x2c   :  { %394 = vmatpush.msra.mxu3 %v243_v39  ;;  %326 = vmatpush.msra.mxu0 %v140_v40  ;;  %v2823_v62 = vld [vmem:[%s4094_s0] sm:$0xff]  ;;  %v202_v63 = vld [vmem:[#allocation5 + $0x2e0] sm:$0xff]  ;;  %v203_v0 = vld [vmem:[#allocation5 + $0x2e8] sm:$0xff] }
  0x2d   :  { %372 = vmatpush.msra.mxu2 %v141_v41  ;;  %349 = vmatpush.msra.mxu1 %v236_v42  ;;  %v206_v1 = vld [vmem:[#allocation5 + $0x300] sm:$0xff]  ;;  %v207_v2 = vld [vmem:[#allocation5 + $0x308] sm:$0xff]  ;;  %v196_v3 = vld [vmem:[#allocation5 + $0x2b0] sm:$0xff] }
  0x2e   :  { %395 = vmatpush.msra.mxu3 %v237_v43  ;;  %327 = vmatpush.msra.mxu0 %v134_v44  ;;  %v2826_v4 = vld [vmem:[#allocation2] sm:$0xff]  ;;  %v298_v5 = vld [vmem:[#allocation5 + $0x5e0] sm:$0xff]  ;;  %v197_v6 = vld [vmem:[#allocation5 + $0x2b8] sm:$0xff] }
  0x2f   :  { %373 = vmatpush.msra.mxu2 %v135_v45  ;;  %350 = vmatpush.msra.mxu1 %v230_v46  ;;  %v299_v7 = vld [vmem:[#allocation5 + $0x5e8] sm:$0xff]  ;;  %v292_v8 = vld [vmem:[#allocation5 + $0x5b0] sm:$0xff]  ;;  %v190_v9 = vld [vmem:[#allocation5 + $0x280] sm:$0xff] }
  0x30   :  { %396 = vmatpush.msra.mxu3 %v231_v47  ;;  %328 = vmatpush.msra.mxu0 %v128_v48  ;;  %v191_v10 = vld [vmem:[#allocation5 + $0x288] sm:$0xff]  ;;  %v293_v11 = vld [vmem:[#allocation5 + $0x5b8] sm:$0xff]  ;;  %v184_v12 = vld [vmem:[#allocation5 + $0x250] sm:$0xff] }
  0x31   :  { %374 = vmatpush.msra.mxu2 %v129_v49  ;;  %351 = vmatpush.msra.mxu1 %v224_v50  ;;  %v286_v13 = vld [vmem:[#allocation5 + $0x580] sm:$0xff]  ;;  %v185_v14 = vld [vmem:[#allocation5 + $0x258] sm:$0xff]  ;;  %v287_v15 = vld [vmem:[#allocation5 + $0x588] sm:$0xff] }
  0x32   :  { %397 = vmatpush.msra.mxu3 %v225_v51  ;;  %329 = vmatpush.msra.mxu0 %v122_v52  ;;  %v2834_v16 = vld [vmem:[%s4094_s0 + $0x8] sm:$0xff]  ;;  %v178_v17 = vld [vmem:[#allocation5 + $0x220] sm:$0xff]  ;;  %v280_v18 = vld [vmem:[#allocation5 + $0x550] sm:$0xff] }
  0x33   :  { %375 = vmatpush.msra.mxu2 %v123_v53  ;;  %352 = vmatpush.msra.mxu1 %v218_v54  ;;  %v179_v19 = vld [vmem:[#allocation5 + $0x228] sm:$0xff]  ;;  %v281_v20 = vld [vmem:[#allocation5 + $0x558] sm:$0xff]  ;;  %v172_v21 = vld [vmem:[#allocation5 + $0x1f0] sm:$0xff] }
  0x34   :  { %398 = vmatpush.msra.mxu3 %v219_v55  ;;  %330 = vmatpush.msra.mxu0 %v116_v56  ;;  %v2837_v22 = vld [vmem:[#allocation2 + $0x8] sm:$0xff]  ;;  %v274_v23 = vld [vmem:[#allocation5 + $0x520] sm:$0xff]  ;;  %v275_v25 = vld [vmem:[#allocation5 + $0x528] sm:$0xff] }
  0x35   :  { %376 = vmatpush.msra.mxu2 %v117_v57  ;;  %353 = vmatpush.msra.mxu1 %v212_v58  ;;  %v173_v24 = vld [vmem:[#allocation5 + $0x1f8] sm:$0xff]  ;;  %v268_v26 = vld [vmem:[#allocation5 + $0x4f0] sm:$0xff]  ;;  %v166_v27 = vld [vmem:[#allocation5 + $0x1c0] sm:$0xff] }
  0x36   :  { %399 = vmatpush.msra.mxu3 %v213_v59  ;;  %331 = vmatpush.msra.mxu0 %v110_v60  ;;  %v167_v28 = vld [vmem:[#allocation5 + $0x1c8] sm:$0xff]  ;;  %v269_v29 = vld [vmem:[#allocation5 + $0x4f8] sm:$0xff]  ;;  %v160_v30 = vld [vmem:[#allocation5 + $0x190] sm:$0xff] }
  0x37   :  { %377 = vmatpush.msra.mxu2 %v111_v61  ;;  %354 = vmatpush.msra.mxu1 %v206_v1  ;;  %v262_v31 = vld [vmem:[#allocation5 + $0x4c0] sm:$0xff]  ;;  %v161_v32 = vld [vmem:[#allocation5 + $0x198] sm:$0xff]  ;;  %v263_v33 = vld [vmem:[#allocation5 + $0x4c8] sm:$0xff] }
  0x38   :  { %378 = vmatmul.f32.vlgmr.msra.gmra.mxu2 %v2823_v62  ;;  %408 = vmatpush.msrb.mxu0 %v202_v63  ;;  %v154_v34 = vld [vmem:[#allocation5 + $0x160] sm:$0xff]  ;;  %v256_v35 = vld [vmem:[#allocation5 + $0x490] sm:$0xff]  ;;  %v155_v36 = vld [vmem:[#allocation5 + $0x168] sm:$0xff] }
  0x39   :  { %454 = vmatpush.msrb.mxu2 %v203_v0  ;;  %400 = vmatpush.msra.mxu3 %v207_v2  ;;  %v257_v37 = vld [vmem:[#allocation5 + $0x498] sm:$0xff]  ;;  %v148_v38 = vld [vmem:[#allocation5 + $0x130] sm:$0xff]  ;;  %v250_v39 = vld [vmem:[#allocation5 + $0x460] sm:$0xff] }
  0x3a   :  { %409 = vmatpush.msrb.mxu0 %v196_v3  ;;  %401 = vmatmul.f32.vlgmr.msra.gmra.mxu3 %v2826_v4  ;;  %v149_v40 = vld [vmem:[#allocation5 + $0x138] sm:$0xff]  ;;  %v251_v41 = vld [vmem:[#allocation5 + $0x468] sm:$0xff]  ;;  %v142_v42 = vld [vmem:[#allocation5 + $0x100] sm:$0xff] }
  0x3b   :  { %431 = vmatpush.msrb.mxu1 %v298_v5  ;;  %455 = vmatpush.msrb.mxu2 %v197_v6  ;;  %v244_v43 = vld [vmem:[#allocation5 + $0x430] sm:$0xff]  ;;  %v143_v44 = vld [vmem:[#allocation5 + $0x108] sm:$0xff]  ;;  %v245_v45 = vld [vmem:[#allocation5 + $0x438] sm:$0xff] }
  0x3c   :  { %477 = vmatpush.msrb.mxu3 %v299_v7  ;;  %332 = vmatmul.f32.vlgmr.msra.gmra.mxu0 %v2823_v62  ;;  %v136_v46 = vld [vmem:[#allocation5 + $0xd0] sm:$0xff]  ;;  %v238_v47 = vld [vmem:[#allocation5 + $0x400] sm:$0xff]  ;;  %v137_v48 = vld [vmem:[#allocation5 + $0xd8] sm:$0xff] }
  0x3d   :  { %432 = vmatpush.msrb.mxu1 %v292_v8  ;;  %410 = vmatpush.msrb.mxu0 %v190_v9  ;;  %v239_v49 = vld [vmem:[#allocation5 + $0x408] sm:$0xff]  ;;  %v130_v50 = vld [vmem:[#allocation5 + $0xa0] sm:$0xff]  ;;  %v232_v51 = vld [vmem:[#allocation5 + $0x3d0] sm:$0xff] }
  0x3e   :  { %456 = vmatpush.msrb.mxu2 %v191_v10  ;;  %478 = vmatpush.msrb.mxu3 %v293_v11  ;;  %v131_v52 = vld [vmem:[#allocation5 + $0xa8] sm:$0xff]  ;;  %v233_v53 = vld [vmem:[#allocation5 + $0x3d8] sm:$0xff]  ;;  %v124_v54 = vld [vmem:[#allocation5 + $0x70] sm:$0xff] }
  0x3f   :  { %355 = vmatmul.f32.vlgmr.msra.gmra.mxu1 %v2826_v4  ;;  %411 = vmatpush.msrb.mxu0 %v184_v12  ;;  %v226_v55 = vld [vmem:[#allocation5 + $0x3a0] sm:$0xff]  ;;  %v125_v56 = vld [vmem:[#allocation5 + $0x78] sm:$0xff]  ;;  %v227_v57 = vld [vmem:[#allocation5 + $0x3a8] sm:$0xff] }
  0x40   :  { %433 = vmatpush.msrb.mxu1 %v286_v13  ;;  %457 = vmatpush.msrb.mxu2 %v185_v14  ;;  %v118_v58 = vld [vmem:[#allocation5 + $0x40] sm:$0xff]  ;;  %v220_v59 = vld [vmem:[#allocation5 + $0x370] sm:$0xff]  ;;  %v119_v60 = vld [vmem:[#allocation5 + $0x48] sm:$0xff] }
  0x41   :  { %479 = vmatpush.msrb.mxu3 %v287_v15  ;;  %381 = vmatmul.f32.gmra.mxu2 %v2834_v16  ;;  %v221_v61 = vld [vmem:[#allocation5 + $0x378] sm:$0xff]  ;;  %v112_v63 = vld [vmem:[#allocation5 + $0x10] sm:$0xff]  ;;  %v214_v0 = vld [vmem:[#allocation5 + $0x340] sm:$0xff] }
  0x42   :  { %412 = vmatpush.msrb.mxu0 %v178_v17  ;;  %434 = vmatpush.msrb.mxu1 %v280_v18  ;;  %v113_v1 = vld [vmem:[#allocation5 + $0x18] sm:$0xff]  ;;  %v215_v2 = vld [vmem:[#allocation5 + $0x348] sm:$0xff]  ;;  %v204_v3 = vld [vmem:[#allocation5 + $0x2f0] sm:$0xff] }
  0x43   :  { %458 = vmatpush.msrb.mxu2 %v179_v19  ;;  %480 = vmatpush.msrb.mxu3 %v281_v20  ;;  %v205_v5 = vld [vmem:[#allocation5 + $0x2f8] sm:$0xff]  ;;  %v208_v6 = vld [vmem:[#allocation5 + $0x310] sm:$0xff]  ;;  %v198_v8 = vld [vmem:[#allocation5 + $0x2c0] sm:$0xff] }
  0x44   :  { %413 = vmatpush.msrb.mxu0 %v172_v21  ;;  %404 = vmatmul.f32.gmra.mxu3 %v2837_v22  ;;  %v209_v7 = vld [vmem:[#allocation5 + $0x318] sm:$0xff]  ;;  %v300_v9 = vld [vmem:[#allocation5 + $0x5f0] sm:$0xff]  ;;  %v199_v10 = vld [vmem:[#allocation5 + $0x2c8] sm:$0xff] }
  0x45   :  { %435 = vmatpush.msrb.mxu1 %v274_v23  ;;  %459 = vmatpush.msrb.mxu2 %v173_v24  ;;  %v301_v11 = vld [vmem:[#allocation5 + $0x5f8] sm:$0xff]  ;;  %v192_v12 = vld [vmem:[#allocation5 + $0x290] sm:$0xff]  ;;  %v294_v13 = vld [vmem:[#allocation5 + $0x5c0] sm:$0xff] }
  0x46   :  { %481 = vmatpush.msrb.mxu3 %v275_v25  ;;  %335 = vmatmul.f32.gmra.mxu0 %v2834_v16  ;;  %v193_v14 = vld [vmem:[#allocation5 + $0x298] sm:$0xff]  ;;  %v295_v15 = vld [vmem:[#allocation5 + $0x5c8] sm:$0xff]  ;;  %v186_v17 = vld [vmem:[#allocation5 + $0x260] sm:$0xff] }
  0x47   :  { %436 = vmatpush.msrb.mxu1 %v268_v26  ;;  %414 = vmatpush.msrb.mxu0 %v166_v27  ;;  %v288_v18 = vld [vmem:[#allocation5 + $0x590] sm:$0xff]  ;;  %v187_v19 = vld [vmem:[#allocation5 + $0x268] sm:$0xff]  ;;  %v289_v20 = vld [vmem:[#allocation5 + $0x598] sm:$0xff] }
  0x48   :  { %460 = vmatpush.msrb.mxu2 %v167_v28  ;;  %482 = vmatpush.msrb.mxu3 %v269_v29  ;;  %v180_v21 = vld [vmem:[#allocation5 + $0x230] sm:$0xff]  ;;  %v282_v23 = vld [vmem:[#allocation5 + $0x560] sm:$0xff]  ;;  %v181_v24 = vld [vmem:[#allocation5 + $0x238] sm:$0xff] }
  0x49   :  { %358 = vmatmul.f32.gmra.mxu1 %v2837_v22  ;;  %415 = vmatpush.msrb.mxu0 %v160_v30  ;;  %v283_v25 = vld [vmem:[#allocation5 + $0x568] sm:$0xff]  ;;  %v174_v26 = vld [vmem:[#allocation5 + $0x200] sm:$0xff]  ;;  %v276_v27 = vld [vmem:[#allocation5 + $0x530] sm:$0xff] }
  0x4a   :  { %437 = vmatpush.msrb.mxu1 %v262_v31  ;;  %461 = vmatpush.msrb.mxu2 %v161_v32  ;;  %v175_v28 = vld [vmem:[#allocation5 + $0x208] sm:$0xff]  ;;  %v277_v29 = vld [vmem:[#allocation5 + $0x538] sm:$0xff]  ;;  %v168_v30 = vld [vmem:[#allocation5 + $0x1d0] sm:$0xff] }
  0x4b   :  { %483 = vmatpush.msrb.mxu3 %v263_v33  ;;  %416 = vmatpush.msrb.mxu0 %v154_v34  ;;  %v270_v31 = vld [vmem:[#allocation5 + $0x500] sm:$0xff]  ;;  %v169_v32 = vld [vmem:[#allocation5 + $0x1d8] sm:$0xff]  ;;  %v271_v33 = vld [vmem:[#allocation5 + $0x508] sm:$0xff] }
  0x4c   :  { %438 = vmatpush.msrb.mxu1 %v256_v35  ;;  %462 = vmatpush.msrb.mxu2 %v155_v36  ;;  %v162_v34 = vld [vmem:[#allocation5 + $0x1a0] sm:$0xff]  ;;  %v264_v35 = vld [vmem:[#allocation5 + $0x4d0] sm:$0xff]  ;;  %v163_v36 = vld [vmem:[#allocation5 + $0x1a8] sm:$0xff] }
  0x4d   :  { %484 = vmatpush.msrb.mxu3 %v257_v37  ;;  %417 = vmatpush.msrb.mxu0 %v148_v38  ;;  %v265_v37 = vld [vmem:[#allocation5 + $0x4d8] sm:$0xff]  ;;  %v156_v38 = vld [vmem:[#allocation5 + $0x170] sm:$0xff] }
  0x4e   :  { %439 = vmatpush.msrb.mxu1 %v250_v39  ;;  %463 = vmatpush.msrb.mxu2 %v149_v40  ;;  %v258_v39 = vld [vmem:[#allocation5 + $0x4a0] sm:$0xff]  ;;  %v157_v40 = vld [vmem:[#allocation5 + $0x178] sm:$0xff] }
  0x4f   :  { %485 = vmatpush.msrb.mxu3 %v251_v41  ;;  %418 = vmatpush.msrb.mxu0 %v142_v42  ;;  %v259_v41 = vld [vmem:[#allocation5 + $0x4a8] sm:$0xff]  ;;  %v150_v42 = vld [vmem:[#allocation5 + $0x140] sm:$0xff] }
  0x50   :  { %440 = vmatpush.msrb.mxu1 %v244_v43  ;;  %464 = vmatpush.msrb.mxu2 %v143_v44  ;;  %v252_v43 = vld [vmem:[#allocation5 + $0x470] sm:$0xff]  ;;  %v151_v44 = vld [vmem:[#allocation5 + $0x148] sm:$0xff] }
  0x51   :  { %486 = vmatpush.msrb.mxu3 %v245_v45  ;;  %419 = vmatpush.msrb.mxu0 %v136_v46  ;;  %v253_v45 = vld [vmem:[#allocation5 + $0x478] sm:$0xff]  ;;  %v144_v46 = vld [vmem:[#allocation5 + $0x110] sm:$0xff] }
  0x52   :  { %441 = vmatpush.msrb.mxu1 %v238_v47  ;;  %465 = vmatpush.msrb.mxu2 %v137_v48  ;;  %v246_v47 = vld [vmem:[#allocation5 + $0x440] sm:$0xff]  ;;  %v145_v48 = vld [vmem:[#allocation5 + $0x118] sm:$0xff] }
  0x53   :  { %487 = vmatpush.msrb.mxu3 %v239_v49  ;;  %420 = vmatpush.msrb.mxu0 %v130_v50  ;;  %v247_v49 = vld [vmem:[#allocation5 + $0x448] sm:$0xff]  ;;  %v138_v50 = vld [vmem:[#allocation5 + $0xe0] sm:$0xff] }
  0x54   :  { %442 = vmatpush.msrb.mxu1 %v232_v51  ;;  %466 = vmatpush.msrb.mxu2 %v131_v52  ;;  %v240_v51 = vld [vmem:[#allocation5 + $0x410] sm:$0xff]  ;;  %v139_v52 = vld [vmem:[#allocation5 + $0xe8] sm:$0xff] }
  0x55   :  { %488 = vmatpush.msrb.mxu3 %v233_v53  ;;  %421 = vmatpush.msrb.mxu0 %v124_v54  ;;  %v241_v53 = vld [vmem:[#allocation5 + $0x418] sm:$0xff]  ;;  %v132_v54 = vld [vmem:[#allocation5 + $0xb0] sm:$0xff] }
  0x56   :  { %443 = vmatpush.msrb.mxu1 %v226_v55  ;;  %467 = vmatpush.msrb.mxu2 %v125_v56  ;;  %v234_v55 = vld [vmem:[#allocation5 + $0x3e0] sm:$0xff]  ;;  %v133_v56 = vld [vmem:[#allocation5 + $0xb8] sm:$0xff] }
  0x57   :  { %489 = vmatpush.msrb.mxu3 %v227_v57  ;;  %422 = vmatpush.msrb.mxu0 %v118_v58  ;;  %v235_v57 = vld [vmem:[#allocation5 + $0x3e8] sm:$0xff]  ;;  %v126_v58 = vld [vmem:[#allocation5 + $0x80] sm:$0xff] }
  0x58   :  { %444 = vmatpush.msrb.mxu1 %v220_v59  ;;  %468 = vmatpush.msrb.mxu2 %v119_v60  ;;  %v228_v59 = vld [vmem:[#allocation5 + $0x3b0] sm:$0xff]  ;;  %v127_v60 = vld [vmem:[#allocation5 + $0x88] sm:$0xff] }
  0x59   :  { %490 = vmatpush.msrb.mxu3 %v221_v61  ;;  %423 = vmatpush.msrb.mxu0 %v112_v63  ;;  %v229_v61 = vld [vmem:[#allocation5 + $0x3b8] sm:$0xff]  ;;  %v120_v63 = vld [vmem:[#allocation5 + $0x50] sm:$0xff] }
  0x5a   :  { %445 = vmatpush.msrb.mxu1 %v214_v0  ;;  %469 = vmatpush.msrb.mxu2 %v113_v1  ;;  %v222_v0 = vld [vmem:[#allocation5 + $0x380] sm:$0xff]  ;;  %v121_v1 = vld [vmem:[#allocation5 + $0x58] sm:$0xff] }
  0x5b   :  { %491 = vmatpush.msrb.mxu3 %v215_v2  ;;  %500 = vmatpush.msra.mxu0 %v204_v3  ;;  %v223_v2 = vld [vmem:[#allocation5 + $0x388] sm:$0xff]  ;;  %v114_v3 = vld [vmem:[#allocation5 + $0x20] sm:$0xff] }
  0x5c   :  { %546 = vmatpush.msra.mxu2 %v205_v5  ;;  %446 = vmatpush.msrb.mxu1 %v208_v6  ;;  %v216_v5 = vld [vmem:[#allocation5 + $0x350] sm:$0xff]  ;;  %v115_v6 = vld [vmem:[#allocation5 + $0x28] sm:$0xff] }
  0x5d   :  { %492 = vmatpush.msrb.mxu3 %v209_v7  ;;  %501 = vmatpush.msra.mxu0 %v198_v8  ;;  %v217_v7 = vld [vmem:[#allocation5 + $0x358] sm:$0xff]  ;;  %v210_v8 = vld [vmem:[#allocation5 + $0x320] sm:$0xff] }
  0x5e   :  { %523 = vmatpush.msra.mxu1 %v300_v9  ;;  %547 = vmatpush.msra.mxu2 %v199_v10  ;;  %v211_v9 = vld [vmem:[#allocation5 + $0x328] sm:$0xff]  ;;  %v2858_v10 = vld [vmem:[#allocation7] sm:$0x3f] }
  0x5f   :  { %569 = vmatpush.msra.mxu3 %v301_v11  ;;  %502 = vmatpush.msra.mxu0 %v192_v12  ;;  %v304_v11 = vperm.slane %v2858_v10, 0 }
  0x60   :  { %524 = vmatpush.msra.mxu1 %v294_v13  ;;  %548 = vmatpush.msra.mxu2 %v193_v14 }
  0x61   :  { %570 = vmatpush.msra.mxu3 %v295_v15  ;;  %503 = vmatpush.msra.mxu0 %v186_v17  ;;  %v305_v15 = vperm.slane %v2858_v10, 1 }
  0x62   :  { %525 = vmatpush.msra.mxu1 %v288_v18  ;;  %549 = vmatpush.msra.mxu2 %v187_v19 }
  0x63   :  { %571 = vmatpush.msra.mxu3 %v289_v20  ;;  %504 = vmatpush.msra.mxu0 %v180_v21 }
  0x64   :  { %526 = vmatpush.msra.mxu1 %v282_v23  ;;  %550 = vmatpush.msra.mxu2 %v181_v24 }
  0x65   :  { %572 = vmatpush.msra.mxu3 %v283_v25  ;;  %505 = vmatpush.msra.mxu0 %v174_v26 }
  0x66   :  { %527 = vmatpush.msra.mxu1 %v276_v27  ;;  %551 = vmatpush.msra.mxu2 %v175_v28 }
  0x67   :  { %573 = vmatpush.msra.mxu3 %v277_v29  ;;  %506 = vmatpush.msra.mxu0 %v168_v30 }
  0x68   :  { %528 = vmatpush.msra.mxu1 %v270_v31  ;;  %552 = vmatpush.msra.mxu2 %v169_v32 }
  0x69   :  { %574 = vmatpush.msra.mxu3 %v271_v33  ;;  %470 = vmatmul.f32.vlgmr.msrb.gmra.mxu2 %v2823_v62 }
  0x6a   :  { %507 = vmatpush.msra.mxu0 %v162_v34  ;;  %529 = vmatpush.msra.mxu1 %v264_v35 }
  0x6b   :  { %553 = vmatpush.msra.mxu2 %v163_v36  ;;  %575 = vmatpush.msra.mxu3 %v265_v37 }
  0x6c   :  { %424 = vmatmul.f32.vlgmr.msrb.gmra.mxu0 %v2823_v62  ;;  %493 = vmatmul.f32.vlgmr.msrb.gmra.mxu3 %v2826_v4 }
  0x6d   :  { %508 = vmatpush.msra.mxu0 %v156_v38  ;;  %530 = vmatpush.msra.mxu1 %v258_v39 }
  0x6e   :  { %554 = vmatpush.msra.mxu2 %v157_v40  ;;  %576 = vmatpush.msra.mxu3 %v259_v41 }
  0x6f   :  { %447 = vmatmul.f32.vlgmr.msrb.gmra.mxu1 %v2826_v4  ;;  %509 = vmatpush.msra.mxu0 %v150_v42 }
  0x70   :  { %531 = vmatpush.msra.mxu1 %v252_v43  ;;  %555 = vmatpush.msra.mxu2 %v151_v44 }
  0x71   :  { %577 = vmatpush.msra.mxu3 %v253_v45  ;;  %510 = vmatpush.msra.mxu0 %v144_v46 }
  0x72   :  { %532 = vmatpush.msra.mxu1 %v246_v47  ;;  %556 = vmatpush.msra.mxu2 %v145_v48 }
  0x73   :  { %578 = vmatpush.msra.mxu3 %v247_v49  ;;  %473 = vmatmul.f32.gmra.mxu2 %v2834_v16 }
  0x74   :  { %511 = vmatpush.msra.mxu0 %v138_v50  ;;  %533 = vmatpush.msra.mxu1 %v240_v51 }
  0x75   :  { %557 = vmatpush.msra.mxu2 %v139_v52  ;;  %579 = vmatpush.msra.mxu3 %v241_v53 }
  0x76   :  { %427 = vmatmul.f32.gmra.mxu0 %v2834_v16  ;;  %496 = vmatmul.f32.gmra.mxu3 %v2837_v22 }
  0x77   :  { %512 = vmatpush.msra.mxu0 %v132_v54  ;;  %534 = vmatpush.msra.mxu1 %v234_v55 }
  0x78   :  { %558 = vmatpush.msra.mxu2 %v133_v56  ;;  %580 = vmatpush.msra.mxu3 %v235_v57 }
  0x79   :  { %450 = vmatmul.f32.gmra.mxu1 %v2837_v22  ;;  %513 = vmatpush.msra.mxu0 %v126_v58 }
  0x7a   :  { %535 = vmatpush.msra.mxu1 %v228_v59  ;;  %559 = vmatpush.msra.mxu2 %v127_v60 }
  0x7b   :  { %581 = vmatpush.msra.mxu3 %v229_v61  ;;  %514 = vmatpush.msra.mxu0 %v120_v63 }
  0x7c   :  { %536 = vmatpush.msra.mxu1 %v222_v0  ;;  %560 = vmatpush.msra.mxu2 %v121_v1 }
  0x7d   :  { %582 = vmatpush.msra.mxu3 %v223_v2  ;;  %515 = vmatpush.msra.mxu0 %v114_v3 }
  0x7e   :  { %537 = vmatpush.msra.mxu1 %v216_v5  ;;  %561 = vmatpush.msra.mxu2 %v115_v6 }
  0x7f   :  { %583 = vmatpush.msra.mxu3 %v217_v7  ;;  %516 = vmatmul.f32.vlgmr.msra.gmra.mxu0 %v2823_v62 }
  0x80   :  { %562 = vmatmul.f32.vlgmr.msra.gmra.mxu2 %v2823_v62  ;;  %538 = vmatpush.msra.mxu1 %v210_v8 }
  0x81   :  { %584 = vmatpush.msra.mxu3 %v211_v9  ;;  %539 = vmatmul.f32.vlgmr.msra.gmra.mxu1 %v2826_v4 }
  0x82   :  { %585 = vmatmul.f32.vlgmr.msra.gmra.mxu3 %v2826_v4 }
  0x87   :  { %519 = vmatmul.f32.gmra.mxu0 %v2834_v16 }
  0x88   :  { %565 = vmatmul.f32.gmra.mxu2 %v2834_v16 }
  0x89   :  { %542 = vmatmul.f32.gmra.mxu1 %v2837_v22 }
  0x8a   :  { %588 = vmatmul.f32.gmra.mxu3 %v2837_v22 }
  0xb9   :  { %v333_v12 = vpop.f32.mrf.mxu0 }
  0xba   :  { %v334_v62 = vadd.f32 %v333_v12, %v304_v11 }
  0xbb   :  { %v379_v13 = vpop.f32.mrf.mxu2 }
  0xbc   :  { %v356_v14 = vpop.f32.mrf.mxu1  ;;  %v380_v18 = vadd.f32 %v379_v13, %v305_v15 }
  0xbd   :  { %v357_v17 = vadd.f32 %v356_v14, %v334_v62  ;;  %v402_v4 = vpop.f32.mrf.mxu3 }
  0xbe   :  { %v2862_v27 = vadd.f32 %v402_v4, %v380_v18 }
  0xbf   :  { %v594_v19 = vrot.slane %v357_v17, 1  ;;  %v595_v20 = vrot.slane %v357_v17, 2  ;;  %v596_v16 = vrot.slane %v357_v17, 3  ;;  %v597_v21 = vrot.slane %v357_v17, 4 }
  0xc0   :  { %v598_v23 = vrot.slane %v357_v17, 5  ;;  %v599_v24 = vrot.slane %v357_v17, 6  ;;  %v600_v25 = vrot.slane %v357_v17, 7  ;;  %v608_v26 = vperm.slane %v357_v17, 0  ;;  %4153 = vst [vmem:[#allocation16_spill] sm:$0xff] %v2862_v27 }
  0xc1   :  { %v609_v30 = vperm.slane %v594_v19, 0  ;;  %v610_v31 = vperm.slane %v595_v20, 0  ;;  %v611_v32 = vperm.slane %v596_v16, 0  ;;  %v612_v35 = vperm.slane %v597_v21, 0 }
  0xc2   :  { %v613_v36 = vperm.slane %v598_v23, 0  ;;  %v614_v38 = vperm.slane %v599_v24, 0  ;;  %v615_v40 = vperm.slane %v600_v25, 0  ;;  %v2869_v42 = vmul.f32 %v608_v26, %v2862_v27 }
  0xc3   :  { %v336_v22 = vpop.f32.mrf.mxu0  ;;  %v2872_v43 = vmul.f32 %v609_v30, %v2862_v27  ;;  %v2875_v44 = vmul.f32 %v610_v31, %v2862_v27  ;;  %v2878_v45 = vmul.f32 %v611_v32, %v2862_v27  ;;  %v2881_v46 = vmul.f32 %v612_v35, %v2862_v27 }
  0xc4   :  { %v337_v28 = vadd.f32 %v336_v22, %v304_v11  ;;  %v382_v29 = vpop.f32.mrf.mxu2  ;;  %v2884_v47 = vmul.f32 %v613_v36, %v2862_v27  ;;  %v2887_v48 = vmul.f32 %v614_v38, %v2862_v27  ;;  %v2899_v52 = vmul.f32 %v615_v40, %v2862_v27 }
  0xc5   :  { %v383_v34 = vadd.f32 %v382_v29, %v305_v15 }
  0xc6   :  { %v359_v33 = vpop.f32.mrf.mxu1 }
  0xc7   :  { %v2864_v37 = vadd.f32 %v359_v33, %v337_v28  ;;  %v405_v39 = vpop.f32.mrf.mxu3 }
  0xc8   :  { %v2866_v41 = vadd.f32 %v405_v39, %v383_v34 }
  0xc9   :  { %4154 = vst [vmem:[#allocation17_spill] sm:$0xff] %v2864_v37 }
  0xca   :  { %4155 = vst [vmem:[#allocation18_spill] sm:$0xff] %v2866_v41  ;;  %v2890_v49 = vmul.f32 %v608_v26, %v2866_v41  ;;  %v2893_v50 = vmul.f32 %v609_v30, %v2866_v41  ;;  %v2896_v51 = vmul.f32 %v610_v31, %v2866_v41  ;;  %v2902_v53 = vmul.f32 %v611_v32, %v2866_v41 }
  0xcb   :  { %v2905_v54 = vmul.f32 %v612_v35, %v2866_v41  ;;  %v2908_v55 = vmul.f32 %v613_v36, %v2866_v41  ;;  %v2911_v56 = vmul.f32 %v614_v38, %v2866_v41  ;;  %v2914_v57 = vmul.f32 %v615_v40, %v2866_v41 }
  0xcc   :  { %v672_v58 = vmax.f32 %v2869_v42, %v2890_v49  ;;  %v679_v59 = vmax.f32 %v2872_v43, %v2893_v50  ;;  %v686_v60 = vmax.f32 %v2875_v44, %v2896_v51  ;;  %v693_v61 = vmax.f32 %v2878_v45, %v2902_v53 }
  0xcd   :  { %v700_v63 = vmax.f32 %v2881_v46, %v2905_v54  ;;  %v707_v0 = vmax.f32 %v2884_v47, %v2908_v55  ;;  %v714_v1 = vmax.f32 %v2887_v48, %v2911_v56  ;;  %v721_v2 = vmax.f32 %v2899_v52, %v2914_v57 }
  0xce   :  { %v673_v3 = vrot.slane %v672_v58, 4  ;;  %v680_v5 = vrot.slane %v679_v59, 4  ;;  %v687_v6 = vrot.slane %v686_v60, 4  ;;  %v694_v7 = vrot.slane %v693_v61, 4 }
  0xcf   :  { %v701_v8 = vrot.slane %v700_v63, 4  ;;  %v708_v9 = vrot.slane %v707_v0, 4  ;;  %v715_v11 = vrot.slane %v714_v1, 4  ;;  %v722_v12 = vrot.slane %v721_v2, 4 }
  0xd0   :  { %v674_v62 = vmax.f32 %v672_v58, %v673_v3  ;;  %v681_v13 = vmax.f32 %v679_v59, %v680_v5  ;;  %v688_v14 = vmax.f32 %v686_v60, %v687_v6  ;;  %v695_v15 = vmax.f32 %v693_v61, %v694_v7 }
  0xd1   :  { %v702_v17 = vmax.f32 %v700_v63, %v701_v8  ;;  %v709_v4 = vmax.f32 %v707_v0, %v708_v9  ;;  %v716_v18 = vmax.f32 %v714_v1, %v715_v11  ;;  %v723_v19 = vmax.f32 %v721_v2, %v722_v12 }
  0xd2   :  { %v675_v20 = vrot.slane %v674_v62, 2  ;;  %v682_v16 = vrot.slane %v681_v13, 2  ;;  %v689_v21 = vrot.slane %v688_v14, 2  ;;  %v696_v23 = vrot.slane %v695_v15, 2 }
  0xd3   :  { %v703_v24 = vrot.slane %v702_v17, 2  ;;  %v710_v22 = vrot.slane %v709_v4, 2  ;;  %v717_v25 = vrot.slane %v716_v18, 2  ;;  %v724_v33 = vrot.slane %v723_v19, 2 }
  0xd4   :  { %v676_v26 = vmax.f32 %v674_v62, %v675_v20  ;;  %v683_v28 = vmax.f32 %v681_v13, %v682_v16  ;;  %v690_v29 = vmax.f32 %v688_v14, %v689_v21  ;;  %v697_v30 = vmax.f32 %v695_v15, %v696_v23 }
  0xd5   :  { %v704_v31 = vmax.f32 %v702_v17, %v703_v24  ;;  %v711_v32 = vmax.f32 %v709_v4, %v710_v22  ;;  %v718_v39 = vmax.f32 %v716_v18, %v717_v25  ;;  %v725_v63 = vmax.f32 %v723_v19, %v724_v33  ;;  %v1855_v25 = vld [vmem:[#allocation8 + $0x78] sm:$0xff] }
  0xd6   :  { %v677_v34 = vrot.slane %v676_v26, 1  ;;  %v684_v35 = vrot.slane %v683_v28, 1  ;;  %v691_v36 = vrot.slane %v690_v29, 1  ;;  %v698_v38 = vrot.slane %v697_v30, 1  ;;  %1899 = vmatpush.msrb.mxu0 %v1855_v25 }
  0xd7   :  { %v705_v60 = vrot.slane %v704_v31, 1  ;;  %v712_v61 = vrot.slane %v711_v32, 1  ;;  %v719_v7 = vrot.slane %v718_v39, 1  ;;  %v726_v11 = vrot.slane %v725_v63, 1 }
  0xd8   :  { %v678_v40 = vmax.f32 %v676_v26, %v677_v34  ;;  %v685_v58 = vmax.f32 %v683_v28, %v684_v35  ;;  %v692_v59 = vmax.f32 %v690_v29, %v691_v36  ;;  %v699_v0 = vmax.f32 %v697_v30, %v698_v38 }
  0xd9   :  { %v706_v6 = vmax.f32 %v704_v31, %v705_v60  ;;  %v713_v9 = vmax.f32 %v711_v32, %v712_v61  ;;  %v720_v17 = vmax.f32 %v718_v39, %v719_v7  ;;  %v602_v18 = vrot.slane %v2864_v37, 2  ;;  %v1852_v7 = vld [vmem:[#allocation8 + $0x60] sm:$0xff] }
  0xda   :  { %v784_v1 = vsub.f32 %v2869_v42, %v678_v40  ;;  %v785_v2 = vsub.f32 %v2890_v49, %v678_v40  ;;  %v786_v3 = vsub.f32 %v2872_v43, %v685_v58  ;;  %v787_v5 = vsub.f32 %v2893_v50, %v685_v58 }
  0xdb   :  { %v788_v8 = vsub.f32 %v2875_v44, %v692_v59  ;;  %v789_v12 = vsub.f32 %v2896_v51, %v692_v59  ;;  %v790_v62 = vsub.f32 %v2878_v45, %v699_v0  ;;  %v601_v42 = vrot.slane %v2864_v37, 1  ;;  %v1854_v59 = vld [vmem:[#allocation8 + $0x70] sm:$0xff] }
  0xdc   :  { %v816_v13 = vmul.f32 1.442695, %v784_v1  ;;  %v818_v14 = vmul.f32 1.442695, %v785_v2  ;;  %v820_v15 = vmul.f32 1.442695, %v786_v3  ;;  %v791_v43 = vsub.f32 %v2902_v53, %v699_v0  ;;  %1900 = vmatpush.msrb.mxu0 %v1854_v59 }
  0xdd   :  { %v306_v49 = vperm.slane %v2858_v10, 2  ;;  %v822_v50 = vmul.f32 1.442695, %v787_v5  ;;  %v792_v4 = vsub.f32 %v2881_v46, %v706_v6  ;;  %v824_v44 = vmul.f32 1.442695, %v788_v8 }
  0xde   :  { %2383 = vpow2.f32 %v816_v13  ;;  %v793_v51 = vsub.f32 %v2905_v54, %v706_v6  ;;  %v826_v45 = vmul.f32 1.442695, %v789_v12  ;;  %v727_v19 = vmax.f32 %v725_v63, %v726_v11  ;;  %v1853_v6 = vld [vmem:[#allocation8 + $0x68] sm:$0xff] }
  0xdf   :  { %2385 = vpow2.f32 %v818_v14  ;;  %v794_v20 = vsub.f32 %v2884_v47, %v713_v9  ;;  %v828_v16 = vmul.f32 1.442695, %v790_v62  ;;  %v603_v21 = vrot.slane %v2864_v37, 3  ;;  %1901 = vmatpush.msrb.mxu0 %v1853_v6 }
  0xe0   :  { %2387 = vpow2.f32 %v820_v15  ;;  %v795_v53 = vsub.f32 %v2908_v55, %v713_v9  ;;  %v830_v23 = vmul.f32 1.442695, %v791_v43  ;;  %v604_v46 = vrot.slane %v2864_v37, 4 }
  0xe1   :  { %2389 = vpow2.f32 %v822_v50  ;;  %v796_v24 = vsub.f32 %v2887_v48, %v720_v17  ;;  %v832_v22 = vmul.f32 1.442695, %v792_v4  ;;  %v4103_v54 = vperm.slane %v2864_v37, 0  ;;  %v1851_v50 = vld [vmem:[#allocation8 + $0x58] sm:$0xff]  ;;  %1902 = vmatpush.msrb.mxu0 %v1852_v7 }
  0xe2   :  { %2391 = vpow2.f32 %v824_v44  ;;  %v797_v26 = vsub.f32 %v2911_v56, %v720_v17  ;;  %v834_v47 = vmul.f32 1.442695, %v793_v51  ;;  %v2954_v29 = vperm.slane %v601_v42, 0 }
  0xe3   :  { %2393 = vpow2.f32 %v826_v45  ;;  %v798_v30 = vsub.f32 %v2899_v52, %v727_v19  ;;  %v836_v31 = vmul.f32 1.442695, %v794_v20  ;;  %v307_v32 = vperm.slane %v2858_v10, 3  ;;  %v1850_v45 = vld [vmem:[#allocation8 + $0x50] sm:$0xff]  ;;  %1903 = vmatpush.msrb.mxu0 %v1851_v50 }
  0xe4   :  { %v2952_v28 = vpop.eup %2383  ;;  %4156 = vst [vmem:[#allocation19_spill] sm:$0xff] %v2954_v29  ;;  %2395 = vpow2.f32 %v828_v16  ;;  %v799_v33 = vsub.f32 %v2914_v57, %v727_v19  ;;  %v838_v56 = vmul.f32 1.442695, %v795_v53  ;;  %v2963_v35 = vperm.slane %v602_v18, 0 }
  0xe5   :  { %v2957_v48 = vpop.eup %2385  ;;  %2397 = vpow2.f32 %v830_v23  ;;  %v840_v36 = vmul.f32 1.442695, %v796_v24  ;;  %v2969_v39 = vperm.slane %v603_v21, 0  ;;  %v2971_v40 = vperm.slane %v604_v46, 0  ;;  %1904 = vmatpush.msrb.mxu0 %v1850_v45 }
  0xe6   :  { %v2961_v34 = vpop.eup %2387  ;;  %4157 = vst [vmem:[#allocation20_spill] sm:$0xff] %v2963_v35  ;;  %2399 = vpow2.f32 %v832_v22  ;;  %v880_v38 = vadd.f32 %v2957_v48, %v2952_v28  ;;  %v842_v57 = vmul.f32 1.442695, %v797_v26  ;;  %v844_v63 = vmul.f32 1.442695, %v798_v30 }
  0xe7   :  { %v2967_v52 = vpop.eup %2389  ;;  %4158 = vst [vmem:[#allocation21_spill] sm:$0xff] %v2969_v39  ;;  %2401 = vpow2.f32 %v834_v47  ;;  %v2982_v3 = vmul.f32 %v4103_v54, %v2862_v27  ;;  %v846_v8 = vmul.f32 1.442695, %v799_v33  ;;  %v2994_v14 = vmul.f32 %v2954_v29, %v2862_v27 }
  0xe8   :  { %4159 = vst [vmem:[#allocation22_spill] sm:$0xff] %v2971_v40  ;;  %v2973_v60 = vpop.eup %2391  ;;  %2403 = vpow2.f32 %v836_v31  ;;  %v881_v0 = vrot.slane %v880_v38, 4  ;;  %v887_v1 = vadd.f32 %v2967_v52, %v2961_v34  ;;  %v2998_v15 = vmul.f32 %v2963_v35, %v2862_v27  ;;  %v1849_v31 = vld [vmem:[#allocation8 + $0x48] sm:$0xff] }
  0xe9   :  { %v425_v55 = vpop.f32.mrf.mxu0  ;;  %v2977_v2 = vpop.eup %2393  ;;  %4160 = vst [vmem:[#allocation23_spill] sm:$0xff] %v2982_v3  ;;  %2405 = vpow2.f32 %v838_v56  ;;  %1905 = vmatpush.msrb.mxu0 %v1849_v31  ;;  %v4166_v39 = vperm.slane %v2858_v10, 4 }
  0xea   :  { %v2986_v9 = vpop.eup %2395  ;;  %2407 = vpow2.f32 %v840_v36  ;;  %v882_v11 = vadd.f32 %v881_v0, %v880_v38  ;;  %v888_v12 = vrot.slane %v887_v1, 4  ;;  %v894_v62 = vadd.f32 %v2977_v2, %v2973_v60  ;;  %4161 = vst [vmem:[#allocation24_spill] sm:$0xff] %v2994_v14 }
  0xeb   :  { %v2990_v13 = vpop.eup %2397  ;;  %4162 = vst [vmem:[#allocation25_spill] sm:$0xff] %v2998_v15  ;;  %v426_v42 = vadd.f32 %v425_v55, %v306_v49  ;;  %2409 = vpow2.f32 %v842_v57 }
  0xec   :  { %v448_v58 = vpop.f32.mrf.mxu1  ;;  %v471_v61 = vpop.f32.mrf.mxu2  ;;  %2411 = vpow2.f32 %v844_v63  ;;  %v883_v18 = vrot.slane %v882_v11, 2  ;;  %v889_v19 = vadd.f32 %v888_v12, %v887_v1  ;;  %v895_v20 = vrot.slane %v894_v62, 4 }
  0xed   :  { %v472_v5 = vadd.f32 %v471_v61, %v307_v32  ;;  %v3002_v17 = vpop.eup %2399  ;;  %2413 = vpow2.f32 %v846_v8  ;;  %v901_v16 = vadd.f32 %v2990_v13, %v2986_v9  ;;  %v3019_v26 = vadd.f32 %v448_v58, %v426_v42 }
  0xee   :  { %v3007_v51 = vpop.eup %2401  ;;  %v884_v8 = vadd.f32 %v883_v18, %v882_v11  ;;  %v890_v12 = vrot.slane %v889_v19, 2  ;;  %v896_v42 = vadd.f32 %v895_v20, %v894_v62 }
  0xef   :  { %v494_v43 = vpop.f32.mrf.mxu3  ;;  %v3011_v21 = vpop.eup %2403  ;;  %4163 = vst [vmem:[#allocation26_spill] sm:$0xff] %v3019_v26 }
  0xf0   :  { %v3004_v4 = vadd.f32 %v494_v43, %v472_v5  ;;  %v3017_v25 = vpop.eup %2405  ;;  %v1848_v5 = vld [vmem:[#allocation8 + $0x40] sm:$0xff]  ;;  %v902_v43 = vrot.slane %v901_v16, 4  ;;  %v891_v11 = vadd.f32 %v890_v12, %v889_v19  ;;  %v897_v18 = vrot.slane %v896_v42, 2 }
  0xf1   :  { %v3024_v33 = vpop.eup %2407  ;;  %1906 = vmatpush.msrb.mxu0 %v1848_v5 }
  0xf2   :  { %v1218_v53 = vrot.slane %v3004_v4, 1  ;;  %v1219_v23 = vrot.slane %v3004_v4, 2  ;;  %v1220_v46 = vrot.slane %v3004_v4, 3  ;;  %v1221_v24 = vrot.slane %v3004_v4, 4  ;;  %v3032_v58 = vpop.eup %2409 }
  0xf3   :  { %v428_v22 = vpop.f32.mrf.mxu0  ;;  %v1222_v47 = vrot.slane %v3004_v4, 5  ;;  %v1223_v55 = vrot.slane %v3004_v4, 6  ;;  %v1224_v56 = vrot.slane %v3004_v4, 7  ;;  %v3042_v6 = vpop.eup %2411  ;;  %v903_v62 = vadd.f32 %v902_v43, %v901_v16  ;;  %v1845_v16 = vld [vmem:[#allocation8 + $0x28] sm:$0xff] }
  0xf4   :  { %v3028_v38 = vperm.slane %v1218_v53, 0  ;;  %v3030_v59 = vperm.slane %v1219_v23, 0  ;;  %v3034_v57 = vperm.slane %v1220_v46, 0  ;;  %v3036_v61 = vperm.slane %v1221_v24, 0  ;;  %v3044_v50 = vpop.eup %2413  ;;  %v1847_v23 = vld [vmem:[#allocation8 + $0x38] sm:$0xff] }
  0xf5   :  { %v3038_v63 = vperm.slane %v1222_v47, 0  ;;  %v429_v0 = vadd.f32 %v428_v22, %v306_v49  ;;  %v3046_v45 = vperm.slane %v1223_v55, 0  ;;  %v908_v49 = vadd.f32 %v3007_v51, %v3002_v17  ;;  %v1846_v47 = vld [vmem:[#allocation8 + $0x30] sm:$0xff]  ;;  %1907 = vmatpush.msrb.mxu0 %v1847_v23 }
  0xf6   :  { %v451_v1 = vpop.f32.mrf.mxu1  ;;  %v474_v7 = vpop.f32.mrf.mxu2  ;;  %v915_v46 = vadd.f32 %v3017_v25, %v3011_v21  ;;  %v885_v24 = vrot.slane %v884_v8, 1  ;;  %v3054_v20 = vperm.slane %v1224_v56, 0  ;;  %v929_v19 = vadd.f32 %v3044_v50, %v3042_v6 }
  0xf7   :  { %v475_v53 = vadd.f32 %v474_v7, %v307_v32  ;;  %v909_v55 = vrot.slane %v908_v49, 4  ;;  %v922_v32 = vadd.f32 %v3032_v58, %v3024_v33  ;;  %v3058_v7 = vadd.f32 %v451_v1, %v429_v0  ;;  %1908 = vmatpush.msrb.mxu0 %v1846_v47 }
  0xf8   :  { %v916_v31 = vrot.slane %v915_v46, 4  ;;  %v3062_v36 = vadd.f32 %v885_v24, %v884_v8  ;;  %v892_v56 = vrot.slane %v891_v11, 1  ;;  %v898_v5 = vadd.f32 %v897_v18, %v896_v42  ;;  %v1844_v24 = vld [vmem:[#allocation8 + $0x20] sm:$0xff] }
  0xf9   :  { %v497_v22 = vpop.f32.mrf.mxu3  ;;  %4164 = vst [vmem:[#allocation27_spill] sm:$0xff] %v3058_v7  ;;  %v904_v12 = vrot.slane %v903_v62, 2  ;;  %v910_v43 = vadd.f32 %v909_v55, %v908_v49  ;;  %v923_v15 = vrot.slane %v922_v32, 4  ;;  %1909 = vmatpush.msrb.mxu0 %v1845_v16 }
  0xfa   :  { %v3060_v54 = vadd.f32 %v497_v22, %v475_v53  ;;  %v917_v22 = vadd.f32 %v916_v31, %v915_v46  ;;  %v1843_v31 = vld [vmem:[#allocation8 + $0x18] sm:$0xff]  ;;  %v893_v27 = vadd.f32 %v892_v56, %v891_v11  ;;  %v899_v35 = vrot.slane %v898_v5, 1  ;;  %v1841_v11 = vld [vmem:[#allocation8 + $0x8] sm:$0xff] }
  0xfb   :  { %1910 = vmatpush.msrb.mxu0 %v1844_v24  ;;  %v905_v49 = vadd.f32 %v904_v12, %v903_v62  ;;  %v924_v16 = vadd.f32 %v923_v15, %v922_v32  ;;  %2415 = vrcp.f32 %v3062_v36 }
  0xfc   :  { %v1225_v30 = vrot.slane %v3060_v54, 1  ;;  %v1226_v44 = vrot.slane %v3060_v54, 2  ;;  %v1227_v0 = vrot.slane %v3060_v54, 3  ;;  %v1228_v1 = vrot.slane %v3060_v54, 4  ;;  %v517_v53 = vpop.f32.mrf.mxu0 }
  0xfd   :  { %v1229_v8 = vrot.slane %v3060_v54, 5  ;;  %v1230_v23 = vrot.slane %v3060_v54, 6  ;;  %v1231_v42 = vrot.slane %v3060_v54, 7  ;;  %v518_v46 = vadd.f32 %v517_v53, %v4166_v39  ;;  %1911 = vmatpush.msrb.mxu0 %v1843_v31  ;;  %v1840_v31 = vld [vmem:[#allocation8] sm:$0xff] }
  0xfe   :  { %v3074_v18 = vperm.slane %v1225_v30, 0  ;;  %v3076_v55 = vperm.slane %v1226_v44, 0  ;;  %v540_v14 = vpop.f32.mrf.mxu1  ;;  %v3078_v3 = vperm.slane %v1227_v0, 0  ;;  %v3080_v47 = vperm.slane %v1228_v1, 0  ;;  %v1842_v44 = vld [vmem:[#allocation8 + $0x10] sm:$0xff] }
  0xff   :  { %v3082_v40 = vperm.slane %v1229_v8, 0  ;;  %v911_v30 = vrot.slane %v910_v43, 2  ;;  %v3086_v29 = vadd.f32 %v540_v14, %v518_v46  ;;  %v918_v41 = vrot.slane %v917_v22, 2  ;;  %1912 = vmatpush.msrb.mxu0 %v1842_v44 }
 0x100   :  { %v930_v0 = vrot.slane %v929_v19, 4  ;;  %v900_v1 = vadd.f32 %v899_v35, %v898_v5  ;;  %v906_v8 = vrot.slane %v905_v49, 1  ;;  %v4167_v39 = vperm.slane %v2858_v10, 5 }
 0x101   :  { %4165 = vst [vmem:[#allocation28_spill] sm:$0xff] %v3082_v40  ;;  %v912_v7 = vadd.f32 %v911_v30, %v910_v43  ;;  %v919_v56 = vadd.f32 %v918_v41, %v917_v22  ;;  %v925_v62 = vrot.slane %v924_v16, 2  ;;  %v3091_v14 = vperm.slane %v1230_v23, 0  ;;  %1913 = vmatpush.msrb.mxu0 %v1841_v11 }
 0x102   :  { %v931_v12 = vadd.f32 %v930_v0, %v929_v19  ;;  %v3093_v24 = vperm.slane %v1231_v42, 0  ;;  %2417 = vrcp.f32 %v893_v27  ;;  %v4170_v35 = vperm.slane %v2858_v10, 4 }
 0x103   :  { %v563_v37 = vpop.f32.mrf.mxu2  ;;  %4168 = vst [vmem:[#allocation29_spill] sm:$0xff] %v3091_v14  ;;  %v913_v46 = vrot.slane %v912_v7, 1  ;;  %v926_v30 = vadd.f32 %v925_v62, %v924_v16  ;;  %v3099_v19 = vadd.f32 %v906_v8, %v905_v49  ;;  %2419 = vrcp.f32 %v900_v1  ;;  %v2416_v16 = vpop.eup %2415  ;;  %1914 = vmatpush.msrb.mxu0 %v1840_v31 }
 0x104   :  { %v564_v53 = vadd.f32 %v563_v37, %v4167_v39  ;;  %4169 = vst [vmem:[#allocation30_spill] sm:$0xff] %v3093_v24  ;;  %v520_v15 = vpop.f32.mrf.mxu0  ;;  %v920_v37 = vrot.slane %v919_v56, 1  ;;  %v932_v23 = vrot.slane %v931_v12, 2  ;;  %v4172_v22 = vperm.slane %v3004_v4, 0 }
 0x105   :  { %v586_v32 = vpop.f32.mrf.mxu3  ;;  %v521_v5 = vadd.f32 %v520_v15, %v4170_v35  ;;  %v3108_v0 = vadd.f32 %v913_v46, %v912_v7  ;;  %v927_v39 = vrot.slane %v926_v30, 1  ;;  %2421 = vrcp.f32 %v3099_v19 }
 0x106   :  { %v3097_v43 = vadd.f32 %v586_v32, %v564_v53  ;;  %v543_v41 = vpop.f32.mrf.mxu1  ;;  %v3104_v42 = vmul.f32 %v4172_v22, %v3086_v29  ;;  %v3112_v53 = vmul.f32 %v3028_v38, %v3086_v29  ;;  %v3114_v49 = vadd.f32 %v920_v37, %v919_v56 }
 0x107   :  { %v3106_v44 = vadd.f32 %v543_v41, %v521_v5  ;;  %v933_v8 = vadd.f32 %v932_v23, %v931_v12  ;;  %v3120_v15 = vadd.f32 %v927_v39, %v926_v30  ;;  %v4175_v5 = vperm.slane %v2858_v10, 5 }
 0x108   :  { %4171 = vst [vmem:[#allocation31_spill] sm:$0xff] %v3097_v43  ;;  %v992_v11 = vmul.f32 %v2952_v28, %v3097_v43  ;;  %v994_v62 = vmul.f32 %v2961_v34, %v3097_v43  ;;  %v996_v7 = vmul.f32 %v2973_v60, %v3097_v43  ;;  %v998_v32 = vmul.f32 %v2986_v9, %v3097_v43  ;;  %v3128_v56 = vpop.eup %2417 }
 0x109   :  { %4173 = vst [vmem:[#allocation32_spill] sm:$0xff] %v3104_v42  ;;  %v1000_v46 = vmul.f32 %v3002_v17, %v3097_v43  ;;  %v934_v35 = vrot.slane %v933_v8, 1  ;;  %v1002_v28 = vmul.f32 %v3011_v21, %v3097_v43  ;;  %v1152_v34 = vmul.f32 %v2416_v16, %v3062_v36  ;;  %v3142_v31 = vpop.eup %2419 }
 0x10a   :  { %4174 = vst [vmem:[#allocation33_spill] sm:$0xff] %v3112_v53  ;;  %v1004_v9 = vmul.f32 %v3024_v33, %v3097_v43  ;;  %2423 = vrcp.f32 %v3108_v0  ;;  %v3140_v17 = vmul.f32 %v3128_v56, %v893_v27  ;;  %v1006_v21 = vmul.f32 %v3042_v6, %v3097_v43 }
 0x10b   :  { %v566_v12 = vpop.f32.mrf.mxu2  ;;  %v3144_v30 = vadd.f32 %v934_v35, %v933_v8  ;;  %2425 = vrcp.f32 %v3114_v49  ;;  %v1168_v10 = vsub.f32 2.0, %v1152_v34  ;;  %v4177_v33 = vmov %v4172_v22 }
 0x10c   :  { %v567_v60 = vadd.f32 %v566_v12, %v4175_v5  ;;  %2427 = vrcp.f32 %v3120_v15  ;;  %v3155_v27 = vmul.f32 %v4177_v33, %v3106_v44  ;;  %v3159_v41 = vmul.f32 %v3028_v38, %v3106_v44  ;;  %v3176_v12 = vpop.eup %2421 }
 0x10d   :  { %v589_v37 = vpop.f32.mrf.mxu3  ;;  %2429 = vrcp.f32 %v3144_v30  ;;  %v3163_v6 = vmul.f32 %v3142_v31, %v900_v1  ;;  %v3166_v22 = vmul.f32 %v2416_v16, %v1168_v10 }
 0x10e   :  { %v3149_v36 = vadd.f32 %v589_v37, %v567_v60  ;;  %4178 = vst [vmem:[#allocation35_spill] sm:$0xff] %v3155_v27 }
 0x10f   :  { %4179 = vst [vmem:[#allocation36_spill] sm:$0xff] %v3159_v41 }
 0x110   :  { %4176 = vst [vmem:[#allocation34_spill] sm:$0xff] %v3149_v36  ;;  %v993_v39 = vmul.f32 %v2957_v48, %v3149_v36  ;;  %v995_v4 = vmul.f32 %v2967_v52, %v3149_v36  ;;  %v997_v8 = vmul.f32 %v2977_v2, %v3149_v36  ;;  %v999_v38 = vmul.f32 %v2990_v13, %v3149_v36  ;;  %v3186_v35 = vpop.eup %2423 }
 0x111   :  { %v1001_v1 = vmul.f32 %v3007_v51, %v3149_v36  ;;  %v1003_v16 = vmul.f32 %v3017_v25, %v3149_v36  ;;  %v1005_v48 = vmul.f32 %v3032_v58, %v3149_v36  ;;  %v1007_v52 = vmul.f32 %v3044_v50, %v3149_v36  ;;  %v3188_v60 = vpop.eup %2425 }
 0x112   :  { %v1024_v2 = vadd.f32 %v993_v39, %v992_v11  ;;  %v1031_v34 = vadd.f32 %v995_v4, %v994_v62  ;;  %v1038_v5 = vadd.f32 %v997_v8, %v996_v7  ;;  %v1045_v13 = vadd.f32 %v999_v38, %v998_v32  ;;  %v3190_v23 = vpop.eup %2427 }
 0x113   :  { %v1052_v37 = vadd.f32 %v1001_v1, %v1000_v46  ;;  %v1059_v10 = vadd.f32 %v1003_v16, %v1002_v28  ;;  %v1066_v51 = vadd.f32 %v1005_v48, %v1004_v9  ;;  %v1073_v33 = vadd.f32 %v1007_v52, %v1006_v21  ;;  %v3192_v24 = vpop.eup %2429 }
 0x114   :  { %v1025_v25 = vrot.slane %v1024_v2, 4  ;;  %v1032_v43 = vrot.slane %v1031_v34, 4  ;;  %v1039_v58 = vrot.slane %v1038_v5, 4  ;;  %v1046_v26 = vrot.slane %v1045_v13, 4 }
 0x115   :  { %v1053_v50 = vrot.slane %v1052_v37, 4  ;;  %v1060_v36 = vrot.slane %v1059_v10, 4  ;;  %v1067_v11 = vrot.slane %v1066_v51, 4  ;;  %v1074_v62 = vrot.slane %v1073_v33, 4 }
 0x116   :  { %v1026_v7 = vadd.f32 %v1025_v25, %v1024_v2  ;;  %v1033_v32 = vadd.f32 %v1032_v43, %v1031_v34  ;;  %v1040_v39 = vadd.f32 %v1039_v58, %v1038_v5  ;;  %v1047_v4 = vadd.f32 %v1046_v26, %v1045_v13 }
 0x117   :  { %v1054_v46 = vadd.f32 %v1053_v50, %v1052_v37  ;;  %v1061_v28 = vadd.f32 %v1060_v36, %v1059_v10  ;;  %v1068_v9 = vadd.f32 %v1067_v11, %v1066_v51  ;;  %v1075_v21 = vadd.f32 %v1074_v62, %v1073_v33 }
 0x118   :  { %v1027_v8 = vrot.slane %v1026_v7, 2  ;;  %v1034_v38 = vrot.slane %v1033_v32, 2  ;;  %v1041_v1 = vrot.slane %v1040_v39, 2  ;;  %v1048_v16 = vrot.slane %v1047_v4, 2 }
 0x119   :  { %v1055_v48 = vrot.slane %v1054_v46, 2  ;;  %v1062_v52 = vrot.slane %v1061_v28, 2  ;;  %v1069_v53 = vrot.slane %v1068_v9, 2  ;;  %v1076_v41 = vrot.slane %v1075_v21, 2 }
 0x11a   :  { %v1028_v42 = vadd.f32 %v1027_v8, %v1026_v7  ;;  %v1035_v27 = vadd.f32 %v1034_v38, %v1033_v32  ;;  %v1042_v14 = vadd.f32 %v1041_v1, %v1040_v39  ;;  %v1049_v40 = vadd.f32 %v1048_v16, %v1047_v4 }
 0x11b   :  { %v1056_v2 = vadd.f32 %v1055_v48, %v1054_v46  ;;  %v1063_v43 = vadd.f32 %v1062_v52, %v1061_v28  ;;  %v1070_v34 = vadd.f32 %v1069_v53, %v1068_v9  ;;  %v1077_v26 = vadd.f32 %v1076_v41, %v1075_v21 }
 0x11c   :  { %v1029_v5 = vrot.slane %v1028_v42, 1  ;;  %v1036_v36 = vrot.slane %v1035_v27, 1  ;;  %v1043_v13 = vrot.slane %v1042_v14, 1  ;;  %v1050_v37 = vrot.slane %v1049_v40, 1 }
 0x11d   :  { %v1057_v10 = vrot.slane %v1056_v2, 1  ;;  %v1064_v51 = vrot.slane %v1063_v43, 1  ;;  %v1071_v33 = vrot.slane %v1070_v34, 1  ;;  %v3196_v25 = vmul.f32 %v3030_v59, %v3086_v29 }
 0x11e   :  { %v1030_v58 = vadd.f32 %v1029_v5, %v1028_v42  ;;  %v1037_v50 = vadd.f32 %v1036_v36, %v1035_v27  ;;  %v1078_v11 = vrot.slane %v1077_v26, 1  ;;  %v3200_v62 = vmul.f32 %v3030_v59, %v3106_v44 }
 0x11f   :  { %v1044_v53 = vadd.f32 %v1043_v13, %v1042_v14  ;;  %v1051_v41 = vadd.f32 %v1050_v37, %v1049_v40  ;;  %v1058_v7 = vadd.f32 %v1057_v10, %v1056_v2  ;;  %v1065_v32 = vadd.f32 %v1064_v51, %v1063_v43 }
 0x120   :  { %v1155_v39 = vmul.f32 %v3176_v12, %v3099_v19  ;;  %v1156_v4 = vmul.f32 %v3186_v35, %v3108_v0  ;;  %v1157_v46 = vmul.f32 %v3188_v60, %v3114_v49  ;;  %v1158_v42 = vmul.f32 %v3190_v23, %v3120_v15 }
 0x121   :  { %v1072_v27 = vadd.f32 %v1071_v33, %v1070_v34  ;;  %v1159_v59 = vmul.f32 %v3192_v24, %v3144_v30  ;;  %v1170_v40 = vsub.f32 2.0, %v3163_v6  ;;  %v4180_v14 = vsub.f32 2.0, %v3140_v17 }
 0x122   :  { %v1171_v19 = vsub.f32 2.0, %v1155_v39  ;;  %v1172_v9 = vsub.f32 2.0, %v1156_v4  ;;  %v1173_v21 = vsub.f32 2.0, %v1157_v46  ;;  %v1174_v0 = vsub.f32 2.0, %v1158_v42  ;;  %v4207_v39 = vld [vmem:[#allocation36_spill] sm:$0xff]  ;;  %v4208_v4 = vld [vmem:[#allocation33_spill] sm:$0xff] }
 0x123   :  { %v1185_v28 = vmul.f32 %v3128_v56, %v4180_v14  ;;  %v1079_v8 = vadd.f32 %v1078_v11, %v1077_v26  ;;  %v1175_v38 = vsub.f32 2.0, %v1159_v59  ;;  %v1186_v49 = vmul.f32 %v3142_v31, %v1170_v40 }
 0x124   :  { %v3218_v15 = vmul.f32 %v3166_v22, %v1030_v58  ;;  %v1187_v1 = vmul.f32 %v3176_v12, %v1171_v19  ;;  %v1188_v30 = vmul.f32 %v3186_v35, %v1172_v9  ;;  %v3226_v56 = vmul.f32 %v3034_v57, %v3086_v29 }
 0x125   :  { %v3222_v6 = vmul.f32 %v1185_v28, %v1037_v50  ;;  %v1189_v17 = vmul.f32 %v3188_v60, %v1173_v21  ;;  %v1190_v16 = vmul.f32 %v3190_v23, %v1174_v0  ;;  %v1191_v48 = vmul.f32 %v3192_v24, %v1175_v38  ;;  %v4199_v50 = vld [vmem:[#allocation28_spill] sm:$0xff] }
 0x126   :  { %4181 = vst [vmem:[#allocation37_spill] sm:$0xff] %v3218_v15  ;;  %v3231_v31 = vmul.f32 %v1186_v49, %v1044_v53  ;;  %v3233_v22 = vmul.f32 %v1187_v1, %v1051_v41  ;;  %v3235_v52 = vmul.f32 %v1188_v30, %v1058_v7  ;;  %v3239_v12 = vmul.f32 %v3034_v57, %v3106_v44  ;;  %v4202_v53 = vld [vmem:[#allocation29_spill] sm:$0xff]  ;;  %v4205_v7 = vld [vmem:[#allocation35_spill] sm:$0xff] }
 0x127   :  { %4182 = vst [vmem:[#allocation38_spill] sm:$0xff] %v3222_v6  ;;  %v3243_v35 = vmul.f32 %v3036_v61, %v3086_v29  ;;  %v3245_v2 = vmul.f32 %v1189_v17, %v1065_v32  ;;  %v3247_v60 = vmul.f32 %v1190_v16, %v1072_v27  ;;  %v3249_v23 = vmul.f32 %v1191_v48, %v1079_v8  ;;  %v4206_v32 = vld [vmem:[#allocation32_spill] sm:$0xff] }
 0x128   :  { %4183 = vst [vmem:[#allocation39_spill] sm:$0xff] %v3231_v31  ;;  %v3253_v24 = vmul.f32 %v3036_v61, %v3106_v44  ;;  %v3257_v43 = vmul.f32 %v3038_v63, %v3086_v29  ;;  %v3261_v57 = vmul.f32 %v3038_v63, %v3106_v44  ;;  %v3265_v34 = vmul.f32 %v3046_v45, %v3086_v29 }
 0x129   :  { %4184 = vst [vmem:[#allocation40_spill] sm:$0xff] %v3233_v22  ;;  %v3269_v26 = vmul.f32 %v3046_v45, %v3106_v44  ;;  %v3273_v61 = vmul.f32 %v3054_v20, %v3086_v29  ;;  %v3277_v5 = vmul.f32 %v3054_v20, %v3106_v44  ;;  %v4193_v63 = vperm.slane %v3060_v54, 0 }
 0x12a   :  { %4185 = vst [vmem:[#allocation41_spill] sm:$0xff] %v3235_v52  ;;  %v3291_v45 = vmul.f32 %v3074_v18, %v3086_v29  ;;  %v3295_v10 = vmul.f32 %v3074_v18, %v3106_v44  ;;  %v3299_v20 = vmul.f32 %v3076_v55, %v3086_v29  ;;  %v3303_v51 = vmul.f32 %v3076_v55, %v3106_v44 }
 0x12b   :  { %4186 = vst [vmem:[#allocation42_spill] sm:$0xff] %v3245_v2  ;;  %v3282_v36 = vmul.f32 %v4193_v63, %v3086_v29  ;;  %v4194_v13 = vmov %v4193_v63  ;;  %v3307_v54 = vmul.f32 %v3078_v3, %v3086_v29  ;;  %v3311_v33 = vmul.f32 %v3078_v3, %v3106_v44 }
 0x12c   :  { %4187 = vst [vmem:[#allocation43_spill] sm:$0xff] %v3247_v60  ;;  %v3287_v37 = vmul.f32 %v4194_v13, %v3106_v44  ;;  %v3315_v18 = vmul.f32 %v3080_v47, %v3086_v29  ;;  %v3319_v58 = vmul.f32 %v3080_v47, %v3106_v44  ;;  %v3323_v55 = vmul.f32 %v4199_v50, %v3086_v29 }
 0x12d   :  { %4188 = vst [vmem:[#allocation44_spill] sm:$0xff] %v3249_v23  ;;  %v3327_v11 = vmul.f32 %v4199_v50, %v3106_v44  ;;  %v3331_v3 = vmul.f32 %v4202_v53, %v3086_v29  ;;  %v3335_v41 = vmul.f32 %v4202_v53, %v3106_v44  ;;  %v1296_v47 = vmax.f32 %v4206_v32, %v4205_v7 }
 0x12e   :  { %4189 = vst [vmem:[#allocation45_spill] sm:$0xff] %v3265_v34  ;;  %v1303_v46 = vmax.f32 %v4208_v4, %v4207_v39  ;;  %v1310_v42 = vmax.f32 %v3196_v25, %v3200_v62  ;;  %v1317_v27 = vmax.f32 %v3226_v56, %v3239_v12  ;;  %v1324_v59 = vmax.f32 %v3243_v35, %v3253_v24 }
 0x12f   :  { %4190 = vst [vmem:[#allocation46_spill] sm:$0xff] %v3269_v26  ;;  %v1331_v40 = vmax.f32 %v3257_v43, %v3261_v57  ;;  %v1338_v14 = vmax.f32 %v3265_v34, %v3269_v26  ;;  %v1345_v28 = vmax.f32 %v3273_v61, %v3277_v5  ;;  %v1297_v19 = vrot.slane %v1296_v47, 4 }
 0x130   :  { %4191 = vst [vmem:[#allocation47_spill] sm:$0xff] %v3273_v61  ;;  %v1304_v9 = vrot.slane %v1303_v46, 4  ;;  %v1311_v21 = vrot.slane %v1310_v42, 4  ;;  %v1318_v0 = vrot.slane %v1317_v27, 4  ;;  %v1325_v8 = vrot.slane %v1324_v59, 4 }
 0x131   :  { %4192 = vst [vmem:[#allocation48_spill] sm:$0xff] %v3277_v5  ;;  %v1332_v38 = vrot.slane %v1331_v40, 4  ;;  %v1339_v49 = vrot.slane %v1338_v14, 4  ;;  %v1346_v1 = vrot.slane %v1345_v28, 4  ;;  %v1298_v30 = vmax.f32 %v1296_v47, %v1297_v19  ;;  %v4209_v19 = vld [vmem:[#allocation30_spill] sm:$0xff] }
 0x132   :  { %4195 = vst [vmem:[#allocation49_spill] sm:$0xff] %v3307_v54  ;;  %v1305_v17 = vmax.f32 %v1303_v46, %v1304_v9  ;;  %v1312_v16 = vmax.f32 %v1310_v42, %v1311_v21  ;;  %v1319_v48 = vmax.f32 %v1317_v27, %v1318_v0  ;;  %v1326_v63 = vmax.f32 %v1324_v59, %v1325_v8 }
 0x133   :  { %4196 = vst [vmem:[#allocation50_spill] sm:$0xff] %v3311_v33  ;;  %v1333_v13 = vmax.f32 %v1331_v40, %v1332_v38  ;;  %v1340_v50 = vmax.f32 %v1338_v14, %v1339_v49  ;;  %v1347_v53 = vmax.f32 %v1345_v28, %v1346_v1  ;;  %v1299_v23 = vrot.slane %v1298_v30, 2 }
 0x134   :  { %4197 = vst [vmem:[#allocation51_spill] sm:$0xff] %v3315_v18  ;;  %v1306_v60 = vrot.slane %v1305_v17, 2  ;;  %v1313_v2 = vrot.slane %v1312_v16, 2  ;;  %v1320_v52 = vrot.slane %v1319_v48, 2  ;;  %v1327_v22 = vrot.slane %v1326_v63, 2 }
 0x135   :  { %4198 = vst [vmem:[#allocation52_spill] sm:$0xff] %v3319_v58  ;;  %v1334_v31 = vrot.slane %v1333_v13, 2  ;;  %v1341_v6 = vrot.slane %v1340_v50, 2  ;;  %v1348_v15 = vrot.slane %v1347_v53, 2  ;;  %v1300_v5 = vmax.f32 %v1298_v30, %v1299_v23 }
 0x136   :  { %4200 = vst [vmem:[#allocation28_spill] sm:$0xff] %v3323_v55  ;;  %v1307_v61 = vmax.f32 %v1305_v17, %v1306_v60  ;;  %v1314_v26 = vmax.f32 %v1312_v16, %v1313_v2  ;;  %v1321_v34 = vmax.f32 %v1319_v48, %v1320_v52  ;;  %v1328_v47 = vmax.f32 %v1326_v63, %v1327_v22 }
 0x137   :  { %4201 = vst [vmem:[#allocation53_spill] sm:$0xff] %v3327_v11  ;;  %v1335_v46 = vmax.f32 %v1333_v13, %v1334_v31  ;;  %v3353_v42 = vmax.f32 %v1340_v50, %v1341_v6  ;;  %v3355_v27 = vmax.f32 %v1347_v53, %v1348_v15  ;;  %v1301_v59 = vrot.slane %v1300_v5, 1 }
 0x138   :  { %4203 = vst [vmem:[#allocation29_spill] sm:$0xff] %v3331_v3  ;;  %v1308_v40 = vrot.slane %v1307_v61, 1  ;;  %v1315_v14 = vrot.slane %v1314_v26, 1  ;;  %v1322_v28 = vrot.slane %v1321_v34, 1  ;;  %v3359_v9 = vmul.f32 %v4209_v19, %v3086_v29 }
 0x139   :  { %4204 = vst [vmem:[#allocation54_spill] sm:$0xff] %v3335_v41  ;;  %v3363_v23 = vmul.f32 %v4209_v19, %v3106_v44  ;;  %v1329_v2 = vrot.slane %v1328_v47, 1  ;;  %v1336_v52 = vrot.slane %v1335_v46, 1  ;;  %v3365_v22 = vmax.f32 %v1300_v5, %v1301_v59 }
 0x13a   :  { %4210 = vst [vmem:[#allocation35_spill] sm:$0xff] %v3359_v9  ;;  %v3367_v6 = vmax.f32 %v1307_v61, %v1308_v40  ;;  %v1343_v15 = vrot.slane %v3353_v42, 1  ;;  %v1350_v31 = vrot.slane %v3355_v27, 1  ;;  %v3371_v60 = vmax.f32 %v1314_v26, %v1315_v14 }
 0x13b   :  { %4211 = vst [vmem:[#allocation32_spill] sm:$0xff] %v3363_v23  ;;  %v3373_v21 = vmax.f32 %v1321_v34, %v1322_v28  ;;  %v3375_v29 = vmax.f32 %v1328_v47, %v1329_v2  ;;  %v3377_v0 = vmax.f32 %v1335_v46, %v1336_v52  ;;  %v1352_v44 = vmax.f32 %v3282_v36, %v3287_v37 }
 0x13c   :  { %v1359_v5 = vmax.f32 %v3291_v45, %v3295_v10  ;;  %v1366_v61 = vmax.f32 %v3299_v20, %v3303_v51  ;;  %v1373_v8 = vmax.f32 %v3307_v54, %v3311_v33  ;;  %v1380_v34 = vmax.f32 %v3315_v18, %v3319_v58 }
 0x13d   :  { %v1387_v26 = vmax.f32 %v3323_v55, %v3327_v11  ;;  %v1394_v38 = vmax.f32 %v3331_v3, %v3335_v41  ;;  %v1401_v49 = vmax.f32 %v3359_v9, %v3363_v23  ;;  %v1353_v1 = vrot.slane %v1352_v44, 4 }
 0x13e   :  { %v1360_v30 = vrot.slane %v1359_v5, 4  ;;  %v1367_v17 = vrot.slane %v1366_v61, 4  ;;  %v1374_v16 = vrot.slane %v1373_v8, 4  ;;  %v1381_v48 = vrot.slane %v1380_v34, 4 }
 0x13f   :  { %v1388_v63 = vrot.slane %v1387_v26, 4  ;;  %v1395_v13 = vrot.slane %v1394_v38, 4  ;;  %v1402_v50 = vrot.slane %v1401_v49, 4  ;;  %v1354_v53 = vmax.f32 %v1352_v44, %v1353_v1 }
 0x140   :  { %v1361_v47 = vmax.f32 %v1359_v5, %v1360_v30  ;;  %v1368_v46 = vmax.f32 %v1366_v61, %v1367_v17  ;;  %v1375_v59 = vmax.f32 %v1373_v8, %v1374_v16  ;;  %v1382_v40 = vmax.f32 %v1380_v34, %v1381_v48 }
 0x141   :  { %v1389_v14 = vmax.f32 %v1387_v26, %v1388_v63  ;;  %v1396_v28 = vmax.f32 %v1394_v38, %v1395_v13  ;;  %v1403_v19 = vmax.f32 %v1401_v49, %v1402_v50  ;;  %v1355_v2 = vrot.slane %v1354_v53, 2 }
 0x142   :  { %v1362_v52 = vrot.slane %v1361_v47, 2  ;;  %v1369_v41 = vrot.slane %v1368_v46, 2  ;;  %v1376_v23 = vrot.slane %v1375_v59, 2  ;;  %v1383_v9 = vrot.slane %v1382_v40, 2 }
 0x143   :  { %v1390_v3 = vrot.slane %v1389_v14, 2  ;;  %v1397_v11 = vrot.slane %v1396_v28, 2  ;;  %v1404_v55 = vrot.slane %v1403_v19, 2  ;;  %v1356_v58 = vmax.f32 %v1354_v53, %v1355_v2  ;;  %v4215_v53 = vld [vmem:[#allocation48_spill] sm:$0xff]  ;;  %v4223_v2 = vld [vmem:[#allocation54_spill] sm:$0xff] }
 0x144   :  { %v1363_v18 = vmax.f32 %v1361_v47, %v1362_v52  ;;  %v1370_v33 = vmax.f32 %v1368_v46, %v1369_v41  ;;  %v1377_v54 = vmax.f32 %v1375_v59, %v1376_v23  ;;  %v1384_v44 = vmax.f32 %v1382_v40, %v1383_v9  ;;  %v4217_v46 = vld [vmem:[#allocation50_spill] sm:$0xff] }
 0x145   :  { %v1391_v5 = vmax.f32 %v1389_v14, %v1390_v3  ;;  %v1398_v61 = vmax.f32 %v1396_v28, %v1397_v11  ;;  %v1405_v8 = vmax.f32 %v1403_v19, %v1404_v55  ;;  %v1357_v34 = vrot.slane %v1356_v58, 1 }
 0x146   :  { %v1364_v26 = vrot.slane %v1363_v18, 1  ;;  %v1371_v38 = vrot.slane %v1370_v33, 1  ;;  %v1378_v49 = vrot.slane %v1377_v54, 1  ;;  %v1385_v1 = vrot.slane %v1384_v44, 1 }
 0x147   :  { %v1392_v30 = vrot.slane %v1391_v5, 1  ;;  %v1399_v17 = vrot.slane %v1398_v61, 1  ;;  %v1406_v16 = vrot.slane %v1405_v8, 1  ;;  %v1344_v48 = vmax.f32 %v3353_v42, %v1343_v15 }
 0x148   :  { %v1351_v63 = vmax.f32 %v3355_v27, %v1350_v31  ;;  %v1358_v13 = vmax.f32 %v1356_v58, %v1357_v34  ;;  %v3397_v50 = vmax.f32 %v1363_v18, %v1364_v26  ;;  %v3399_v41 = vmax.f32 %v1370_v33, %v1371_v38  ;;  %v4225_v26 = vld [vmem:[#allocation32_spill] sm:$0xff] }
 0x149   :  { %v3401_v3 = vmax.f32 %v1377_v54, %v1378_v49  ;;  %v3403_v55 = vmax.f32 %v1384_v44, %v1385_v1  ;;  %v3405_v11 = vmax.f32 %v1391_v5, %v1392_v30  ;;  %v3407_v9 = vmax.f32 %v1398_v61, %v1399_v17  ;;  %v4224_v44 = vld [vmem:[#allocation35_spill] sm:$0xff] }
 0x14a   :  { %v3409_v23 = vmax.f32 %v1405_v8, %v1406_v16  ;;  %v1408_v42 = vsub.f32 %v4206_v32, %v3365_v22  ;;  %v1409_v58 = vsub.f32 %v4205_v7, %v3365_v22  ;;  %v1410_v33 = vsub.f32 %v4208_v4, %v3367_v6  ;;  %v4212_v22 = vld [vmem:[#allocation45_spill] sm:$0xff] }
 0x14b   :  { %v1411_v54 = vsub.f32 %v4207_v39, %v3367_v6  ;;  %v1412_v18 = vsub.f32 %v3196_v25, %v3371_v60  ;;  %v1413_v27 = vsub.f32 %v3200_v62, %v3371_v60  ;;  %v1414_v15 = vsub.f32 %v3226_v56, %v3373_v21  ;;  %v4213_v6 = vld [vmem:[#allocation46_spill] sm:$0xff]  ;;  %v4214_v56 = vld [vmem:[#allocation47_spill] sm:$0xff] }
 0x14c   :  { %v1415_v32 = vsub.f32 %v3239_v12, %v3373_v21  ;;  %v1416_v7 = vsub.f32 %v3243_v35, %v3375_v29  ;;  %v1417_v4 = vsub.f32 %v3253_v24, %v3375_v29  ;;  %v1418_v39 = vsub.f32 %v3257_v43, %v3377_v0 }
 0x14d   :  { %v1419_v25 = vsub.f32 %v3261_v57, %v3377_v0  ;;  %v1420_v62 = vsub.f32 %v4212_v22, %v1344_v48  ;;  %v1421_v31 = vsub.f32 %v4213_v6, %v1344_v48  ;;  %v1422_v60 = vsub.f32 %v4214_v56, %v1351_v63  ;;  %v4216_v0 = vld [vmem:[#allocation49_spill] sm:$0xff] }
 0x14e   :  { %v1423_v12 = vsub.f32 %v4215_v53, %v1351_v63  ;;  %v1424_v21 = vsub.f32 %v3282_v36, %v1358_v13  ;;  %v1425_v35 = vsub.f32 %v3287_v37, %v1358_v13  ;;  %v1426_v24 = vsub.f32 %v3291_v45, %v3397_v50  ;;  %v4218_v37 = vld [vmem:[#allocation51_spill] sm:$0xff]  ;;  %v4219_v45 = vld [vmem:[#allocation52_spill] sm:$0xff] }
 0x14f   :  { %v1427_v43 = vsub.f32 %v3295_v10, %v3397_v50  ;;  %v1428_v57 = vsub.f32 %v3299_v20, %v3399_v41  ;;  %v1429_v29 = vsub.f32 %v3303_v51, %v3399_v41  ;;  %v1430_v47 = vsub.f32 %v4216_v0, %v3401_v3  ;;  %v4220_v10 = vld [vmem:[#allocation28_spill] sm:$0xff]  ;;  %v4221_v20 = vld [vmem:[#allocation53_spill] sm:$0xff] }
 0x150   :  { %v1431_v36 = vsub.f32 %v4217_v46, %v3401_v3  ;;  %v1432_v59 = vsub.f32 %v4218_v37, %v3403_v55  ;;  %v1433_v40 = vsub.f32 %v4219_v45, %v3403_v55  ;;  %v1434_v14 = vsub.f32 %v4220_v10, %v3405_v11  ;;  %v4222_v51 = vld [vmem:[#allocation29_spill] sm:$0xff] }
 0x151   :  { %v1435_v28 = vsub.f32 %v4221_v20, %v3405_v11  ;;  %v1436_v19 = vsub.f32 %v4222_v51, %v3407_v9  ;;  %v1437_v52 = vsub.f32 %v4223_v2, %v3407_v9  ;;  %v1438_v5 = vsub.f32 %v4224_v44, %v3409_v23 }
 0x152   :  { %v1440_v61 = vmul.f32 1.442695, %v1408_v42  ;;  %v1442_v8 = vmul.f32 1.442695, %v1409_v58  ;;  %v1444_v34 = vmul.f32 1.442695, %v1410_v33  ;;  %v1439_v38 = vsub.f32 %v4225_v26, %v3409_v23 }
 0x153   :  { %v1446_v49 = vmul.f32 1.442695, %v1411_v54  ;;  %v1448_v1 = vmul.f32 1.442695, %v1412_v18  ;;  %v1450_v30 = vmul.f32 1.442695, %v1413_v27 }
 0x154   :  { %2431 = vpow2.f32 %v1440_v61  ;;  %v1452_v17 = vmul.f32 1.442695, %v1414_v15  ;;  %v1454_v16 = vmul.f32 1.442695, %v1415_v32  ;;  %v1456_v48 = vmul.f32 1.442695, %v1416_v7 }
 0x155   :  { %2433 = vpow2.f32 %v1442_v8  ;;  %v1458_v63 = vmul.f32 1.442695, %v1417_v4  ;;  %v1460_v13 = vmul.f32 1.442695, %v1418_v39  ;;  %v1462_v50 = vmul.f32 1.442695, %v1419_v25 }
 0x156   :  { %2435 = vpow2.f32 %v1444_v34  ;;  %v1464_v41 = vmul.f32 1.442695, %v1420_v62  ;;  %v1466_v3 = vmul.f32 1.442695, %v1421_v31  ;;  %v1468_v55 = vmul.f32 1.442695, %v1422_v60 }
 0x157   :  { %2437 = vpow2.f32 %v1446_v49  ;;  %v1470_v11 = vmul.f32 1.442695, %v1423_v12  ;;  %v1472_v9 = vmul.f32 1.442695, %v1424_v21  ;;  %v3469_v42 = vmul.f32 1.442695, %v1425_v35 }
 0x158   :  { %2439 = vpow2.f32 %v1448_v1  ;;  %v3471_v23 = vmul.f32 1.442695, %v1426_v24  ;;  %v3473_v58 = vmul.f32 1.442695, %v1427_v43  ;;  %v3475_v33 = vmul.f32 1.442695, %v1428_v57 }
 0x159   :  { %2441 = vpow2.f32 %v1450_v30  ;;  %v3477_v54 = vmul.f32 1.442695, %v1429_v29  ;;  %v3479_v18 = vmul.f32 1.442695, %v1430_v47  ;;  %v3481_v27 = vmul.f32 1.442695, %v1431_v36 }
 0x15a   :  { %v2432_v15 = vpop.eup %2431  ;;  %2443 = vpow2.f32 %v1452_v17  ;;  %v3483_v32 = vmul.f32 1.442695, %v1432_v59  ;;  %v3485_v7 = vmul.f32 1.442695, %v1433_v40  ;;  %v3487_v4 = vmul.f32 1.442695, %v1434_v14 }
 0x15b   :  { %v2434_v39 = vpop.eup %2433  ;;  %2445 = vpow2.f32 %v1454_v16  ;;  %v3489_v25 = vmul.f32 1.442695, %v1435_v28  ;;  %v3491_v22 = vmul.f32 1.442695, %v1436_v19  ;;  %v3493_v62 = vmul.f32 1.442695, %v1437_v52 }
 0x15c   :  { %v2436_v6 = vpop.eup %2435  ;;  %2447 = vpow2.f32 %v1456_v48  ;;  %v3495_v31 = vmul.f32 1.442695, %v1438_v5  ;;  %v3497_v56 = vmul.f32 1.442695, %v1439_v38  ;;  %v1504_v60 = vadd.f32 %v2434_v39, %v2432_v15  ;;  %v4226_v12 = vld [vmem:[#allocation26_spill] sm:$0xff]  ;;  %v4227_v35 = vld [vmem:[#allocation27_spill] sm:$0xff] }
 0x15d   :  { %v2438_v53 = vpop.eup %2437  ;;  %2449 = vpow2.f32 %v1458_v63  ;;  %v3500_v21 = vmul.f32 %v2432_v15, %v4226_v12  ;;  %v3503_v24 = vmul.f32 %v2434_v39, %v4227_v35  ;;  %v3506_v43 = vmul.f32 %v2436_v6, %v4226_v12 }
 0x15e   :  { %v2440_v57 = vpop.eup %2439  ;;  %2451 = vpow2.f32 %v1460_v13  ;;  %v1505_v29 = vrot.slane %v1504_v60, 4  ;;  %v1511_v0 = vadd.f32 %v2438_v53, %v2436_v6  ;;  %v3509_v47 = vmul.f32 %v2438_v53, %v4227_v35 }
 0x15f   :  { %v2442_v46 = vpop.eup %2441  ;;  %2453 = vpow2.f32 %v1462_v50  ;;  %v3512_v36 = vmul.f32 %v2440_v57, %v4226_v12 }
 0x160   :  { %v2444_v40 = vpop.eup %2443  ;;  %2455 = vpow2.f32 %v1464_v41  ;;  %v1506_v10 = vadd.f32 %v1505_v29, %v1504_v60  ;;  %v1512_v14 = vrot.slane %v1511_v0, 4  ;;  %v1518_v20 = vadd.f32 %v2442_v46, %v2440_v57 }
 0x161   :  { %v2446_v28 = vpop.eup %2445  ;;  %2457 = vpow2.f32 %v1466_v3  ;;  %v3517_v51 = vmul.f32 %v2442_v46, %v4227_v35  ;;  %v3520_v19 = vmul.f32 %v2444_v40, %v4226_v12 }
 0x162   :  { %v2448_v52 = vpop.eup %2447  ;;  %2459 = vpow2.f32 %v1468_v55  ;;  %v1507_v44 = vrot.slane %v1506_v10, 2  ;;  %v1513_v5 = vadd.f32 %v1512_v14, %v1511_v0  ;;  %v1519_v61 = vrot.slane %v1518_v20, 4 }
 0x163   :  { %v2450_v8 = vpop.eup %2449  ;;  %2461 = vpow2.f32 %v1470_v11  ;;  %v1525_v34 = vadd.f32 %v2446_v28, %v2444_v40  ;;  %v3524_v26 = vmul.f32 %v2446_v28, %v4227_v35  ;;  %v3527_v38 = vmul.f32 %v2448_v52, %v4226_v12 }
 0x164   :  { %v3529_v49 = vpop.eup %2451  ;;  %2463 = vpow2.f32 %v1472_v9  ;;  %v1508_v1 = vadd.f32 %v1507_v44, %v1506_v10  ;;  %v1514_v30 = vrot.slane %v1513_v5, 2  ;;  %v1520_v17 = vadd.f32 %v1519_v61, %v1518_v20 }
 0x165   :  { %v3531_v16 = vpop.eup %2453  ;;  %2465 = vpow2.f32 %v3469_v42  ;;  %v1526_v48 = vrot.slane %v1525_v34, 4  ;;  %v1532_v63 = vadd.f32 %v2450_v8, %v2448_v52  ;;  %v3535_v13 = vmul.f32 %v2450_v8, %v4227_v35 }
 0x166   :  { %v3537_v50 = vpop.eup %2455  ;;  %2467 = vpow2.f32 %v3471_v23  ;;  %v1509_v41 = vrot.slane %v1508_v1, 1  ;;  %v1515_v3 = vadd.f32 %v1514_v30, %v1513_v5  ;;  %v1521_v55 = vrot.slane %v1520_v17, 2 }
 0x167   :  { %v3540_v11 = vpop.eup %2457  ;;  %2469 = vpow2.f32 %v3473_v58  ;;  %v1527_v9 = vadd.f32 %v1526_v48, %v1525_v34  ;;  %v1533_v15 = vrot.slane %v1532_v63, 4  ;;  %v1539_v42 = vadd.f32 %v3531_v16, %v3529_v49 }
 0x168   :  { %v3545_v39 = vpop.eup %2459  ;;  %2471 = vpow2.f32 %v3475_v33  ;;  %v3548_v6 = vadd.f32 %v1509_v41, %v1508_v1  ;;  %v1516_v60 = vrot.slane %v1515_v3, 1  ;;  %v1522_v23 = vadd.f32 %v1521_v55, %v1520_v17 }
 0x169   :  { %v3550_v53 = vpop.eup %2461  ;;  %2473 = vpow2.f32 %v3477_v54  ;;  %v1528_v57 = vrot.slane %v1527_v9, 2  ;;  %v1534_v29 = vadd.f32 %v1533_v15, %v1532_v63  ;;  %v1540_v58 = vrot.slane %v1539_v42, 4 }
 0x16a   :  { %v3553_v0 = vpop.eup %2463  ;;  %2475 = vpow2.f32 %v3479_v18  ;;  %v3556_v46 = vadd.f32 %v1516_v60, %v1515_v3  ;;  %v1523_v40 = vrot.slane %v1522_v23, 1  ;;  %v1546_v33 = vadd.f32 %v3540_v11, %v3537_v50 }
 0x16b   :  { %v3560_v10 = vpop.eup %2465  ;;  %2477 = vpow2.f32 %v3481_v27  ;;  %v1529_v14 = vadd.f32 %v1528_v57, %v1527_v9  ;;  %v1535_v20 = vrot.slane %v1534_v29, 2  ;;  %v1541_v54 = vadd.f32 %v1540_v58, %v1539_v42 }
 0x16c   :  { %v3563_v28 = vpop.eup %2467  ;;  %2479 = vpow2.f32 %v3483_v32  ;;  %v3566_v52 = vadd.f32 %v1523_v40, %v1522_v23  ;;  %v1547_v18 = vrot.slane %v1546_v33, 4  ;;  %v1553_v44 = vadd.f32 %v3550_v53, %v3545_v39 }
 0x16d   :  { %v3570_v5 = vpop.eup %2469  ;;  %2481 = vpow2.f32 %v3485_v7  ;;  %v1530_v61 = vrot.slane %v1529_v14, 1  ;;  %v1536_v8 = vadd.f32 %v1535_v20, %v1534_v29  ;;  %v1542_v27 = vrot.slane %v1541_v54, 2 }
 0x16e   :  { %v3573_v34 = vpop.eup %2471  ;;  %2483 = vpow2.f32 %v3487_v4  ;;  %v1548_v1 = vadd.f32 %v1547_v18, %v1546_v33  ;;  %v1554_v30 = vrot.slane %v1553_v44, 4  ;;  %v1560_v32 = vadd.f32 %v3560_v10, %v3553_v0 }
 0x16f   :  { %v3578_v17 = vpop.eup %2473  ;;  %2485 = vpow2.f32 %v3489_v25  ;;  %v3581_v48 = vadd.f32 %v1530_v61, %v1529_v14  ;;  %v1537_v63 = vrot.slane %v1536_v8, 1  ;;  %v1543_v7 = vadd.f32 %v1542_v27, %v1541_v54 }
 0x170   :  { %v3583_v41 = vpop.eup %2475  ;;  %2487 = vpow2.f32 %v3491_v22  ;;  %v1549_v3 = vrot.slane %v1548_v1, 2  ;;  %v1555_v55 = vadd.f32 %v1554_v30, %v1553_v44  ;;  %v1561_v4 = vrot.slane %v1560_v32, 4 }
 0x171   :  { %4229 = vst [vmem:[#allocation36_spill] sm:$0xff] %v3581_v48  ;;  %v3586_v9 = vpop.eup %2477  ;;  %2489 = vpow2.f32 %v3493_v62  ;;  %v3589_v15 = vadd.f32 %v1537_v63, %v1536_v8  ;;  %v1544_v42 = vrot.slane %v1543_v7, 1  ;;  %v1567_v25 = vadd.f32 %v3570_v5, %v3563_v28 }
 0x172   :  { %v3593_v60 = vpop.eup %2479  ;;  %2491 = vpow2.f32 %v3495_v31  ;;  %v1550_v23 = vadd.f32 %v1549_v3, %v1548_v1  ;;  %v1556_v57 = vrot.slane %v1555_v55, 2  ;;  %v1562_v22 = vadd.f32 %v1561_v4, %v1560_v32 }
 0x173   :  { %4230 = vst [vmem:[#allocation33_spill] sm:$0xff] %v3589_v15  ;;  %v3596_v29 = vpop.eup %2481  ;;  %2493 = vpow2.f32 %v3497_v56  ;;  %v3599_v58 = vadd.f32 %v1544_v42, %v1543_v7  ;;  %v1568_v62 = vrot.slane %v1567_v25, 4  ;;  %v1574_v40 = vadd.f32 %v3578_v17, %v3573_v34 }
 0x174   :  { %v3603_v33 = vpop.eup %2483  ;;  %v1551_v14 = vrot.slane %v1550_v23, 1  ;;  %v1557_v20 = vadd.f32 %v1556_v57, %v1555_v55  ;;  %v1563_v54 = vrot.slane %v1562_v22, 2  ;;  %v1581_v31 = vadd.f32 %v3586_v9, %v3583_v41 }
 0x175   :  { %4231 = vst [vmem:[#allocation30_spill] sm:$0xff] %v3599_v58  ;;  %v3607_v18 = vpop.eup %2485  ;;  %v1569_v44 = vadd.f32 %v1568_v62, %v1567_v25  ;;  %v1575_v61 = vrot.slane %v1574_v40, 4  ;;  %v1588_v56 = vadd.f32 %v3596_v29, %v3593_v60  ;;  %v3613_v8 = vmul.f32 %v3529_v49, %v4226_v12 }
 0x176   :  { %v3615_v27 = vpop.eup %2487  ;;  %v3617_v1 = vadd.f32 %v1551_v14, %v1550_v23  ;;  %v1558_v30 = vrot.slane %v1557_v20, 1  ;;  %v1564_v32 = vadd.f32 %v1563_v54, %v1562_v22  ;;  %v1582_v63 = vrot.slane %v1581_v31, 4 }
 0x177   :  { %v3619_v7 = vpop.eup %2489  ;;  %v1570_v3 = vrot.slane %v1569_v44, 2  ;;  %v1576_v55 = vadd.f32 %v1575_v61, %v1574_v40  ;;  %v1589_v4 = vrot.slane %v1588_v56, 4  ;;  %v1595_v42 = vadd.f32 %v3607_v18, %v3603_v33 }
 0x178   :  { %4232 = vst [vmem:[#allocation45_spill] sm:$0xff] %v3617_v1  ;;  %v2492_v25 = vpop.eup %2491  ;;  %v3623_v57 = vadd.f32 %v1558_v30, %v1557_v20  ;;  %v1565_v49 = vrot.slane %v1564_v32, 1  ;;  %v1583_v62 = vadd.f32 %v1582_v63, %v1581_v31  ;;  %v1602_v23 = vadd.f32 %v3619_v7, %v3615_v27 }
 0x179   :  { %v2494_v14 = vpop.eup %2493  ;;  %v1571_v2 = vadd.f32 %v1570_v3, %v1569_v44  ;;  %v1577_v22 = vrot.slane %v1576_v55, 2  ;;  %v1590_v54 = vadd.f32 %v1589_v4, %v1588_v56  ;;  %v1596_v45 = vrot.slane %v1595_v42, 4 }
 0x17a   :  { %4233 = vst [vmem:[#allocation46_spill] sm:$0xff] %v3623_v57  ;;  %v3627_v59 = vadd.f32 %v1565_v49, %v1564_v32  ;;  %v1584_v40 = vrot.slane %v1583_v62, 2  ;;  %v1603_v61 = vrot.slane %v1602_v23, 4  ;;  %v1609_v1 = vadd.f32 %v2494_v14, %v2492_v25 }
 0x17b   :  { %v1572_v58 = vrot.slane %v1571_v2, 1  ;;  %v1578_v15 = vadd.f32 %v1577_v22, %v1576_v55  ;;  %v1591_v37 = vrot.slane %v1590_v54, 2  ;;  %v1597_v20 = vadd.f32 %v1596_v45, %v1595_v42 }
 0x17c   :  { %4234 = vst [vmem:[#allocation47_spill] sm:$0xff] %v3627_v59  ;;  %v1585_v30 = vadd.f32 %v1584_v40, %v1583_v62  ;;  %v1604_v57 = vadd.f32 %v1603_v61, %v1602_v23  ;;  %v1610_v31 = vrot.slane %v1609_v1, 4  ;;  %v1627_v63 = vmul.f32 %v3531_v16, %v4227_v35 }
 0x17d   :  { %v3631_v48 = vadd.f32 %v1572_v58, %v1571_v2  ;;  %v1579_v44 = vrot.slane %v1578_v15, 1  ;;  %v1592_v56 = vadd.f32 %v1591_v37, %v1590_v54  ;;  %v1598_v3 = vrot.slane %v1597_v20, 2 }
 0x17e   :  { %v1586_v32 = vrot.slane %v1585_v30, 1  ;;  %v1605_v4 = vrot.slane %v1604_v57, 2  ;;  %v1611_v49 = vadd.f32 %v1610_v31, %v1609_v1  ;;  %v1628_v59 = vmul.f32 %v3537_v50, %v4226_v12 }
 0x17f   :  { %v3635_v55 = vadd.f32 %v1579_v44, %v1578_v15  ;;  %v1593_v45 = vrot.slane %v1592_v56, 1  ;;  %v1599_v42 = vadd.f32 %v1598_v3, %v1597_v20  ;;  %v1629_v62 = vmul.f32 %v3540_v11, %v4227_v35 }
 0x180   :  { %v3639_v23 = vadd.f32 %v1586_v32, %v1585_v30  ;;  %v1606_v2 = vadd.f32 %v1605_v4, %v1604_v57  ;;  %v1612_v16 = vrot.slane %v1611_v49, 2  ;;  %v1630_v37 = vmul.f32 %v3545_v39, %v4226_v12 }
 0x181   :  { %v3643_v58 = vadd.f32 %v1593_v45, %v1592_v56  ;;  %v1600_v1 = vrot.slane %v1599_v42, 1  ;;  %v1631_v50 = vmul.f32 %v3550_v53, %v4227_v35  ;;  %v3649_v15 = vmul.f32 %v3553_v0, %v4226_v12 }
 0x182   :  { %v1607_v22 = vrot.slane %v1606_v2, 1  ;;  %v1613_v54 = vadd.f32 %v1612_v16, %v1611_v49  ;;  %v3653_v11 = vmul.f32 %v3560_v10, %v4227_v35  ;;  %v3657_v57 = vmul.f32 %v3563_v28, %v4226_v12 }
 0x183   :  { %v3659_v39 = vadd.f32 %v1600_v1, %v1599_v42  ;;  %v3663_v40 = vmul.f32 %v3570_v5, %v4227_v35  ;;  %v3667_v53 = vmul.f32 %v3573_v34, %v4226_v12  ;;  %v3671_v0 = vmul.f32 %v3578_v17, %v4227_v35 }
 0x184   :  { %v3673_v10 = vadd.f32 %v1607_v22, %v1606_v2  ;;  %v1614_v61 = vrot.slane %v1613_v54, 1  ;;  %v3677_v28 = vmul.f32 %v3583_v41, %v4226_v12  ;;  %v3681_v20 = vmul.f32 %v3586_v9, %v4227_v35 }
 0x185   :  { %v3685_v5 = vmul.f32 %v3593_v60, %v4226_v12  ;;  %v3689_v34 = vmul.f32 %v3596_v29, %v4227_v35  ;;  %v3693_v17 = vmul.f32 %v3603_v33, %v4226_v12  ;;  %v3697_v41 = vmul.f32 %v3607_v18, %v4227_v35 }
 0x186   :  { %v3699_v30 = vadd.f32 %v1614_v61, %v1613_v54  ;;  %v3703_v9 = vmul.f32 %v3615_v27, %v4226_v12  ;;  %v3707_v60 = vmul.f32 %v3619_v7, %v4227_v35  ;;  %v3710_v29 = vmul.f32 %v2492_v25, %v4226_v12 }
 0x187   :  { %v3713_v33 = vmul.f32 %v2494_v14, %v4227_v35  ;;  %v1648_v18 = vadd.f32 %v3503_v24, %v3500_v21  ;;  %v1655_v31 = vadd.f32 %v3509_v47, %v3506_v43  ;;  %v1662_v27 = vadd.f32 %v3517_v51, %v3512_v36 }
 0x188   :  { %v1669_v44 = vadd.f32 %v3524_v26, %v3520_v19  ;;  %v1676_v7 = vadd.f32 %v3535_v13, %v3527_v38  ;;  %v1683_v12 = vadd.f32 %v1627_v63, %v3613_v8  ;;  %v1690_v25 = vadd.f32 %v1629_v62, %v1628_v59 }
 0x189   :  { %v1649_v35 = vrot.slane %v1648_v18, 4  ;;  %v1656_v14 = vrot.slane %v1655_v31, 4  ;;  %v1663_v56 = vrot.slane %v1662_v27, 4  ;;  %v1697_v3 = vadd.f32 %v1631_v50, %v1630_v37 }
 0x18a   :  { %v1670_v21 = vrot.slane %v1669_v44, 4  ;;  %v1677_v24 = vrot.slane %v1676_v7, 4  ;;  %v1684_v32 = vrot.slane %v1683_v12, 4  ;;  %v1691_v43 = vrot.slane %v1690_v25, 4 }
 0x18b   :  { %v1650_v47 = vadd.f32 %v1649_v35, %v1648_v18  ;;  %v1657_v4 = vadd.f32 %v1656_v14, %v1655_v31  ;;  %v1664_v36 = vadd.f32 %v1663_v56, %v1662_v27  ;;  %v1698_v51 = vrot.slane %v1697_v3, 4 }
 0x18c   :  { %v1671_v49 = vadd.f32 %v1670_v21, %v1669_v44  ;;  %v1678_v19 = vadd.f32 %v1677_v24, %v1676_v7  ;;  %v1685_v26 = vadd.f32 %v1684_v32, %v1683_v12  ;;  %v1692_v45 = vadd.f32 %v1691_v43, %v1690_v25 }
 0x18d   :  { %v1651_v38 = vrot.slane %v1650_v47, 2  ;;  %v1658_v13 = vrot.slane %v1657_v4, 2  ;;  %v1665_v8 = vrot.slane %v1664_v36, 2  ;;  %v1699_v59 = vadd.f32 %v1698_v51, %v1697_v3 }
 0x18e   :  { %v1672_v63 = vrot.slane %v1671_v49, 2  ;;  %v1679_v42 = vrot.slane %v1678_v19, 2  ;;  %v1686_v62 = vrot.slane %v1685_v26, 2  ;;  %v1693_v2 = vrot.slane %v1692_v45, 2 }
 0x18f   :  { %v1652_v16 = vadd.f32 %v1651_v38, %v1650_v47  ;;  %v1659_v37 = vadd.f32 %v1658_v13, %v1657_v4  ;;  %v1666_v1 = vadd.f32 %v1665_v8, %v1664_v36  ;;  %v1700_v50 = vrot.slane %v1699_v59, 2 }
 0x190   :  { %v1673_v22 = vadd.f32 %v1672_v63, %v1671_v49  ;;  %v1680_v54 = vadd.f32 %v1679_v42, %v1678_v19  ;;  %v1687_v61 = vadd.f32 %v1686_v62, %v1685_v26  ;;  %v1694_v18 = vadd.f32 %v1693_v2, %v1692_v45 }
 0x191   :  { %v1653_v31 = vrot.slane %v1652_v16, 1  ;;  %v1660_v27 = vrot.slane %v1659_v37, 1  ;;  %v1667_v44 = vrot.slane %v1666_v1, 1  ;;  %v1701_v7 = vadd.f32 %v1700_v50, %v1699_v59 }
 0x192   :  { %v1674_v12 = vrot.slane %v1673_v22, 1  ;;  %v1681_v25 = vrot.slane %v1680_v54, 1  ;;  %v1688_v35 = vrot.slane %v1687_v61, 1  ;;  %v1695_v14 = vrot.slane %v1694_v18, 1 }
 0x193   :  { %v3726_v56 = vadd.f32 %v1653_v31, %v1652_v16  ;;  %v3728_v3 = vadd.f32 %v1660_v27, %v1659_v37  ;;  %v3730_v21 = vadd.f32 %v1667_v44, %v1666_v1  ;;  %v1702_v24 = vrot.slane %v1701_v7, 1 }
 0x194   :  { %v3732_v32 = vadd.f32 %v1674_v12, %v1673_v22  ;;  %v3734_v43 = vadd.f32 %v1681_v25, %v1680_v54  ;;  %v3736_v47 = vadd.f32 %v1688_v35, %v1687_v61  ;;  %v3738_v4 = vadd.f32 %v1695_v14, %v1694_v18 }
 0x195   :  { %v3740_v36 = vadd.f32 %v1702_v24, %v1701_v7  ;;  %v1704_v51 = vadd.f32 %v3653_v11, %v3649_v15  ;;  %v1711_v49 = vadd.f32 %v3663_v40, %v3657_v57  ;;  %v1718_v19 = vadd.f32 %v3671_v0, %v3667_v53 }
 0x196   :  { %v1725_v26 = vadd.f32 %v3681_v20, %v3677_v28  ;;  %v1732_v45 = vadd.f32 %v3689_v34, %v3685_v5  ;;  %v1739_v38 = vadd.f32 %v3697_v41, %v3693_v17  ;;  %v1746_v13 = vadd.f32 %v3707_v60, %v3703_v9 }
 0x197   :  { %v1705_v8 = vrot.slane %v1704_v51, 4  ;;  %v1712_v15 = vrot.slane %v1711_v49, 4  ;;  %v1719_v11 = vrot.slane %v1718_v19, 4  ;;  %v1753_v57 = vadd.f32 %v3713_v33, %v3710_v29 }
 0x198   :  { %v1726_v40 = vrot.slane %v1725_v26, 4  ;;  %v1733_v53 = vrot.slane %v1732_v45, 4  ;;  %v1740_v0 = vrot.slane %v1739_v38, 4  ;;  %v1747_v59 = vrot.slane %v1746_v13, 4 }
 0x199   :  { %v1706_v28 = vadd.f32 %v1705_v8, %v1704_v51  ;;  %v1713_v20 = vadd.f32 %v1712_v15, %v1711_v49  ;;  %v1720_v63 = vadd.f32 %v1719_v11, %v1718_v19  ;;  %v1754_v5 = vrot.slane %v1753_v57, 4 }
 0x19a   :  { %v1727_v34 = vadd.f32 %v1726_v40, %v1725_v26  ;;  %v1734_v42 = vadd.f32 %v1733_v53, %v1732_v45  ;;  %v1741_v17 = vadd.f32 %v1740_v0, %v1739_v38  ;;  %v1748_v41 = vadd.f32 %v1747_v59, %v1746_v13  ;;  %v4236_v40 = vld [vmem:[#allocation38_spill] sm:$0xff]  ;;  %v4237_v0 = vld [vmem:[#allocation39_spill] sm:$0xff] }
 0x19b   :  { %v1707_v62 = vrot.slane %v1706_v28, 2  ;;  %v1714_v9 = vrot.slane %v1713_v20, 2  ;;  %v1721_v60 = vrot.slane %v1720_v63, 2  ;;  %v1755_v2 = vadd.f32 %v1754_v5, %v1753_v57  ;;  %v4235_v57 = vld [vmem:[#allocation37_spill] sm:$0xff] }
 0x19c   :  { %v1728_v16 = vrot.slane %v1727_v34, 2  ;;  %v1735_v37 = vrot.slane %v1734_v42, 2  ;;  %v1742_v1 = vrot.slane %v1741_v17, 2  ;;  %v1749_v29 = vrot.slane %v1748_v41, 2  ;;  %v4240_v5 = vld [vmem:[#allocation17_spill] sm:$0xff] }
 0x19d   :  { %v1708_v33 = vadd.f32 %v1707_v62, %v1706_v28  ;;  %v1715_v50 = vadd.f32 %v1714_v9, %v1713_v20  ;;  %v1722_v22 = vadd.f32 %v1721_v60, %v1720_v63  ;;  %v1756_v54 = vrot.slane %v1755_v2, 2  ;;  %v4238_v28 = vld [vmem:[#allocation36_spill] sm:$0xff] }
 0x19e   :  { %v1729_v61 = vadd.f32 %v1728_v16, %v1727_v34  ;;  %v1736_v18 = vadd.f32 %v1735_v37, %v1734_v42  ;;  %v1743_v31 = vadd.f32 %v1742_v1, %v1741_v17  ;;  %v1750_v27 = vadd.f32 %v1749_v29, %v1748_v41  ;;  %v4239_v20 = vld [vmem:[#allocation40_spill] sm:$0xff]  ;;  %v4242_v17 = vld [vmem:[#allocation33_spill] sm:$0xff]  ;;  %v4246_v37 = vld [vmem:[#allocation30_spill] sm:$0xff] }
 0x19f   :  { %v1709_v44 = vrot.slane %v1708_v33, 1  ;;  %v1716_v7 = vrot.slane %v1715_v50, 1  ;;  %v1723_v12 = vrot.slane %v1722_v22, 1  ;;  %v1757_v25 = vadd.f32 %v1756_v54, %v1755_v2  ;;  %v4243_v41 = vld [vmem:[#allocation41_spill] sm:$0xff]  ;;  %v4247_v1 = vld [vmem:[#allocation42_spill] sm:$0xff]  ;;  %v4250_v54 = vld [vmem:[#allocation19_spill] sm:$0xff] }
 0x1a0   :  { %v1730_v35 = vrot.slane %v1729_v61, 1  ;;  %v1737_v14 = vrot.slane %v1736_v18, 1  ;;  %v1744_v24 = vrot.slane %v1743_v31, 1  ;;  %v1751_v51 = vrot.slane %v1750_v27, 1 }
 0x1a1   :  { %v3758_v49 = vadd.f32 %v1709_v44, %v1708_v33  ;;  %v3760_v19 = vadd.f32 %v1716_v7, %v1715_v50  ;;  %v3762_v26 = vadd.f32 %v1723_v12, %v1722_v22  ;;  %v1758_v45 = vrot.slane %v1757_v25, 1  ;;  %v4248_v33 = vld [vmem:[#allocation18_spill] sm:$0xff]  ;;  %v4253_v7 = vld [vmem:[#allocation20_spill] sm:$0xff] }
 0x1a2   :  { %v3764_v38 = vadd.f32 %v1730_v35, %v1729_v61  ;;  %v3766_v13 = vadd.f32 %v1737_v14, %v1736_v18  ;;  %v3768_v8 = vadd.f32 %v1744_v24, %v1743_v31  ;;  %v3770_v15 = vadd.f32 %v1751_v51, %v1750_v27  ;;  %v4251_v31 = vld [vmem:[#allocation45_spill] sm:$0xff]  ;;  %v4252_v27 = vld [vmem:[#allocation43_spill] sm:$0xff]  ;;  %v4256_v51 = vld [vmem:[#allocation46_spill] sm:$0xff] }
 0x1a3   :  { %v3772_v11 = vadd.f32 %v1758_v45, %v1757_v25  ;;  %2495 = vrcp.f32 %v3548_v6  ;;  %v1877_v53 = vsel %vm1876_vm0, %v4236_v40, %v4235_v57  ;;  %v4241_v34 = vrot.slane %v4240_v5, 5  ;;  %v4254_v25 = vld [vmem:[#allocation16_spill] sm:$0xff]  ;;  %v4255_v35 = vld [vmem:[#allocation21_spill] sm:$0xff] }
 0x1a4   :  { %2497 = vrcp.f32 %v3556_v46  ;;  %v1879_v59 = vsel %vm1878_vm1, %v4237_v0, %v1877_v53  ;;  %v4244_v9 = vrot.slane %v4240_v5, 6  ;;  %v4245_v2 = vrot.slane %v4240_v5, 7  ;;  %v4257_v57 = vld [vmem:[#allocation44_spill] sm:$0xff] }
 0x1a5   :  { %2499 = vrcp.f32 %v3566_v52  ;;  %v1881_v63 = vsel %vm1880_vm2, %v4239_v20, %v1879_v59  ;;  %v621_v42 = vperm.slane %v4241_v34, 0  ;;  %v4249_v50 = vperm.slane %v4240_v5, 0  ;;  %v4258_v59 = vld [vmem:[#allocation47_spill] sm:$0xff] }
 0x1a6   :  { %2501 = vrcp.f32 %v4238_v28  ;;  %v1883_v62 = vsel %vm1882_vm3, %v4243_v41, %v1881_v63  ;;  %v3792_v60 = vperm.slane %v4244_v9, 0  ;;  %v3796_v16 = vperm.slane %v4245_v2, 0  ;;  %v4259_v63 = vld [vmem:[#allocation22_spill] sm:$0xff] }
 0x1a7   :  { %2503 = vrcp.f32 %v4242_v17  ;;  %v1885_v29 = vsel %vm1884_vm4, %v4247_v1, %v1883_v62  ;;  %v3804_v22 = vmul.f32 %v4249_v50, %v4248_v33  ;;  %v3808_v61 = vmul.f32 %v4250_v54, %v4248_v33 }
 0x1a8   :  { %2505 = vrcp.f32 %v4246_v37  ;;  %v1887_v44 = vsel %vm1886_vm5, %v4252_v27, %v1885_v29  ;;  %v3815_v12 = vmul.f32 %v4253_v7, %v4248_v33  ;;  %v3819_v14 = vmul.f32 %v4255_v35, %v4254_v25 }
 0x1a9   :  { %v2496_v18 = vpop.eup %2495  ;;  %2507 = vrcp.f32 %v4251_v31  ;;  %v1889_v40 = vsel %vm1888_vm6, %v4257_v57, %v1887_v44  ;;  %v3827_v53 = vmul.f32 %v4255_v35, %v4248_v33  ;;  %v3833_v5 = vmul.f32 %v4259_v63, %v4254_v25 }
 0x1aa   :  { %v2498_v24 = vpop.eup %2497  ;;  %2509 = vrcp.f32 %v4256_v51  ;;  %v1776_v45 = vmul.f32 %v2496_v18, %v3548_v6  ;;  %1915 = vmatmul.f32.vlgmr.msrb.gmra.mxu0 %v1889_v40  ;;  %v3837_v6 = vmul.f32 %v4259_v63, %v4248_v33  ;;  %v3842_v9 = vmul.f32 %v621_v42, %v4254_v25 }
 0x1ab   :  { %v2500_v0 = vpop.eup %2499  ;;  %2511 = vrcp.f32 %v4258_v59  ;;  %v1777_v20 = vmul.f32 %v2498_v24, %v3556_v46  ;;  %v3847_v29 = vmul.f32 %v621_v42, %v4248_v33 }
 0x1ac   :  { %v2502_v34 = vpop.eup %2501  ;;  %2513 = vrcp.f32 %v3631_v48  ;;  %v1778_v41 = vmul.f32 %v2500_v0, %v3566_v52  ;;  %v1792_v62 = vsub.f32 2.0, %v1776_v45  ;;  %4260 = vst [vmem:[#allocation48_spill] sm:$0xff] %v3842_v9 }
 0x1ad   :  { %v2504_v2 = vpop.eup %2503  ;;  %2515 = vrcp.f32 %v3635_v55  ;;  %v1779_v46 = vmul.f32 %v2502_v34, %v4238_v28  ;;  %v1793_v1 = vsub.f32 2.0, %v1777_v20  ;;  %4261 = vst [vmem:[#allocation49_spill] sm:$0xff] %v3847_v29 }
 0x1ae   :  { %v2506_v50 = vpop.eup %2505  ;;  %2517 = vrcp.f32 %v3639_v23  ;;  %v1780_v54 = vmul.f32 %v2504_v2, %v4242_v17  ;;  %v1794_v27 = vsub.f32 2.0, %v1778_v41  ;;  %v1808_v52 = vmul.f32 %v2496_v18, %v1792_v62 }
 0x1af   :  { %v2508_v44 = vpop.eup %2507  ;;  %2519 = vrcp.f32 %v3643_v58  ;;  %v1781_v7 = vmul.f32 %v2506_v50, %v4246_v37  ;;  %v1795_v35 = vsub.f32 2.0, %v1779_v46  ;;  %v1809_v45 = vmul.f32 %v2498_v24, %v1793_v1 }
 0x1b0   :  { %v2510_v57 = vpop.eup %2509  ;;  %2521 = vrcp.f32 %v3659_v39  ;;  %v1782_v28 = vmul.f32 %v2508_v44, %v4251_v31  ;;  %v1796_v42 = vsub.f32 2.0, %v1780_v54  ;;  %v1810_v40 = vmul.f32 %v2500_v0, %v1794_v27 }
 0x1b1   :  { %v2512_v20 = vpop.eup %2511  ;;  %2523 = vrcp.f32 %v3673_v10  ;;  %v1783_v17 = vmul.f32 %v2510_v57, %v4256_v51  ;;  %v1797_v18 = vsub.f32 2.0, %v1781_v7  ;;  %v1811_v63 = vmul.f32 %v2502_v34, %v1795_v35 }
 0x1b2   :  { %v2514_v41 = vpop.eup %2513  ;;  %2525 = vrcp.f32 %v3699_v30  ;;  %v1784_v37 = vmul.f32 %v2512_v20, %v4258_v59  ;;  %v1798_v24 = vsub.f32 2.0, %v1782_v28  ;;  %v1812_v62 = vmul.f32 %v2504_v2, %v1796_v42 }
 0x1b3   :  { %v2516_v46 = vpop.eup %2515  ;;  %v1785_v1 = vmul.f32 %v2514_v41, %v3631_v48  ;;  %v1799_v31 = vsub.f32 2.0, %v1783_v17  ;;  %v1813_v54 = vmul.f32 %v2506_v50, %v1797_v18  ;;  %v1824_v0 = vmul.f32 %v1808_v52, %v3726_v56 }
 0x1b4   :  { %v2518_v27 = vpop.eup %2517  ;;  %v1786_v9 = vmul.f32 %v2516_v46, %v3635_v55  ;;  %v1800_v51 = vsub.f32 2.0, %v1784_v37  ;;  %v1814_v7 = vmul.f32 %v2508_v44, %v1798_v24  ;;  %v1825_v34 = vmul.f32 %v1809_v45, %v3728_v3 }
 0x1b5   :  { %v2520_v35 = vpop.eup %2519  ;;  %v1787_v29 = vmul.f32 %v2518_v27, %v3639_v23  ;;  %v1801_v59 = vsub.f32 2.0, %v1785_v1  ;;  %v1815_v28 = vmul.f32 %v2510_v57, %v1799_v31  ;;  %v1826_v2 = vmul.f32 %v1810_v40, %v3730_v21 }
 0x1b6   :  { %v2522_v42 = vpop.eup %2521  ;;  %v1788_v48 = vmul.f32 %v2520_v35, %v3643_v58  ;;  %v1802_v50 = vsub.f32 2.0, %v1786_v9  ;;  %v1816_v17 = vmul.f32 %v2512_v20, %v1800_v51  ;;  %v1827_v56 = vmul.f32 %v1811_v63, %v3732_v32 }
 0x1b7   :  { %v2524_v52 = vpop.eup %2523  ;;  %v1789_v55 = vmul.f32 %v2522_v42, %v3659_v39  ;;  %v1803_v44 = vsub.f32 2.0, %v1787_v29  ;;  %v1817_v18 = vmul.f32 %v2514_v41, %v1801_v59  ;;  %v1828_v3 = vmul.f32 %v1812_v62, %v3734_v43  ;;  %v4263_v59 = vld [vmem:[#allocation24_spill] sm:$0xff] }
 0x1b8   :  { %v2526_v45 = vpop.eup %2525  ;;  %v1790_v23 = vmul.f32 %v2524_v52, %v3673_v10  ;;  %v1804_v57 = vsub.f32 2.0, %v1788_v48  ;;  %v1818_v37 = vmul.f32 %v2516_v46, %v1802_v50  ;;  %v1829_v21 = vmul.f32 %v1813_v54, %v3736_v47 }
 0x1b9   :  { %v1791_v58 = vmul.f32 %v2526_v45, %v3699_v30  ;;  %v1805_v9 = vsub.f32 2.0, %v1789_v55  ;;  %v1819_v40 = vmul.f32 %v2518_v27, %v1803_v44  ;;  %v1830_v32 = vmul.f32 %v1814_v7, %v3738_v4  ;;  %v4265_v44 = vld [vmem:[#allocation49_spill] sm:$0xff] }
 0x1ba   :  { %v1806_v20 = vsub.f32 2.0, %v1790_v23  ;;  %v1820_v63 = vmul.f32 %v2520_v35, %v1804_v57  ;;  %v1831_v39 = vmul.f32 %v1815_v28, %v3740_v36  ;;  %v1832_v29 = vmul.f32 %v1816_v17, %v3758_v49  ;;  %v4262_v35 = vld [vmem:[#allocation23_spill] sm:$0xff] }
 0x1bb   :  { %v1807_v43 = vsub.f32 2.0, %v1791_v58  ;;  %v1821_v41 = vmul.f32 %v2522_v42, %v1805_v9  ;;  %v1833_v10 = vmul.f32 %v1817_v18, %v3760_v19  ;;  %v1834_v24 = vmul.f32 %v1818_v37, %v3762_v26  ;;  %v4264_v42 = vld [vmem:[#allocation25_spill] sm:$0xff]  ;;  %v4266_v18 = vld [vmem:[#allocation48_spill] sm:$0xff] }
 0x1bc   :  { %v1822_v62 = vmul.f32 %v2524_v52, %v1806_v20  ;;  %v1835_v47 = vmul.f32 %v1819_v40, %v3764_v38  ;;  %v1836_v30 = vmul.f32 %v1820_v63, %v3766_v13  ;;  %v1940_v46 = vsel %vm1876_vm0, %v1825_v34, %v1824_v0 }
 0x1bd   :  { %v1823_v4 = vmul.f32 %v2526_v45, %v1807_v43  ;;  %v1837_v1 = vmul.f32 %v1821_v41, %v3768_v8  ;;  %v1941_v36 = vsel %vm1878_vm1, %v1826_v2, %v1940_v46  ;;  %v1947_v49 = vsel %vm1876_vm0, %v1833_v10, %v1832_v29 }
 0x1be   :  { %v1838_v31 = vmul.f32 %v1822_v62, %v3770_v15  ;;  %v1942_v19 = vsel %vm1880_vm2, %v1827_v56, %v1941_v36  ;;  %v1948_v26 = vsel %vm1878_vm1, %v1834_v24, %v1947_v49  ;;  %v3888_v38 = vmul.f32 %v3792_v60, %v4254_v25 }
 0x1bf   :  { %v1839_v13 = vmul.f32 %v1823_v4, %v3772_v11  ;;  %v1943_v54 = vsel %vm1882_vm3, %v1828_v3, %v1942_v19  ;;  %v1949_v8 = vsel %vm1880_vm2, %v1835_v47, %v1948_v26  ;;  %v3895_v0 = vmul.f32 %v3792_v60, %v4248_v33 }
 0x1c0   :  { %v1944_v15 = vsel %vm1884_vm4, %v1829_v21, %v1943_v54  ;;  %v1950_v27 = vsel %vm1882_vm3, %v1836_v30, %v1949_v8  ;;  %v3901_v51 = vmul.f32 %v3796_v16, %v4254_v25  ;;  %v3905_v7 = vmul.f32 %v3796_v16, %v4248_v33 }
 0x1c1   :  { %v1945_v11 = vsel %vm1886_vm5, %v1830_v32, %v1944_v15  ;;  %v1951_v34 = vsel %vm1884_vm4, %v1837_v1, %v1950_v27  ;;  %v728_v60 = vmax.f32 %v4262_v35, %v3804_v22  ;;  %v735_v28 = vmax.f32 %v4263_v59, %v3808_v61 }
 0x1c2   :  { %v3914_v2 = vsel %vm1888_vm6, %v1831_v39, %v1945_v11  ;;  %v1952_v25 = vsel %vm1886_vm5, %v1838_v31, %v1951_v34  ;;  %v742_v48 = vmax.f32 %v4264_v42, %v3815_v12  ;;  %v749_v16 = vmax.f32 %v3819_v14, %v3827_v53 }
 0x1c3   :  { %v3922_v33 = vsel %vm1888_vm6, %v1839_v13, %v1952_v25  ;;  %v729_v50 = vrot.slane %v728_v60, 4  ;;  %v736_v17 = vrot.slane %v735_v28, 4  ;;  %v756_v56 = vmax.f32 %v3833_v5, %v3837_v6 }
 0x1c4   :  { %v743_v52 = vrot.slane %v742_v48, 4  ;;  %v750_v55 = vrot.slane %v749_v16, 4  ;;  %v763_v3 = vmax.f32 %v4266_v18, %v4265_v44  ;;  %v770_v45 = vmax.f32 %v3888_v38, %v3895_v0  ;;  %2052 = vrot.lane.b32.xlu2 %v3922_v33, %s2742_s12  ;;  %2021 = vrot.lane.b32.xlu1 %v3922_v33, %s2743_s13 }
 0x1c5   :  { %v730_v23 = vmax.f32 %v728_v60, %v729_v50  ;;  %v737_v57 = vmax.f32 %v735_v28, %v736_v17  ;;  %v757_v37 = vrot.slane %v756_v56, 4  ;;  %v777_v21 = vmax.f32 %v3901_v51, %v3905_v7  ;;  %1990 = vrot.lane.b32.xlu0 %v3922_v33, %s2744_s14  ;;  %2326 = vmatpush.xpose.msk.msrb.mxu1 %vm1954_vm7, %v3922_v33 }
 0x1c6   :  { %v744_v58 = vmax.f32 %v742_v48, %v743_v52  ;;  %v751_v9 = vmax.f32 %v749_v16, %v750_v55  ;;  %v764_v40 = vrot.slane %v763_v3, 4  ;;  %v771_v32 = vrot.slane %v770_v45, 4  ;;  %2358 = vmatpush.xpose.msk.msrb.mxu3 %vm1954_vm7, %v3922_v33 }
 0x1c7   :  { %v731_v20 = vrot.slane %v730_v23, 2  ;;  %v738_v63 = vrot.slane %v737_v57, 2  ;;  %v758_v39 = vmax.f32 %v756_v56, %v757_v37  ;;  %v778_v29 = vrot.slane %v777_v21, 4 }
 0x1c8   :  { %v745_v43 = vrot.slane %v744_v58, 2  ;;  %v752_v41 = vrot.slane %v751_v9, 2  ;;  %v765_v10 = vmax.f32 %v763_v3, %v764_v40  ;;  %v772_v24 = vmax.f32 %v770_v45, %v771_v32 }
 0x1c9   :  { %v732_v62 = vmax.f32 %v730_v23, %v731_v20  ;;  %v739_v47 = vmax.f32 %v737_v57, %v738_v63  ;;  %v759_v30 = vrot.slane %v758_v39, 2  ;;  %v779_v46 = vmax.f32 %v777_v21, %v778_v29  ;;  %2327 = vmatpush.xpose.msk.msrb.mxu1 %vm1954_vm7, %v3914_v2 }
 0x1ca   :  { %v746_v4 = vmax.f32 %v744_v58, %v745_v43  ;;  %v753_v1 = vmax.f32 %v751_v9, %v752_v41  ;;  %v766_v36 = vrot.slane %v765_v10, 2  ;;  %v773_v49 = vrot.slane %v772_v24, 2  ;;  %2359 = vmatpush.xpose.msk.msrb.mxu3 %vm1954_vm7, %v3914_v2 }
 0x1cb   :  { %v733_v31 = vrot.slane %v732_v62, 1  ;;  %v740_v19 = vrot.slane %v739_v47, 1  ;;  %v760_v26 = vmax.f32 %v758_v39, %v759_v30  ;;  %v780_v13 = vrot.slane %v779_v46, 2 }
 0x1cc   :  { %v747_v54 = vrot.slane %v746_v4, 1  ;;  %v754_v8 = vrot.slane %v753_v1, 1  ;;  %v767_v15 = vmax.f32 %v765_v10, %v766_v36  ;;  %2083 = vrot.lane.b32.xlu2 %v3922_v33, %s2745_s15  ;;  %2019 = vrot.lane.b32.xlu1 %v3914_v2, %s2743_s13  ;;  %v774_v28 = vmax.f32 %v772_v24, %v773_v49 }
 0x1cd   :  { %v734_v27 = vmax.f32 %v732_v62, %v733_v31  ;;  %v741_v11 = vmax.f32 %v739_v47, %v740_v19  ;;  %1988 = vrot.lane.b32.xlu0 %v3914_v2, %s2744_s14  ;;  %v761_v60 = vrot.slane %v760_v26, 1  ;;  %v781_v48 = vmax.f32 %v779_v46, %v780_v13  ;;  %v4267_v31 = vld [vmem:[#allocation34_spill] sm:$0xff] }
 0x1ce   :  { %v748_v34 = vmax.f32 %v746_v4, %v747_v54  ;;  %v768_v25 = vrot.slane %v767_v15, 1  ;;  %v755_v16 = vmax.f32 %v753_v1, %v754_v8  ;;  %v775_v3 = vrot.slane %v774_v28, 1 }
 0x1cf   :  { %v800_v50 = vsub.f32 %v4262_v35, %v734_v27  ;;  %v801_v17 = vsub.f32 %v3804_v22, %v734_v27  ;;  %v802_v56 = vsub.f32 %v4263_v59, %v741_v11  ;;  %v803_v52 = vsub.f32 %v3808_v61, %v741_v11 }
 0x1d0   :  { %v762_v55 = vmax.f32 %v760_v26, %v761_v60  ;;  %v804_v45 = vsub.f32 %v4264_v42, %v748_v34  ;;  %v769_v23 = vmax.f32 %v767_v15, %v768_v25  ;;  %v782_v57 = vrot.slane %v781_v48, 1  ;;  %v4268_v60 = vld [vmem:[#allocation31_spill] sm:$0xff] }
 0x1d1   :  { %v805_v37 = vsub.f32 %v3815_v12, %v748_v34  ;;  %v806_v21 = vsub.f32 %v3819_v14, %v755_v16  ;;  %v848_v58 = vmul.f32 1.442695, %v800_v50  ;;  %v850_v9 = vmul.f32 1.442695, %v801_v17 }
 0x1d2   :  { %v852_v40 = vmul.f32 1.442695, %v802_v56  ;;  %v807_v22 = vsub.f32 %v3827_v53, %v755_v16  ;;  %v854_v61 = vmul.f32 1.442695, %v803_v52  ;;  %v776_v35 = vmax.f32 %v774_v28, %v775_v3 }
 0x1d3   :  { %v808_v12 = vsub.f32 %v3833_v5, %v762_v55  ;;  %2527 = vpow2.f32 %v848_v58  ;;  %v856_v14 = vmul.f32 1.442695, %v804_v45  ;;  %v809_v59 = vsub.f32 %v3837_v6, %v762_v55 }
 0x1d4   :  { %2114 = vrot.lane.b32.xlu2 %v3922_v33, %s2735_s11  ;;  %2081 = vrot.lane.b32.xlu1 %v3914_v2, %s2745_s15  ;;  %2529 = vpow2.f32 %v850_v9  ;;  %v858_v42 = vmul.f32 1.442695, %v805_v37  ;;  %v783_v32 = vmax.f32 %v781_v48, %v782_v57  ;;  %v810_v20 = vsub.f32 %v4266_v18, %v769_v23 }
 0x1d5   :  { %2050 = vrot.lane.b32.xlu0 %v3914_v2, %s2742_s12  ;;  %2531 = vpow2.f32 %v852_v40  ;;  %v860_v63 = vmul.f32 1.442695, %v806_v21  ;;  %v811_v53 = vsub.f32 %v4265_v44, %v769_v23  ;;  %v862_v39 = vmul.f32 1.442695, %v807_v22 }
 0x1d6   :  { %2533 = vpow2.f32 %v854_v61  ;;  %v812_v29 = vsub.f32 %v3888_v38, %v776_v35  ;;  %v864_v43 = vmul.f32 1.442695, %v808_v12  ;;  %v813_v5 = vsub.f32 %v3895_v0, %v776_v35 }
 0x1d7   :  { %2535 = vpow2.f32 %v856_v14  ;;  %v866_v41 = vmul.f32 1.442695, %v809_v59  ;;  %v814_v10 = vsub.f32 %v3901_v51, %v783_v32  ;;  %v868_v24 = vmul.f32 1.442695, %v810_v20 }
 0x1d8   :  { %2537 = vpow2.f32 %v858_v42  ;;  %v815_v44 = vsub.f32 %v3905_v7, %v783_v32  ;;  %v870_v0 = vmul.f32 1.442695, %v811_v53  ;;  %v872_v51 = vmul.f32 1.442695, %v812_v29 }
 0x1d9   :  { %v2528_v6 = vpop.eup %2527  ;;  %2539 = vpow2.f32 %v860_v63  ;;  %v874_v30 = vmul.f32 1.442695, %v813_v5  ;;  %v876_v4 = vmul.f32 1.442695, %v814_v10 }
 0x1da   :  { %v2530_v38 = vpop.eup %2529  ;;  %2541 = vpow2.f32 %v862_v39  ;;  %v878_v7 = vmul.f32 1.442695, %v815_v44  ;;  %v1008_v28 = vmul.f32 %v2528_v6, %v4268_v60 }
 0x1db   :  { %v2532_v18 = vpop.eup %2531  ;;  %2543 = vpow2.f32 %v864_v43  ;;  %v936_v62 = vadd.f32 %v2530_v38, %v2528_v6  ;;  %v1009_v19 = vmul.f32 %v2530_v38, %v4267_v31 }
 0x1dc   :  { %2145 = vrot.lane.b32.xlu2 %v3922_v33, %s2746_s16  ;;  %2176 = vrot.lane.b32.xlu1 %v3922_v33, %s2747_s17  ;;  %v2534_v47 = vpop.eup %2533  ;;  %2545 = vpow2.f32 %v866_v41  ;;  %v1010_v37 = vmul.f32 %v2532_v18, %v4268_v60 }
 0x1dd   :  { %2112 = vrot.lane.b32.xlu0 %v3914_v2, %s2735_s11  ;;  %v2536_v46 = vpop.eup %2535  ;;  %2547 = vpow2.f32 %v868_v24  ;;  %v937_v1 = vrot.slane %v936_v62, 4  ;;  %v943_v36 = vadd.f32 %v2534_v47, %v2532_v18  ;;  %v1080_v52 = vadd.f32 %v1009_v19, %v1008_v28 }
 0x1de   :  { %v2538_v49 = vpop.eup %2537  ;;  %2549 = vpow2.f32 %v870_v0  ;;  %v1011_v21 = vmul.f32 %v2534_v47, %v4267_v31  ;;  %v1012_v61 = vmul.f32 %v2536_v46, %v4268_v60 }
 0x1df   :  { %v2540_v26 = vpop.eup %2539  ;;  %2551 = vpow2.f32 %v872_v51  ;;  %v938_v13 = vadd.f32 %v937_v1, %v936_v62  ;;  %v944_v54 = vrot.slane %v943_v36, 4  ;;  %v950_v8 = vadd.f32 %v2538_v49, %v2536_v46 }
 0x1e0   :  { %v2542_v15 = vpop.eup %2541  ;;  %2553 = vpow2.f32 %v874_v30  ;;  %v1013_v14 = vmul.f32 %v2538_v49, %v4267_v31  ;;  %v1014_v59 = vmul.f32 %v2540_v26, %v4268_v60  ;;  %v1081_v42 = vrot.slane %v1080_v52, 4 }
 0x1e1   :  { %v2544_v27 = vpop.eup %2543  ;;  %2555 = vpow2.f32 %v876_v4  ;;  %v945_v11 = vadd.f32 %v944_v54, %v943_v36  ;;  %v951_v34 = vrot.slane %v950_v8, 4  ;;  %v939_v48 = vrot.slane %v938_v13, 2 }
 0x1e2   :  { %v2546_v25 = vpop.eup %2545  ;;  %2557 = vpow2.f32 %v878_v7  ;;  %v957_v16 = vadd.f32 %v2542_v15, %v2540_v26  ;;  %v1015_v43 = vmul.f32 %v2542_v15, %v4267_v31  ;;  %v1016_v5 = vmul.f32 %v2544_v27, %v4268_v60 }
 0x1e3   :  { %v2548_v50 = vpop.eup %2547  ;;  %v952_v17 = vadd.f32 %v951_v34, %v950_v8  ;;  %v964_v56 = vadd.f32 %v2546_v25, %v2544_v27  ;;  %v946_v3 = vrot.slane %v945_v11, 2  ;;  %v940_v9 = vadd.f32 %v939_v48, %v938_v13 }
 0x1e4   :  { %2143 = vrot.lane.b32.xlu1 %v3914_v2, %s2746_s16  ;;  %v2550_v55 = vpop.eup %2549  ;;  %v958_v45 = vrot.slane %v957_v16, 4  ;;  %v1017_v41 = vmul.f32 %v2546_v25, %v4267_v31  ;;  %v1018_v18 = vmul.f32 %v2548_v50, %v4268_v60  ;;  %v1082_v51 = vadd.f32 %v1081_v42, %v1080_v52 }
 0x1e5   :  { %2174 = vrot.lane.b32.xlu0 %v3914_v2, %s2747_s17  ;;  %v2552_v23 = vpop.eup %2551  ;;  %v965_v57 = vrot.slane %v964_v56, 4  ;;  %v953_v40 = vrot.slane %v952_v17, 2  ;;  %v971_v22 = vadd.f32 %v2550_v55, %v2548_v50  ;;  %v947_v20 = vadd.f32 %v946_v3, %v945_v11 }
 0x1e6   :  { %v2554_v58 = vpop.eup %2553  ;;  %v959_v12 = vadd.f32 %v958_v45, %v957_v16  ;;  %v941_v6 = vrot.slane %v940_v9, 1  ;;  %v1019_v46 = vmul.f32 %v2550_v55, %v4267_v31  ;;  %v1087_v36 = vadd.f32 %v1011_v21, %v1010_v37 }
 0x1e7   :  { %v2556_v35 = vpop.eup %2555  ;;  %v966_v63 = vadd.f32 %v965_v57, %v964_v56  ;;  %v972_v53 = vrot.slane %v971_v22, 4  ;;  %v978_v39 = vadd.f32 %v2554_v58, %v2552_v23  ;;  %v954_v10 = vadd.f32 %v953_v40, %v952_v17 }
 0x1e8   :  { %v2558_v32 = vpop.eup %2557  ;;  %v960_v44 = vrot.slane %v959_v12, 2  ;;  %v948_v62 = vrot.slane %v947_v20, 1  ;;  %v1094_v49 = vadd.f32 %v1013_v14, %v1012_v61  ;;  %v3988_v7 = vadd.f32 %v941_v6, %v940_v9 }
 0x1e9   :  { %v985_v29 = vadd.f32 %v2558_v32, %v2556_v35  ;;  %v973_v24 = vadd.f32 %v972_v53, %v971_v22  ;;  %v979_v38 = vrot.slane %v978_v39, 4  ;;  %v967_v47 = vrot.slane %v966_v63, 2 }
 0x1ea   :  { %v955_v19 = vrot.slane %v954_v10, 1  ;;  %v1020_v26 = vmul.f32 %v2552_v23, %v4268_v60  ;;  %v1021_v13 = vmul.f32 %v2554_v58, %v4267_v31  ;;  %v961_v54 = vadd.f32 %v960_v44, %v959_v12 }
 0x1eb   :  { %v986_v0 = vrot.slane %v985_v29, 4  ;;  %v980_v30 = vadd.f32 %v979_v38, %v978_v39  ;;  %v974_v4 = vrot.slane %v973_v24, 2  ;;  %v1088_v15 = vrot.slane %v1087_v36, 4 }
 0x1ec   :  { %v1095_v27 = vrot.slane %v1094_v49, 4  ;;  %v3992_v11 = vadd.f32 %v948_v62, %v947_v20  ;;  %v968_v34 = vadd.f32 %v967_v47, %v966_v63  ;;  %v1022_v28 = vmul.f32 %v2556_v35, %v4268_v60 }
 0x1ed   :  { %v987_v1 = vadd.f32 %v986_v0, %v985_v29  ;;  %v981_v8 = vrot.slane %v980_v30, 2  ;;  %v1101_v25 = vadd.f32 %v1015_v43, %v1014_v59  ;;  %v975_v48 = vadd.f32 %v974_v4, %v973_v24 }
 0x1ee   :  { %v1083_v50 = vrot.slane %v1082_v51, 2  ;;  %v1108_v17 = vadd.f32 %v1017_v41, %v1016_v5  ;;  %v3995_v56 = vadd.f32 %v955_v19, %v954_v10  ;;  %v1023_v52 = vmul.f32 %v2558_v32, %v4267_v31 }
 0x1ef   :  { %v988_v16 = vrot.slane %v987_v1, 2  ;;  %v1089_v55 = vadd.f32 %v1088_v15, %v1087_v36  ;;  %v1102_v3 = vrot.slane %v1101_v25, 4  ;;  %v962_v45 = vrot.slane %v961_v54, 1 }
 0x1f0   :  { %v982_v23 = vadd.f32 %v981_v8, %v980_v30  ;;  %v1096_v57 = vadd.f32 %v1095_v27, %v1094_v49  ;;  %v1109_v37 = vrot.slane %v1108_v17, 4  ;;  %v969_v21 = vrot.slane %v968_v34, 1 }
 0x1f1   :  { %v1103_v58 = vadd.f32 %v1102_v3, %v1101_v25  ;;  %v1115_v9 = vadd.f32 %v1019_v46, %v1018_v18  ;;  %v1122_v40 = vadd.f32 %v1021_v13, %v1020_v26  ;;  %v976_v60 = vrot.slane %v975_v48, 1 }
 0x1f2   :  { %v989_v22 = vadd.f32 %v988_v16, %v987_v1  ;;  %v1084_v61 = vadd.f32 %v1083_v50, %v1082_v51  ;;  %v1110_v35 = vadd.f32 %v1109_v37, %v1108_v17  ;;  %v1090_v12 = vrot.slane %v1089_v55, 2 }
 0x1f3   :  { %v1116_v14 = vrot.slane %v1115_v9, 4  ;;  %v1123_v59 = vrot.slane %v1122_v40, 4  ;;  %v1129_v42 = vadd.f32 %v1023_v52, %v1022_v28  ;;  %v983_v20 = vrot.slane %v982_v23, 1 }
 0x1f4   :  { %v1097_v31 = vrot.slane %v1096_v57, 2  ;;  %v1104_v32 = vrot.slane %v1103_v58, 2  ;;  %2559 = vrcp.f32 %v3988_v7  ;;  %v1111_v63 = vrot.slane %v1110_v35, 2 }
 0x1f5   :  { %v1117_v53 = vadd.f32 %v1116_v14, %v1115_v9  ;;  %v1124_v39 = vadd.f32 %v1123_v59, %v1122_v40  ;;  %v1130_v29 = vrot.slane %v1129_v42, 4  ;;  %v963_v43 = vadd.f32 %v962_v45, %v961_v54 }
 0x1f6   :  { %v970_v5 = vadd.f32 %v969_v21, %v968_v34  ;;  %v990_v41 = vrot.slane %v989_v22, 1  ;;  %2561 = vrcp.f32 %v3992_v11  ;;  %v977_v6 = vadd.f32 %v976_v60, %v975_v48 }
 0x1f7   :  { %v1091_v10 = vadd.f32 %v1090_v12, %v1089_v55  ;;  %v1118_v24 = vrot.slane %v1117_v53, 2  ;;  %v1131_v38 = vadd.f32 %v1130_v29, %v1129_v42  ;;  %v1098_v44 = vadd.f32 %v1097_v31, %v1096_v57 }
 0x1f8   :  { %v1125_v0 = vrot.slane %v1124_v39, 2  ;;  %2563 = vrcp.f32 %v3995_v56  ;;  %v984_v18 = vadd.f32 %v983_v20, %v982_v23  ;;  %v1085_v51 = vrot.slane %v1084_v61, 1 }
 0x1f9   :  { %v1105_v62 = vadd.f32 %v1104_v32, %v1103_v58  ;;  %v1112_v47 = vadd.f32 %v1111_v63, %v1110_v35  ;;  %v991_v46 = vadd.f32 %v990_v41, %v989_v22  ;;  %v1132_v4 = vrot.slane %v1131_v38, 2 }
 0x1fa   :  { %v2560_v30 = vpop.eup %2559  ;;  %2565 = vrcp.f32 %v963_v43  ;;  %v1092_v1 = vrot.slane %v1091_v10, 1  ;;  %v1119_v36 = vadd.f32 %v1118_v24, %v1117_v53  ;;  %v1099_v19 = vrot.slane %v1098_v44, 1 }
 0x1fb   :  { %2567 = vrcp.f32 %v970_v5  ;;  %v1126_v26 = vadd.f32 %v1125_v0, %v1124_v39  ;;  %v1160_v13 = vmul.f32 %v2560_v30, %v3988_v7  ;;  %v1086_v54 = vadd.f32 %v1085_v51, %v1084_v61 }
 0x1fc   :  { %v2562_v49 = vpop.eup %2561  ;;  %2569 = vrcp.f32 %v977_v6  ;;  %v1106_v8 = vrot.slane %v1105_v62, 1  ;;  %v1113_v15 = vrot.slane %v1112_v47, 1  ;;  %v1133_v27 = vadd.f32 %v1132_v4, %v1131_v38 }
 0x1fd   :  { %2571 = vrcp.f32 %v984_v18  ;;  %v1161_v34 = vmul.f32 %v2562_v49, %v3992_v11  ;;  %v1176_v28 = vsub.f32 2.0, %v1160_v13  ;;  %v1093_v25 = vadd.f32 %v1092_v1, %v1091_v10  ;;  %v1922_v13 = vld [vmem:[#allocation10] sm:$0xff] }
 0x1fe   :  { %v2564_v33 = vpop.eup %2563  ;;  %2573 = vrcp.f32 %v991_v46  ;;  %v1120_v48 = vrot.slane %v1119_v36, 1  ;;  %v1100_v50 = vadd.f32 %v1099_v19, %v1098_v44  ;;  %v1127_v17 = vrot.slane %v1126_v26, 1  ;;  %2328 = vmatmul.msk.f32.vlgmr.msrb.gmra.mxu1 %vm1954_vm7, %v1922_v13 }
 0x1ff   :  { %v1162_v7 = vmul.f32 %v2564_v33, %v3995_v56  ;;  %v1177_v52 = vsub.f32 2.0, %v1161_v34  ;;  %v1192_v55 = vmul.f32 %v2560_v30, %v1176_v28  ;;  %v1107_v45 = vadd.f32 %v1106_v8, %v1105_v62 }
 0x200   :  { %v2566_v16 = vpop.eup %2565  ;;  %v1114_v23 = vadd.f32 %v1113_v15, %v1112_v47  ;;  %v1134_v21 = vrot.slane %v1133_v27, 1  ;;  %v1121_v60 = vadd.f32 %v1120_v48, %v1119_v36  ;;  %v1128_v12 = vadd.f32 %v1127_v17, %v1126_v26  ;;  %v1923_v26 = vld [vmem:[#allocation10 + $0x8] sm:$0xff] }
 0x201   :  { %v2568_v3 = vpop.eup %2567  ;;  %v1163_v57 = vmul.f32 %v2566_v16, %v963_v43  ;;  %v1178_v2 = vsub.f32 2.0, %v1162_v7  ;;  %v1193_v9 = vmul.f32 %v2562_v49, %v1177_v52  ;;  %v1208_v11 = vmul.f32 %v1192_v55, %v1086_v54  ;;  %2329 = vmatmul.msk.f32.vlgmr.msrb.gmra.mxu3 %vm1954_vm7, %v1923_v26 }
 0x202   :  { %v2570_v37 = vpop.eup %2569  ;;  %v1164_v58 = vmul.f32 %v2568_v3, %v970_v5  ;;  %v1135_v53 = vadd.f32 %v1134_v21, %v1133_v27 }
 0x203   :  { %v2572_v40 = vpop.eup %2571  ;;  %v1165_v22 = vmul.f32 %v2570_v37, %v977_v6  ;;  %v1179_v61 = vsub.f32 2.0, %v1163_v57  ;;  %v1194_v56 = vmul.f32 %v2564_v33, %v1178_v2  ;;  %v1209_v42 = vmul.f32 %v1193_v9, %v1093_v25 }
 0x204   :  { %v2574_v35 = vpop.eup %2573  ;;  %v1166_v14 = vmul.f32 %v2572_v40, %v984_v18  ;;  %v1180_v59 = vsub.f32 2.0, %v1164_v58 }
 0x205   :  { %v1167_v20 = vmul.f32 %v2574_v35, %v991_v46  ;;  %v1181_v31 = vsub.f32 2.0, %v1165_v22  ;;  %v1195_v32 = vmul.f32 %v2566_v16, %v1179_v61  ;;  %v1210_v63 = vmul.f32 %v1194_v56, %v1100_v50  ;;  %v2281_v61 = vld [vmem:[%s4101_s7] sm:$0xff] }
 0x206   :  { %v1182_v39 = vsub.f32 2.0, %v1166_v14  ;;  %v1196_v29 = vmul.f32 %v2568_v3, %v1180_v59  ;;  %v1890_v43 = vsel %vm1876_vm0, %v1209_v42, %v1208_v11 }
 0x207   :  { %v1183_v5 = vsub.f32 2.0, %v1167_v20  ;;  %v1197_v41 = vmul.f32 %v2570_v37, %v1181_v31  ;;  %v1211_v10 = vmul.f32 %v1195_v32, %v1107_v45  ;;  %v1891_v6 = vsel %vm1878_vm1, %v1210_v63, %v1890_v43 }
 0x208   :  { %v1198_v24 = vmul.f32 %v2572_v40, %v1182_v39  ;;  %v1212_v38 = vmul.f32 %v1196_v29, %v1114_v23  ;;  %v2748_v45 = vmov 0  }
 0x209   :  { %v1199_v44 = vmul.f32 %v2574_v35, %v1183_v5  ;;  %v1213_v0 = vmul.f32 %v1197_v41, %v1121_v60  ;;  %v1892_v18 = vsel %vm1880_vm2, %v1211_v10, %v1891_v6  ;;  %2379 = vset.pattern.permute.xlu1 %v2748_v45  ;;  %2380 = vset.pattern.permute.xlu2 %v2748_v45  ;;  %v2282_v35 = vld [vmem:[%s4101_s7 + $0x8] sm:$0xff] }
 0x20a   :  { %v1214_v51 = vmul.f32 %v1198_v24, %v1128_v12  ;;  %v1893_v62 = vsel %vm1882_vm3, %v1212_v38, %v1892_v18  ;;  %2381 = vset.pattern.permute.xlu0 %v2748_v45 }
 0x20b   :  { %v1215_v47 = vmul.f32 %v1199_v44, %v1135_v53  ;;  %v1894_v30 = vsel %vm1884_vm4, %v1213_v0, %v1893_v62  ;;  %v2382_v62 = vld [vmem:[%s4099_s5] ss:$0 sm:$0xff] }
 0x20c   :  { %v1895_v46 = vsel %vm1886_vm5, %v1214_v51, %v1894_v30 }
 0x20d   :  { %v1896_v4 = vsel %vm1888_vm6, %v1215_v47, %v1895_v46 }
 0x20e   :  { %1918 = vmatmul.f32.gmra.mxu0 %v1896_v4 }
 0x21e   :  { %v2053_v1 = vpop.permute.xlu2 %2052 }
 0x21f   :  { %2338 = vmatpush.xpose.msk.msra.mxu1 %vm1954_vm7, %v2053_v1 }
 0x226   :  { %v2084_v36 = vpop.permute.xlu2 %2083 }
 0x227   :  { %v4051_v17 = vpop.f32.mrf.mxu0 }
 0x22e   :  { %v2115_v49 = vpop.permute.xlu2 %2114 }
 0x236   :  { %v2022_v19 = vpop.permute.xlu1 %2021  ;;  %v2146_v8 = vpop.permute.xlu2 %2145 }
 0x237   :  { %v1991_v54 = vpop.permute.xlu0 %1990  ;;  %2334 = vmatpush.xpose.msk.msra.mxu3 %vm1954_vm7, %v2022_v19  ;;  %2350 = vmatpush.xpose.msk.msra.mxu0 %vm1954_vm7, %v2146_v8 }
 0x238   :  { %2330 = vmatpush.xpose.msk.msrb.mxu2 %vm1954_vm7, %v1991_v54 }
 0x23e   :  { %v2020_v15 = vpop.permute.xlu1 %2019 }
 0x23f   :  { %v1989_v33 = vpop.permute.xlu0 %1988  ;;  %2335 = vmatpush.xpose.msk.msra.mxu3 %vm1954_vm7, %v2020_v15 }
 0x240   :  { %2331 = vmatpush.xpose.msk.msrb.mxu2 %vm1954_vm7, %v1989_v33  ;;  %v2579_v33 = vld [vmem:[%s4094_s0] sm:$0xff] }
 0x242   :  { %2336 = vmatmul.msk.f32.vlgmr.msra.gmra.mxu3 %vm1954_vm7, %v1922_v13 }
 0x243   :  { %2346 = vmatpush.xpose.msk.msrb.mxu3 %vm1954_vm7, %v2115_v49  ;;  %2332 = vmatmul.msk.f32.vlgmr.msrb.gmra.mxu2 %vm1954_vm7, %v1922_v13 }
 0x244   :  { %2342 = vmatpush.xpose.msk.msra.mxu2 %vm1954_vm7, %v2084_v36  ;;  %v1917_v36 = vadd.f32 %v2382_v62, %v4051_v17 }
 0x246   :  { %v2082_v27 = vpop.permute.xlu1 %2081 }
 0x247   :  { %v2051_v34 = vpop.permute.xlu0 %2050 }
 0x248   :  { %2343 = vmatpush.xpose.msk.msra.mxu2 %vm1954_vm7, %v2082_v27  ;;  %2339 = vmatpush.xpose.msk.msra.mxu1 %vm1954_vm7, %v2051_v34 }
 0x24a   :  { %2337 = vmatmul.msk.f32.gmra.mxu3 %vm1954_vm7, %v1923_v26 }
 0x24b   :  { %2333 = vmatmul.msk.f32.gmra.mxu2 %vm1954_vm7, %v1923_v26  ;;  %2340 = vmatmul.msk.f32.vlgmr.msra.gmra.mxu1 %vm1954_vm7, %v1922_v13 }
 0x24c   :  { %2360 = vmatpush.xpose.msk.msrb.mxu2 %vm1954_vm7, %v2146_v8 }
 0x24e   :  { %v2177_v28 = vpop.permute.xlu1 %2176 }
 0x24f   :  { %v2113_v25 = vpop.permute.xlu0 %2112  ;;  %2354 = vmatpush.xpose.msk.msrb.mxu1 %vm1954_vm7, %v2177_v28  ;;  %v2580_v28 = vld [vmem:[%s4094_s0 + $0x8] sm:$0xff] }
 0x250   :  { %2347 = vmatpush.xpose.msk.msrb.mxu3 %vm1954_vm7, %v2113_v25 }
 0x253   :  { %2341 = vmatmul.msk.f32.gmra.mxu1 %vm1954_vm7, %v1923_v26  ;;  %2344 = vmatmul.msk.f32.vlgmr.msra.gmra.mxu2 %vm1954_vm7, %v1922_v13 }
 0x254   :  { %2348 = vmatmul.msk.f32.vlgmr.msrb.gmra.mxu3 %vm1954_vm7, %v1922_v13 }
 0x256   :  { %v2144_v48 = vpop.permute.xlu1 %2143 }
 0x257   :  { %v2175_v7 = vpop.permute.xlu0 %2174  ;;  %2351 = vmatpush.xpose.msk.msra.mxu0 %vm1954_vm7, %v2144_v48  ;;  %2361 = vmatpush.xpose.msk.msrb.mxu2 %vm1954_vm7, %v2144_v48 }
 0x258   :  { %2355 = vmatpush.xpose.msk.msrb.mxu1 %vm1954_vm7, %v2175_v7 }
 0x25a   :  { %2352 = vmatmul.msk.f32.vlgmr.msra.gmra.mxu0 %vm1954_vm7, %v1922_v13 }
 0x25b   :  { %2345 = vmatmul.msk.f32.gmra.mxu2 %vm1954_vm7, %v1923_v26  ;;  %2356 = vmatmul.msk.f32.vlgmr.msrb.gmra.mxu1 %vm1954_vm7, %v1922_v13 }
 0x25c   :  { %2349 = vmatmul.msk.f32.gmra.mxu3 %vm1954_vm7, %v1923_v26 }
 0x263   :  { %2353 = vmatmul.msk.f32.vlgmr.msrb.gmra.mxu2 %vm1954_vm7, %v1923_v26  ;;  %2357 = vmatmul.msk.f32.gmra.mxu1 %vm1954_vm7, %v1923_v26 }
 0x27b   :  { %v1982_v50 = vpop.f32.mrf.mxu1 }
 0x284   :  { %v1985_v16 = vpop.f32.mrf.mxu3 }
 0x28b   :  { %v4056_v2 = vpop.f32.mrf.mxu0 }
 0x28c   :  { %v1920_v54 = vadd.f32 %v2382_v62, %v4056_v2 }
 0x2c5   :  { %v2044_v52 = vpop.f32.mrf.mxu3 }
 0x2c6   :  { %v2013_v55 = vpop.f32.mrf.mxu2  ;;  %2215 = vrot.lane.b32.xlu1 %v2044_v52, %s2746_s16 }
 0x2c7   :  { %2207 = vrot.lane.b32.xlu2 %v2013_v55, %s2747_s17 }
 0x2c8   :  { %v2075_v3 = vpop.f32.mrf.mxu1 }
 0x2c9   :  { %2223 = vrot.lane.b32.xlu0 %v2075_v3, %s2735_s11 }
 0x2cd   :  { %v2047_v23 = vpop.f32.mrf.mxu3 }
 0x2ce   :  { %v2016_v57 = vpop.f32.mrf.mxu2 }
 0x2cf   :  { %2217 = vrot.lane.b32.xlu2 %v2047_v23, %s2746_s16 }
 0x2d0   :  { %v2078_v37 = vpop.f32.mrf.mxu1 }
 0x2d1   :  { %2225 = vrot.lane.b32.xlu1 %v2078_v37, %s2735_s11 }
 0x2d6   :  { %v2106_v21 = vpop.f32.mrf.mxu2 }
 0x2d7   :  { %v2137_v58 = vpop.f32.mrf.mxu3  ;;  %v2168_v9 = vpop.f32.mrf.mxu0 }
 0x2d8   :  { %v2199_v11 = vpop.f32.mrf.mxu1  ;;  %2247 = vrot.lane.b32.xlu0 %v2168_v9, %s2743_s13 }
 0x2d9   :  { %2239 = vrot.lane.b32.xlu1 %v2137_v58, %s2742_s12  ;;  %2255 = vrot.lane.b32.xlu2 %v2199_v11, %s2744_s14 }
 0x2de   :  { %v2109_v40 = vpop.f32.mrf.mxu2 }
 0x2df   :  { %v2140_v22 = vpop.f32.mrf.mxu3 }
 0x2e0   :  { %2209 = vrot.lane.b32.xlu0 %v2016_v57, %s2747_s17  ;;  %v2202_v56 = vpop.f32.mrf.mxu1 }
 0x2e1   :  { %2231 = vrot.lane.b32.xlu2 %v2106_v21, %s2745_s15 }
 0x2e6   :  { %v2171_v60 = vpop.f32.mrf.mxu2 }
 0x2e7   :  { %2249 = vrot.lane.b32.xlu1 %v2171_v60, %s2743_s13 }
 0x2e8   :  { %2233 = vrot.lane.b32.xlu0 %v2109_v40, %s2745_s15 }
 0x2e9   :  { %2241 = vrot.lane.b32.xlu2 %v2140_v22, %s2742_s12 }
 0x2ef   :  { %2285 = vperm.xlu1 %2379, %v2281_v61  }
 0x2f0   :  { %2257 = vrot.lane.b32.xlu0 %v2202_v56, %s2744_s14 }
 0x2f1   :  { %2290 = vperm.xlu2 %2380, %v2282_v35  }
 0x321   :  { %v2208_v12 = vpop.permute.xlu2 %2207 }
 0x322   :  { %v2261_v29 = vsel %vm1954_vm7, %v1982_v50, %v2208_v12 }
 0x329   :  { %v2218_v14 = vpop.permute.xlu2 %2217 }
 0x333   :  { %v2256_v20 = vpop.permute.xlu2 %2255 }
 0x338   :  { %v2216_v59 = vpop.permute.xlu1 %2215 }
 0x339   :  { %v2264_v43 = vsel %vm2263_vm8, %v2261_v29, %v2216_v59 }
 0x33b   :  { %v2224_v42 = vpop.permute.xlu0 %2223  ;;  %v2232_v63 = vpop.permute.xlu2 %2231 }
 0x33c   :  { %v2267_v41 = vsel %vm2266_vm9, %v2264_v43, %v2224_v42 }
 0x33d   :  { %v2270_v38 = vsel %vm2269_vm10, %v2267_v41, %v2232_v63 }
 0x343   :  { %v2226_v31 = vpop.permute.xlu1 %2225  ;;  %v2242_v10 = vpop.permute.xlu2 %2241 }
 0x34a   :  { %v2248_v32 = vpop.permute.xlu0 %2247 }
 0x34b   :  { %v2240_v53 = vpop.permute.xlu1 %2239  ;;  %v2291_v1 = vpop.permute.xlu2 %2290 }
 0x34c   :  { %v2273_v0 = vsel %vm2272_vm11, %v2270_v38, %v2240_v53 }
 0x34d   :  { %v2276_v47 = vsel %vm2275_vm12, %v2273_v0, %v2248_v32 }
 0x34e   :  { %v2279_v4 = vsel %vm2278_vm13, %v2276_v47, %v2256_v20 }
 0x352   :  { %v2210_v39 = vpop.permute.xlu0 %2209 }
 0x353   :  { %v2262_v5 = vsel %vm1954_vm7, %v1985_v16, %v2210_v39 }
 0x354   :  { %v2265_v6 = vsel %vm2263_vm8, %v2262_v5, %v2218_v14 }
 0x355   :  { %v2268_v18 = vsel %vm2266_vm9, %v2265_v6, %v2226_v31 }
 0x359   :  { %v2250_v24 = vpop.permute.xlu1 %2249 }
 0x35a   :  { %v2234_v44 = vpop.permute.xlu0 %2233 }
 0x35b   :  { %v2271_v51 = vsel %vm2269_vm10, %v2268_v18, %v2234_v44 }
 0x35c   :  { %v2274_v30 = vsel %vm2272_vm11, %v2271_v51, %v2242_v10 }
 0x35d   :  { %v2277_v26 = vsel %vm2275_vm12, %v2274_v30, %v2250_v24 }
 0x361   :  { %v2286_v46 = vpop.permute.xlu1 %2285 }
 0x362   :  { %v2293_v49 = vadd.f32 %v2286_v46, %v2279_v4  ;;  %v2258_v19 = vpop.permute.xlu0 %2257 }
 0x363   :  { %v2280_v13 = vsel %vm2278_vm13, %v2277_v26, %v2258_v19 }
 0x364   :  { %v2295_v8 = vadd.f32 %v2293_v49, %v1917_v36  ;;  %v2294_v15 = vadd.f32 %v2291_v1, %v2280_v13 }
 0x366   :  { %v2297_v27 = vadd.f32 %v2579_v33, %v2295_v8  ;;  %v2296_v34 = vadd.f32 %v2294_v15, %v1920_v54 }
 0x368   :  { %2575 = vtanh.f32 %v2297_v27  ;;  %v2298_v25 = vadd.f32 %v2580_v28, %v2296_v34 }
 0x36a   :  { %2577 = vtanh.f32 %v2298_v25 }
 0x36e   :  { %v2576_v48 = vpop.eup %2575 }
 0x36f   :  { %v2301_v7 = vmul.f32 0.17677669, %v2576_v48 }
 0x370   :  { %v2578_v16 = vpop.eup %2577 }
 0x371   :  { %2303 = vst [vmem:[#allocation11] sm:$0xff] %v2301_v7  ;;  %v2302_v50 = vmul.f32 0.17677669, %v2578_v16 }
 0x373   :  { %2304 = vst [vmem:[#allocation11 + $0x8] sm:$0xff] %v2302_v50 }
 0x374   :  { %2317 = dma.vmem_to_hbm [thread:$0]  %s2310_s25, 256, %s2312_s28, [#allocation4], %s2737_s19, %s2737_s19, %s2738_s20  }
 0x375   :  { %2731 = dma.done.wait [#allocation4], 256  }
 0x376   :  { %2732 = vsyncadd [#allocation4], 4294967040 }
 0x377   :  { %2322 = vsyncpa [#allocation3], 1 }
 0x378   :  { %2323 = vsyncpa [#allocation6], 1 }
 0x379   :  { %2324 = vsyncpa [#allocation9], 1 }
 0x37a   :  { %2325 = vsyncpa [#allocation4], 1 }

</bundles_post_ra>
